<compile_context>
chip_gen: v7x
topology: tpu7x:2x2x1
jax: 0.10.0
libtpu: 0.0.40
codegen_flags: <defaults>
</compile_context>

<pallas_src>
import functools

import jax
import jax.numpy as jnp
from jax.experimental import pallas as pl
from jax.experimental.pallas import tpu as pltpu

LANE = 128            # lane width / channel padding granularity
_EPS = 1e-5
# Scoped VMEM budget: fits the per-block working set with headroom on the
# 64 MiB/TC v7x; sweep higher (64-96 MiB) on v5e/v6e (128 MiB physical).
_VMEM_LIMIT = 48 * 1024 * 1024


def _round_up(n, m):
    return ((n + m - 1) // m) * m


def _pad_axis(a, axis, mult=LANE):
    pad = _round_up(a.shape[axis], mult) - a.shape[axis]
    if pad == 0:
        return a
    widths = [(0, 0)] * a.ndim
    widths[axis] = (0, pad)
    return jnp.pad(a, widths)


def _pick_nb(batch, rows_per_item, target_rows=512):
    """ROIs per grid step: ~512 rows/step (MXU fill) but >= 2 steps for megacore."""
    nb = max(1, min(batch, target_rows // max(rows_per_item, 1)))
    while batch % nb:
        nb -= 1
    if batch >= 2 and batch // nb < 2:
        nb = max(1, batch // 2)
        while batch % nb:
            nb -= 1
    return nb


# ---------------------------------------------------------------------------
# Fused Bottleneck kernel: 1x1 -> 3x3 -> 1x1 (+ residual) with BN folded,
# everything between the block input and block output resident in VMEM.
# ---------------------------------------------------------------------------
def _bottleneck_kernel(x_ref, w1_ref, b1_ref, w2_ref, b2_ref, w3_ref, b3_ref,
                       *rest, w_true, has_ds):
    if has_ds:
        wd_ref, bd_ref, o_ref, t_ref, acc_ref = rest
    else:
        o_ref, t_ref, acc_ref = rest

    nb, H, Wc, cin = x_ref.shape
    wch = w1_ref.shape[1]               # bottleneck width (padded)
    cout = w3_ref.shape[1]
    HW = H * Wc
    R = nb * HW
    guard = (t_ref.shape[1] - HW) // 2  # guard rows per side (= Wc + 8)

    X = x_ref[...].reshape(R, cin)

    # ---- conv1: 1x1 + folded BN + ReLU; zero the W-pad columns so they act
    #      as the zero halo of the 3x3 (column direction). ----
    t1 = jnp.dot(X, w1_ref[...], preferred_element_type=jnp.float32) + b1_ref[...]
    t1 = jnp.maximum(t1, 0.0)
    col_iota = jax.lax.broadcasted_iota(jnp.int32, (Wc, wch), 0)
    t1 = jnp.where(col_iota < w_true, t1.reshape(nb, H, Wc, wch), 0.0)
    t1 = t1.astype(jnp.bfloat16)

    # Stage into the per-ROI guard-row scratch (row-direction zero halo).
    # Guards are rewritten every step (megacore-safe), interior overwritten.
    t_ref[:, :guard, :] = jnp.zeros((nb, guard, wch), jnp.bfloat16)
    t_ref[:, guard + HW:, :] = jnp.zeros((nb, guard, wch), jnp.bfloat16)
    t_ref[:, guard:guard + HW, :] = t1.reshape(nb, HW, wch)

    # ---- conv2: 3x3 + folded BN + ReLU.  9 static row-shifted slices per ROI
    #      accumulate into the f32 VMEM scratch (dx=0 taps are 8-aligned). ----
    for b in range(nb):
        row0 = b * HW
        for dy in (-1, 0, 1):
            for dx in (-1, 0, 1):
                tap = (dy + 1) * 3 + (dx + 1)
                off = guard + dy * Wc + dx
                src = t_ref[b, off:off + HW, :]
                part = jnp.dot(src, w2_ref[tap],
                               preferred_element_type=jnp.float32)
                if dy == -1 and dx == -1:
                    acc_ref[row0:row0 + HW, :] = part
                else:
                    acc_ref[row0:row0 + HW, :] += part
    t2 = jnp.maximum(acc_ref[...] + b2_ref[...], 0.0).astype(jnp.bfloat16)

    # ---- conv3: 1x1 + folded BN, residual add, final ReLU ----
    y = jnp.dot(t2, w3_ref[...], preferred_element_type=jnp.float32) + b3_ref[...]
    if has_ds:
        y = y + jnp.dot(X, wd_ref[...], preferred_element_type=jnp.float32) + bd_ref[...]
    else:
        y = y + X.astype(jnp.float32)
    y = jnp.maximum(y, 0.0)
    o_ref[...] = y.astype(o_ref.dtype).reshape(nb, H, Wc, cout)


def bottleneck_block(x, p, w_true, nb):
    """One fused Bottleneck: x (B, H, Wc, CinP) bf16 -> (B, H, Wc, CoutP) bf16."""
    B, H, Wc, cin = x.shape
    wch = p['w1'].shape[1]
    cout = p['w3'].shape[1]
    HW = H * Wc
    guard = Wc + 8                      # >= Wc+1, multiple of 8
    has_ds = 'wd' in p

    kernel = functools.partial(_bottleneck_kernel, w_true=w_true, has_ds=has_ds)

    in_specs = [
        pl.BlockSpec((nb, H, Wc, cin), lambda i: (i, 0, 0, 0)),
        pl.BlockSpec((cin, wch), lambda i: (0, 0)),
        pl.BlockSpec((1, wch), lambda i: (0, 0)),
        pl.BlockSpec((9, wch, wch), lambda i: (0, 0, 0)),
        pl.BlockSpec((1, wch), lambda i: (0, 0)),
        pl.BlockSpec((wch, cout), lambda i: (0, 0)),
        pl.BlockSpec((1, cout), lambda i: (0, 0)),
    ]
    args = [x, p['w1'], p['b1'], p['w2'], p['b2'], p['w3'], p['b3']]
    if has_ds:
        in_specs += [pl.BlockSpec((cin, cout), lambda i: (0, 0)),
                     pl.BlockSpec((1, cout), lambda i: (0, 0))]
        args += [p['wd'], p['bd']]

    return pl.pallas_call(
        kernel,
        out_shape=jax.ShapeDtypeStruct((B, H, Wc, cout), jnp.bfloat16),
        grid_spec=pltpu.PrefetchScalarGridSpec(
            num_scalar_prefetch=0,
            grid=(B // nb,),
            in_specs=in_specs,
            out_specs=pl.BlockSpec((nb, H, Wc, cout), lambda i: (i, 0, 0, 0)),
            scratch_shapes=[
                pltpu.VMEM((nb, HW + 2 * guard, wch), jnp.bfloat16),  # 3x3 halo tile
                pltpu.VMEM((nb * HW, wch), jnp.float32),              # 3x3 accumulator
            ]),
        compiler_params=pltpu.CompilerParams(
            dimension_semantics=("parallel",),
            vmem_limit_bytes=_VMEM_LIMIT),
    )(*args)


# ---------------------------------------------------------------------------
# Fused deconv(2x2, s=2) + ReLU + 1x1 logits kernel.
# Output layout (B, tap=kh*2+kw, H, Wc, ncP): flattening (H,2)/(Wc,2) realises
# the 2x2 interleave, so no separate interleave pass is needed.
# ---------------------------------------------------------------------------
def _deconv_logits_kernel(x_ref, wdec_ref, bdec_ref, wlog_ref, blog_ref, o_ref):
    nb, H, Wc, cin = x_ref.shape
    coutp = wlog_ref.shape[0]
    ncp = wlog_ref.shape[1]
    R = nb * H * Wc
    X = x_ref[...].reshape(R, cin)
    for t in range(4):                                    # tap = kh*2 + kw
        wt = wdec_ref[:, t * coutp:(t + 1) * coutp]       # lane-aligned slice
        tap = jnp.dot(X, wt, preferred_element_type=jnp.float32) + bdec_ref[...]
        tap = jnp.maximum(tap, 0.0).astype(jnp.bfloat16)
        lg = jnp.dot(tap, wlog_ref[...],
                     preferred_element_type=jnp.float32) + blog_ref[...]
        o_ref[:, t, :, :, :] = lg.astype(o_ref.dtype).reshape(nb, H, Wc, ncp)


def deconv_logits_block(x, params, nb):
    B, H, Wc, cin = x.shape
    w_dec = params['w_deconv']          # (cinP, 4*coutP) bf16, tap-major columns
    b_dec = params['b_deconv']          # (1, coutP) f32
    w_log = params['w_logits']          # (coutP, ncP) bf16
    b_log = params['b_logits']          # (1, ncP) f32
    coutp = w_log.shape[0]
    ncp = w_log.shape[1]

    return pl.pallas_call(
        _deconv_logits_kernel,
        out_shape=jax.ShapeDtypeStruct((B, 4, H, Wc, ncp), jnp.float32),
        grid_spec=pltpu.PrefetchScalarGridSpec(
            num_scalar_prefetch=0,
            grid=(B // nb,),
            in_specs=[
                pl.BlockSpec((nb, H, Wc, cin), lambda i: (i, 0, 0, 0)),
                pl.BlockSpec((cin, 4 * coutp), lambda i: (0, 0)),
                pl.BlockSpec((1, coutp), lambda i: (0, 0)),
                pl.BlockSpec((coutp, ncp), lambda i: (0, 0)),
                pl.BlockSpec((1, ncp), lambda i: (0, 0)),
            ],
            out_specs=pl.BlockSpec((nb, 4, H, Wc, ncp),
                                   lambda i: (i, 0, 0, 0, 0)),
        ),
        compiler_params=pltpu.CompilerParams(
            dimension_semantics=("parallel",),
            vmem_limit_bytes=_VMEM_LIMIT),
    )(x, w_dec, b_dec, w_log, b_log)


# ---------------------------------------------------------------------------
# Parameter init (deterministic, synthetic).  Eval-mode BN folded into conv:
#   w' = w * g/sqrt(v+eps),  b' = beta - mean*g/sqrt(v+eps)
# All channel axes zero-padded to multiples of 128, weights stored bf16,
# biases stored (1, N) f32.
# ---------------------------------------------------------------------------
def _bn_params(key, c):
    k1, k2, k3, k4 = jax.random.split(key, 4)
    gamma = 1.0 + 0.1 * jax.random.normal(k1, (c,), jnp.float32)
    beta = 0.05 * jax.random.normal(k2, (c,), jnp.float32)
    mean = 0.05 * jax.random.normal(k3, (c,), jnp.float32)
    var = 0.5 + jax.random.uniform(k4, (c,), jnp.float32)
    return gamma, beta, mean, var


def _fold_bn(w, bn):
    gamma, beta, mean, var = bn
    scale = gamma / jnp.sqrt(var + _EPS)
    return w * scale, beta - mean * scale


def _pack_1x1(w, b):
    w = _pad_axis(_pad_axis(w, 0), 1).astype(jnp.bfloat16)
    b = _pad_axis(b, 0).astype(jnp.float32).reshape(1, -1)
    return w, b


def _pack_3x3(w, b):
    w = _pad_axis(_pad_axis(w, 2), 3)                     # (3, 3, KP, NP)
    w = w.reshape(9, w.shape[2], w.shape[3]).astype(jnp.bfloat16)
    b = _pad_axis(b, 0).astype(jnp.float32).reshape(1, -1)
    return w, b


def init_bottleneck(key, inplanes, planes, expansion=4, downsample=False):
    keys = jax.random.split(key, 8)
    width = planes                       # groups=1, base_width=64 -> width == planes
    p = {}
    w1 = jax.random.normal(keys[0], (inplanes, width), jnp.float32) * (2.0 / inplanes) ** 0.5
    p['w1'], p['b1'] = _pack_1x1(*_fold_bn(w1, _bn_params(keys[1], width)))
    w2 = jax.random.normal(keys[2], (3, 3, width, width), jnp.float32) * (2.0 / (9 * width)) ** 0.5
    p['w2'], p['b2'] = _pack_3x3(*_fold_bn(w2, _bn_params(keys[3], width)))
    w3 = jax.random.normal(keys[4], (width, planes * expansion), jnp.float32) * (2.0 / width) ** 0.5
    p['w3'], p['b3'] = _pack_1x1(*_fold_bn(w3, _bn_params(keys[5], planes * expansion)))
    if downsample:
        wd = jax.random.normal(keys[6], (inplanes, planes * expansion), jnp.float32) * (2.0 / inplanes) ** 0.5
        p['wd'], p['bd'] = _pack_1x1(*_fold_bn(wd, _bn_params(keys[7], planes * expansion)))
    return p


def init_head(key, in_channels, conv_out_channels, num_classes,
              num_blocks=3, expansion=4):
    keys = jax.random.split(key, num_blocks + 2)
    blocks = []
    inplanes = in_channels
    for i in range(num_blocks):
        needs_ds = inplanes != in_channels * expansion
        blocks.append(init_bottleneck(keys[i], inplanes, in_channels,
                                      expansion, downsample=needs_ds))
        inplanes = in_channels * expansion

    # ConvTranspose2d(k=2, s=2): one matmul with tap-major columns (tap = kh*2+kw)
    kd1, kd2 = jax.random.split(keys[num_blocks])
    cin = in_channels * expansion
    w_dec = jax.random.normal(kd1, (cin, conv_out_channels, 2, 2), jnp.float32) * (2.0 / cin) ** 0.5
    b_dec = 0.05 * jax.random.normal(kd2, (conv_out_channels,), jnp.float32)
    w_dec = jnp.transpose(w_dec, (0, 2, 3, 1))            # (cin, kh, kw, cout)
    w_dec = _pad_axis(_pad_axis(w_dec, 0), 3)             # (cinP, 2, 2, coutP)
    cinP, _, _, coutP = w_dec.shape
    w_dec = w_dec.reshape(cinP, 4 * coutP).astype(jnp.bfloat16)
    b_dec = _pad_axis(b_dec, 0).astype(jnp.float32).reshape(1, -1)

    # 1x1 logits conv: 81 classes padded to 128 -> lane-dense stores.
    kl1, kl2 = jax.random.split(keys[num_blocks + 1])
    w_log = jax.random.normal(kl1, (conv_out_channels, num_classes), jnp.float32) * (1.0 / conv_out_channels) ** 0.5
    b_log = 0.05 * jax.random.normal(kl2, (num_classes,), jnp.float32)
    w_log, b_log = _pack_1x1(w_log, b_log)

    return dict(blocks=blocks, w_deconv=w_dec, b_deconv=b_dec,
                w_logits=w_log, b_logits=b_log)


# ---------------------------------------------------------------------------
# Forward pass
# ---------------------------------------------------------------------------
def res_mask_head_forward(params, x_nchw, num_classes):
    # Public interface NCHW (PyTorch); compute NHWC, channels lane-padded,
    # width padded once to Wc >= W+1 (mult of 8) and carried end-to-end.
    x = jnp.transpose(x_nchw, (0, 2, 3, 1)).astype(jnp.bfloat16)
    B, H, W, C = x.shape
    Wc = _round_up(W + 1, 8)
    Cp = _round_up(C, LANE)
    x = jnp.pad(x, ((0, 0), (0, 0), (0, Wc - W), (0, Cp - C)))

    nb = _pick_nb(B, H * Wc)

    for p in params['blocks']:                 # layer4 (res5, stride 1), fused blocks
        x = bottleneck_block(x, p, w_true=W, nb=nb)

    out5 = deconv_logits_block(x, params, nb=nb)      # (B, 4, H, Wc, ncP) f32
    ncP = out5.shape[-1]
    out6 = out5.reshape(B, 2, 2, H, Wc, ncP)
    logits = jnp.transpose(out6, (0, 5, 3, 1, 4, 2))  # (B, ncP, H, 2, Wc, 2)
    logits = logits.reshape(B, ncP, 2 * H, 2 * Wc)    # 2x2 interleave realised by layout
    return logits[:, :num_classes, :, :2 * W]         # drop class / width padding

# TODO(synk): get_target / loss / get_seg_masks are training & host-side
# post-processing (mask_target sampling, cross-entropy, mmcv resize + RLE
# encode) — not part of the forward hot path, not implemented as Pallas kernels.


if __name__ == "__main__":
    key = jax.random.PRNGKey(0)
    kx, kp = jax.random.split(key)

    # Small config consistent with the module: in_channels == conv_out_channels,
    # Bottleneck expansion 4, 3 blocks, deconv x2, 81-class logits.
    B, C, H, W = 2, 16, 8, 8
    NUM_CLASSES = 81

    x = jax.random.normal(kx, (B, C, H, W), dtype=jnp.float32)
    params = init_head(kp, in_channels=C, conv_out_channels=C,
                       num_classes=NUM_CLASSES, num_blocks=3, expansion=4)

    fwd = jax.jit(res_mask_head_forward, static_argnames="num_classes")
    mask_pred = jax.block_until_ready(fwd(params, x, num_classes=NUM_CLASSES))

    assert mask_pred.shape == (B, NUM_CLASSES, 2 * H, 2 * W), mask_pred.shape
    assert bool(jnp.all(jnp.isfinite(mask_pred)))
    print("KERNEL_OK")
</pallas_src>

<mosaic_0001>
module attributes {stable_mosaic.version = 11 : i64} {
  func.func @_bottleneck_kernel(%arg0: i32, %arg1: memref<1x8x16x128xbf16, #tpu.memory_space<vmem>>, %arg2: memref<128x128xbf16, #tpu.memory_space<vmem>>, %arg3: memref<1x128xf32, #tpu.memory_space<vmem>>, %arg4: memref<9x128x128xbf16, #tpu.memory_space<vmem>>, %arg5: memref<1x128xf32, #tpu.memory_space<vmem>>, %arg6: memref<128x128xbf16, #tpu.memory_space<vmem>>, %arg7: memref<1x128xf32, #tpu.memory_space<vmem>>, %arg8: memref<1x8x16x128xbf16, #tpu.memory_space<vmem>>, %arg9: memref<1x176x128xbf16, #tpu.memory_space<vmem>>, %arg10: memref<128x128xf32, #tpu.memory_space<vmem>>) attributes {dimension_semantics = [#tpu.dimension_semantics<parallel>], iteration_bounds = array<i64: 2>, scalar_prefetch = 0 : i64, scratch_operands = 2 : i64, tpu.core_type = #tpu.core_type<tc>, window_params = [{transform_indices = @transform_0, window_bounds = array<i64: 1, 8, 16, 128>}, {pipeline_mode = #tpu.pipeline_mode<synchronous>, transform_indices = @transform_1, window_bounds = array<i64: 128, 128>}, {pipeline_mode = #tpu.pipeline_mode<synchronous>, transform_indices = @transform_2, window_bounds = array<i64: 1, 128>}, {pipeline_mode = #tpu.pipeline_mode<synchronous>, transform_indices = @transform_3, window_bounds = array<i64: 9, 128, 128>}, {pipeline_mode = #tpu.pipeline_mode<synchronous>, transform_indices = @transform_4, window_bounds = array<i64: 1, 128>}, {pipeline_mode = #tpu.pipeline_mode<synchronous>, transform_indices = @transform_5, window_bounds = array<i64: 128, 128>}, {pipeline_mode = #tpu.pipeline_mode<synchronous>, transform_indices = @transform_6, window_bounds = array<i64: 1, 128>}, {transform_indices = @transform_7, window_bounds = array<i64: 1, 8, 16, 128>}]} {
    %c0 = arith.constant 0 : index
    %c0_0 = arith.constant 0 : index
    %c0_1 = arith.constant 0 : index
    %c0_2 = arith.constant 0 : index
    %0 = vector.load %arg1[%c0, %c0_0, %c0_1, %c0_2] : memref<1x8x16x128xbf16, #tpu.memory_space<vmem>>, vector<1x8x16x128xbf16>
    %1 = vector.shape_cast %0 : vector<1x8x16x128xbf16> to vector<128x128xbf16>
    %c0_3 = arith.constant 0 : index
    %c0_4 = arith.constant 0 : index
    %2 = vector.load %arg2[%c0_3, %c0_4] : memref<128x128xbf16, #tpu.memory_space<vmem>>, vector<128x128xbf16>
    %cst = arith.constant dense<0.000000e+00> : vector<128x128xf32>
    %3 = tpu.matmul %1, %2, %cst {dimension_numbers = #tpu.dot_dimension_numbers<[1], [0], [0], [1], [0, 0, 1, 1], [], []>} : vector<128x128xbf16>, vector<128x128xbf16>, vector<128x128xf32> -> vector<128x128xf32>
    %c0_5 = arith.constant 0 : index
    %c0_6 = arith.constant 0 : index
    %4 = vector.load %arg3[%c0_5, %c0_6] : memref<1x128xf32, #tpu.memory_space<vmem>>, vector<1x128xf32>
    %5 = vector.broadcast %4 : vector<1x128xf32> to vector<128x128xf32>
    %6 = arith.addf %3, %5 : vector<128x128xf32>
    %cst_7 = arith.constant 0.000000e+00 : f32
    %7 = vector.broadcast %cst_7 : f32 to vector<128x128xf32>
    %8 = arith.maximumf %6, %7 : vector<128x128xf32>
    %9 = tpu.iota {dimensions = array<i32: 0>} : vector<16x128xi32>
    %c8_i32 = arith.constant 8 : i32
    %10 = vector.broadcast %c8_i32 : i32 to vector<16x128xi32>
    %11 = arith.cmpi slt, %9, %10 : vector<16x128xi32>
    %12 = vector.shape_cast %8 : vector<128x128xf32> to vector<1x8x16x128xf32>
    %cst_8 = arith.constant 0.000000e+00 : f32
    %13 = vector.shape_cast %11 : vector<16x128xi1> to vector<1x1x16x128xi1>
    %14 = vector.broadcast %13 : vector<1x1x16x128xi1> to vector<1x8x16x128xi1>
    %15 = vector.broadcast %cst_8 : f32 to vector<1x8x16x128xf32>
    %16 = arith.select %14, %12, %15 : vector<1x8x16x128xi1>, vector<1x8x16x128xf32>
    %17 = arith.truncf %16 : vector<1x8x16x128xf32> to vector<1x8x16x128xbf16>
    %cst_9 = arith.constant 0.000000e+00 : bf16
    %18 = vector.broadcast %cst_9 : bf16 to vector<1x24x128xbf16>
    %c0_10 = arith.constant 0 : index
    %c0_11 = arith.constant 0 : index
    %c0_12 = arith.constant 0 : index
    %19 = vector.load %arg9[%c0_10, %c0_11, %c0_12] : memref<1x176x128xbf16, #tpu.memory_space<vmem>>, vector<1x24x128xbf16>
    tpu.vector_store %arg9[%c0_10, %c0_11, %c0_12], %18 {strides = array<i32>} : memref<1x176x128xbf16, #tpu.memory_space<vmem>>, vector<1x24x128xbf16>,
    %cst_13 = arith.constant 0.000000e+00 : bf16
    %20 = vector.broadcast %cst_13 : bf16 to vector<1x24x128xbf16>
    %c0_14 = arith.constant 0 : index
    %c152 = arith.constant 152 : index
    %c0_15 = arith.constant 0 : index
    %21 = vector.load %arg9[%c0_14, %c152, %c0_15] : memref<1x176x128xbf16, #tpu.memory_space<vmem>>, vector<1x24x128xbf16>
    tpu.vector_store %arg9[%c0_14, %c152, %c0_15], %20 {strides = array<i32>} : memref<1x176x128xbf16, #tpu.memory_space<vmem>>, vector<1x24x128xbf16>,
    %22 = vector.shape_cast %17 : vector<1x8x16x128xbf16> to vector<1x128x128xbf16>
    %c0_16 = arith.constant 0 : index
    %c24 = arith.constant 24 : index
    %c0_17 = arith.constant 0 : index
    %23 = vector.load %arg9[%c0_16, %c24, %c0_17] : memref<1x176x128xbf16, #tpu.memory_space<vmem>>, vector<1x128x128xbf16>
    tpu.vector_store %arg9[%c0_16, %c24, %c0_17], %22 {strides = array<i32>} : memref<1x176x128xbf16, #tpu.memory_space<vmem>>, vector<1x128x128xbf16>,
    %c0_18 = arith.constant 0 : index
    %c7 = arith.constant 7 : index
    %c0_19 = arith.constant 0 : index
    %24 = vector.load %arg9[%c0_18, %c7, %c0_19] : memref<1x176x128xbf16, #tpu.memory_space<vmem>>, vector<1x128x128xbf16>
    %25 = vector.shape_cast %24 : vector<1x128x128xbf16> to vector<128x128xbf16>
    %c0_20 = arith.constant 0 : index
    %c0_21 = arith.constant 0 : index
    %c0_22 = arith.constant 0 : index
    %26 = vector.load %arg4[%c0_20, %c0_21, %c0_22] : memref<9x128x128xbf16, #tpu.memory_space<vmem>>, vector<1x128x128xbf16>
    %27 = vector.shape_cast %26 : vector<1x128x128xbf16> to vector<128x128xbf16>
    %cst_23 = arith.constant dense<0.000000e+00> : vector<128x128xf32>
    %28 = tpu.matmul %25, %27, %cst_23 {dimension_numbers = #tpu.dot_dimension_numbers<[1], [0], [0], [1], [0, 0, 1, 1], [], []>} : vector<128x128xbf16>, vector<128x128xbf16>, vector<128x128xf32> -> vector<128x128xf32>
    %c0_24 = arith.constant 0 : index
    %c0_25 = arith.constant 0 : index
    %29 = vector.load %arg10[%c0_24, %c0_25] : memref<128x128xf32, #tpu.memory_space<vmem>>, vector<128x128xf32>
    tpu.vector_store %arg10[%c0_24, %c0_25], %28 {strides = array<i32>} : memref<128x128xf32, #tpu.memory_space<vmem>>, vector<128x128xf32>,
    %c0_26 = arith.constant 0 : index
    %c8 = arith.constant 8 : index
    %c0_27 = arith.constant 0 : index
    %30 = vector.load %arg9[%c0_26, %c8, %c0_27] : memref<1x176x128xbf16, #tpu.memory_space<vmem>>, vector<1x128x128xbf16>
    %31 = vector.shape_cast %30 : vector<1x128x128xbf16> to vector<128x128xbf16>
    %c1 = arith.constant 1 : index
    %c0_28 = arith.constant 0 : index
    %c0_29 = arith.constant 0 : index
    %32 = vector.load %arg4[%c1, %c0_28, %c0_29] : memref<9x128x128xbf16, #tpu.memory_space<vmem>>, vector<1x128x128xbf16>
    %33 = vector.shape_cast %32 : vector<1x128x128xbf16> to vector<128x128xbf16>
    %cst_30 = arith.constant dense<0.000000e+00> : vector<128x128xf32>
    %34 = tpu.matmul %31, %33, %cst_30 {dimension_numbers = #tpu.dot_dimension_numbers<[1], [0], [0], [1], [0, 0, 1, 1], [], []>} : vector<128x128xbf16>, vector<128x128xbf16>, vector<128x128xf32> -> vector<128x128xf32>
    %c0_31 = arith.constant 0 : index
    %c0_32 = arith.constant 0 : index
    %35 = vector.load %arg10[%c0_31, %c0_32] : memref<128x128xf32, #tpu.memory_space<vmem>>, vector<128x128xf32>
    %36 = arith.addf %35, %34 : vector<128x128xf32>
    %c0_33 = arith.constant 0 : index
    %c0_34 = arith.constant 0 : index
    %37 = vector.load %arg10[%c0_33, %c0_34] : memref<128x128xf32, #tpu.memory_space<vmem>>, vector<128x128xf32>
    tpu.vector_store %arg10[%c0_33, %c0_34], %36 {strides = array<i32>} : memref<128x128xf32, #tpu.memory_space<vmem>>, vector<128x128xf32>,
    %c0_35 = arith.constant 0 : index
    %c9 = arith.constant 9 : index
    %c0_36 = arith.constant 0 : index
    %38 = vector.load %arg9[%c0_35, %c9, %c0_36] : memref<1x176x128xbf16, #tpu.memory_space<vmem>>, vector<1x128x128xbf16>
    %39 = vector.shape_cast %38 : vector<1x128x128xbf16> to vector<128x128xbf16>
    %c2 = arith.constant 2 : index
    %c0_37 = arith.constant 0 : index
    %c0_38 = arith.constant 0 : index
    %40 = vector.load %arg4[%c2, %c0_37, %c0_38] : memref<9x128x128xbf16, #tpu.memory_space<vmem>>, vector<1x128x128xbf16>
    %41 = vector.shape_cast %40 : vector<1x128x128xbf16> to vector<128x128xbf16>
    %cst_39 = arith.constant dense<0.000000e+00> : vector<128x128xf32>
    %42 = tpu.matmul %39, %41, %cst_39 {dimension_numbers = #tpu.dot_dimension_numbers<[1], [0], [0], [1], [0, 0, 1, 1], [], []>} : vector<128x128xbf16>, vector<128x128xbf16>, vector<128x128xf32> -> vector<128x128xf32>
    %c0_40 = arith.constant 0 : index
    %c0_41 = arith.constant 0 : index
    %43 = vector.load %arg10[%c0_40, %c0_41] : memref<128x128xf32, #tpu.memory_space<vmem>>, vector<128x128xf32>
    %44 = arith.addf %43, %42 : vector<128x128xf32>
    %c0_42 = arith.constant 0 : index
    %c0_43 = arith.constant 0 : index
    %45 = vector.load %arg10[%c0_42, %c0_43] : memref<128x128xf32, #tpu.memory_space<vmem>>, vector<128x128xf32>
    tpu.vector_store %arg10[%c0_42, %c0_43], %44 {strides = array<i32>} : memref<128x128xf32, #tpu.memory_space<vmem>>, vector<128x128xf32>,
    %c0_44 = arith.constant 0 : index
    %c23 = arith.constant 23 : index
    %c0_45 = arith.constant 0 : index
    %46 = vector.load %arg9[%c0_44, %c23, %c0_45] : memref<1x176x128xbf16, #tpu.memory_space<vmem>>, vector<1x128x128xbf16>
    %47 = vector.shape_cast %46 : vector<1x128x128xbf16> to vector<128x128xbf16>
    %c3 = arith.constant 3 : index
    %c0_46 = arith.constant 0 : index
    %c0_47 = arith.constant 0 : index
    %48 = vector.load %arg4[%c3, %c0_46, %c0_47] : memref<9x128x128xbf16, #tpu.memory_space<vmem>>, vector<1x128x128xbf16>
    %49 = vector.shape_cast %48 : vector<1x128x128xbf16> to vector<128x128xbf16>
    %cst_48 = arith.constant dense<0.000000e+00> : vector<128x128xf32>
    %50 = tpu.matmul %47, %49, %cst_48 {dimension_numbers = #tpu.dot_dimension_numbers<[1], [0], [0], [1], [0, 0, 1, 1], [], []>} : vector<128x128xbf16>, vector<128x128xbf16>, vector<128x128xf32> -> vector<128x128xf32>
    %c0_49 = arith.constant 0 : index
    %c0_50 = arith.constant 0 : index
    %51 = vector.load %arg10[%c0_49, %c0_50] : memref<128x128xf32, #tpu.memory_space<vmem>>, vector<128x128xf32>
    %52 = arith.addf %51, %50 : vector<128x128xf32>
    %c0_51 = arith.constant 0 : index
    %c0_52 = arith.constant 0 : index
    %53 = vector.load %arg10[%c0_51, %c0_52] : memref<128x128xf32, #tpu.memory_space<vmem>>, vector<128x128xf32>
    tpu.vector_store %arg10[%c0_51, %c0_52], %52 {strides = array<i32>} : memref<128x128xf32, #tpu.memory_space<vmem>>, vector<128x128xf32>,
    %c0_53 = arith.constant 0 : index
    %c24_54 = arith.constant 24 : index
    %c0_55 = arith.constant 0 : index
    %54 = vector.load %arg9[%c0_53, %c24_54, %c0_55] : memref<1x176x128xbf16, #tpu.memory_space<vmem>>, vector<1x128x128xbf16>
    %55 = vector.shape_cast %54 : vector<1x128x128xbf16> to vector<128x128xbf16>
    %c4 = arith.constant 4 : index
    %c0_56 = arith.constant 0 : index
    %c0_57 = arith.constant 0 : index
    %56 = vector.load %arg4[%c4, %c0_56, %c0_57] : memref<9x128x128xbf16, #tpu.memory_space<vmem>>, vector<1x128x128xbf16>
    %57 = vector.shape_cast %56 : vector<1x128x128xbf16> to vector<128x128xbf16>
    %cst_58 = arith.constant dense<0.000000e+00> : vector<128x128xf32>
    %58 = tpu.matmul %55, %57, %cst_58 {dimension_numbers = #tpu.dot_dimension_numbers<[1], [0], [0], [1], [0, 0, 1, 1], [], []>} : vector<128x128xbf16>, vector<128x128xbf16>, vector<128x128xf32> -> vector<128x128xf32>
    %c0_59 = arith.constant 0 : index
    %c0_60 = arith.constant 0 : index
    %59 = vector.load %arg10[%c0_59, %c0_60] : memref<128x128xf32, #tpu.memory_space<vmem>>, vector<128x128xf32>
    %60 = arith.addf %59, %58 : vector<128x128xf32>
    %c0_61 = arith.constant 0 : index
    %c0_62 = arith.constant 0 : index
    %61 = vector.load %arg10[%c0_61, %c0_62] : memref<128x128xf32, #tpu.memory_space<vmem>>, vector<128x128xf32>
    tpu.vector_store %arg10[%c0_61, %c0_62], %60 {strides = array<i32>} : memref<128x128xf32, #tpu.memory_space<vmem>>, vector<128x128xf32>,
    %c0_63 = arith.constant 0 : index
    %c25 = arith.constant 25 : index
    %c0_64 = arith.constant 0 : index
    %62 = vector.load %arg9[%c0_63, %c25, %c0_64] : memref<1x176x128xbf16, #tpu.memory_space<vmem>>, vector<1x128x128xbf16>
    %63 = vector.shape_cast %62 : vector<1x128x128xbf16> to vector<128x128xbf16>
    %c5 = arith.constant 5 : index
    %c0_65 = arith.constant 0 : index
    %c0_66 = arith.constant 0 : index
    %64 = vector.load %arg4[%c5, %c0_65, %c0_66] : memref<9x128x128xbf16, #tpu.memory_space<vmem>>, vector<1x128x128xbf16>
    %65 = vector.shape_cast %64 : vector<1x128x128xbf16> to vector<128x128xbf16>
    %cst_67 = arith.constant dense<0.000000e+00> : vector<128x128xf32>
    %66 = tpu.matmul %63, %65, %cst_67 {dimension_numbers = #tpu.dot_dimension_numbers<[1], [0], [0], [1], [0, 0, 1, 1], [], []>} : vector<128x128xbf16>, vector<128x128xbf16>, vector<128x128xf32> -> vector<128x128xf32>
    %c0_68 = arith.constant 0 : index
    %c0_69 = arith.constant 0 : index
    %67 = vector.load %arg10[%c0_68, %c0_69] : memref<128x128xf32, #tpu.memory_space<vmem>>, vector<128x128xf32>
    %68 = arith.addf %67, %66 : vector<128x128xf32>
    %c0_70 = arith.constant 0 : index
    %c0_71 = arith.constant 0 : index
    %69 = vector.load %arg10[%c0_70, %c0_71] : memref<128x128xf32, #tpu.memory_space<vmem>>, vector<128x128xf32>
    tpu.vector_store %arg10[%c0_70, %c0_71], %68 {strides = array<i32>} : memref<128x128xf32, #tpu.memory_space<vmem>>, vector<128x128xf32>,
    %c0_72 = arith.constant 0 : index
    %c39 = arith.constant 39 : index
    %c0_73 = arith.constant 0 : index
    %70 = vector.load %arg9[%c0_72, %c39, %c0_73] : memref<1x176x128xbf16, #tpu.memory_space<vmem>>, vector<1x128x128xbf16>
    %71 = vector.shape_cast %70 : vector<1x128x128xbf16> to vector<128x128xbf16>
    %c6 = arith.constant 6 : index
    %c0_74 = arith.constant 0 : index
    %c0_75 = arith.constant 0 : index
    %72 = vector.load %arg4[%c6, %c0_74, %c0_75] : memref<9x128x128xbf16, #tpu.memory_space<vmem>>, vector<1x128x128xbf16>
    %73 = vector.shape_cast %72 : vector<1x128x128xbf16> to vector<128x128xbf16>
    %cst_76 = arith.constant dense<0.000000e+00> : vector<128x128xf32>
    %74 = tpu.matmul %71, %73, %cst_76 {dimension_numbers = #tpu.dot_dimension_numbers<[1], [0], [0], [1], [0, 0, 1, 1], [], []>} : vector<128x128xbf16>, vector<128x128xbf16>, vector<128x128xf32> -> vector<128x128xf32>
    %c0_77 = arith.constant 0 : index
    %c0_78 = arith.constant 0 : index
    %75 = vector.load %arg10[%c0_77, %c0_78] : memref<128x128xf32, #tpu.memory_space<vmem>>, vector<128x128xf32>
    %76 = arith.addf %75, %74 : vector<128x128xf32>
    %c0_79 = arith.constant 0 : index
    %c0_80 = arith.constant 0 : index
    %77 = vector.load %arg10[%c0_79, %c0_80] : memref<128x128xf32, #tpu.memory_space<vmem>>, vector<128x128xf32>
    tpu.vector_store %arg10[%c0_79, %c0_80], %76 {strides = array<i32>} : memref<128x128xf32, #tpu.memory_space<vmem>>, vector<128x128xf32>,
    %c0_81 = arith.constant 0 : index
    %c40 = arith.constant 40 : index
    %c0_82 = arith.constant 0 : index
    %78 = vector.load %arg9[%c0_81, %c40, %c0_82] : memref<1x176x128xbf16, #tpu.memory_space<vmem>>, vector<1x128x128xbf16>
    %79 = vector.shape_cast %78 : vector<1x128x128xbf16> to vector<128x128xbf16>
    %c7_83 = arith.constant 7 : index
    %c0_84 = arith.constant 0 : index
    %c0_85 = arith.constant 0 : index
    %80 = vector.load %arg4[%c7_83, %c0_84, %c0_85] : memref<9x128x128xbf16, #tpu.memory_space<vmem>>, vector<1x128x128xbf16>
    %81 = vector.shape_cast %80 : vector<1x128x128xbf16> to vector<128x128xbf16>
    %cst_86 = arith.constant dense<0.000000e+00> : vector<128x128xf32>
    %82 = tpu.matmul %79, %81, %cst_86 {dimension_numbers = #tpu.dot_dimension_numbers<[1], [0], [0], [1], [0, 0, 1, 1], [], []>} : vector<128x128xbf16>, vector<128x128xbf16>, vector<128x128xf32> -> vector<128x128xf32>
    %c0_87 = arith.constant 0 : index
    %c0_88 = arith.constant 0 : index
    %83 = vector.load %arg10[%c0_87, %c0_88] : memref<128x128xf32, #tpu.memory_space<vmem>>, vector<128x128xf32>
    %84 = arith.addf %83, %82 : vector<128x128xf32>
    %c0_89 = arith.constant 0 : index
    %c0_90 = arith.constant 0 : index
    %85 = vector.load %arg10[%c0_89, %c0_90] : memref<128x128xf32, #tpu.memory_space<vmem>>, vector<128x128xf32>
    tpu.vector_store %arg10[%c0_89, %c0_90], %84 {strides = array<i32>} : memref<128x128xf32, #tpu.memory_space<vmem>>, vector<128x128xf32>,
    %c0_91 = arith.constant 0 : index
    %c41 = arith.constant 41 : index
    %c0_92 = arith.constant 0 : index
    %86 = vector.load %arg9[%c0_91, %c41, %c0_92] : memref<1x176x128xbf16, #tpu.memory_space<vmem>>, vector<1x128x128xbf16>
    %87 = vector.shape_cast %86 : vector<1x128x128xbf16> to vector<128x128xbf16>
    %c8_93 = arith.constant 8 : index
    %c0_94 = arith.constant 0 : index
    %c0_95 = arith.constant 0 : index
    %88 = vector.load %arg4[%c8_93, %c0_94, %c0_95] : memref<9x128x128xbf16, #tpu.memory_space<vmem>>, vector<1x128x128xbf16>
    %89 = vector.shape_cast %88 : vector<1x128x128xbf16> to vector<128x128xbf16>
    %cst_96 = arith.constant dense<0.000000e+00> : vector<128x128xf32>
    %90 = tpu.matmul %87, %89, %cst_96 {dimension_numbers = #tpu.dot_dimension_numbers<[1], [0], [0], [1], [0, 0, 1, 1], [], []>} : vector<128x128xbf16>, vector<128x128xbf16>, vector<128x128xf32> -> vector<128x128xf32>
    %c0_97 = arith.constant 0 : index
    %c0_98 = arith.constant 0 : index
    %91 = vector.load %arg10[%c0_97, %c0_98] : memref<128x128xf32, #tpu.memory_space<vmem>>, vector<128x128xf32>
    %92 = arith.addf %91, %90 : vector<128x128xf32>
    %c0_99 = arith.constant 0 : index
    %c0_100 = arith.constant 0 : index
    %93 = vector.load %arg10[%c0_99, %c0_100] : memref<128x128xf32, #tpu.memory_space<vmem>>, vector<128x128xf32>
    tpu.vector_store %arg10[%c0_99, %c0_100], %92 {strides = array<i32>} : memref<128x128xf32, #tpu.memory_space<vmem>>, vector<128x128xf32>,
    %c0_101 = arith.constant 0 : index
    %c0_102 = arith.constant 0 : index
    %94 = vector.load %arg10[%c0_101, %c0_102] : memref<128x128xf32, #tpu.memory_space<vmem>>, vector<128x128xf32>
    %c0_103 = arith.constant 0 : index
    %c0_104 = arith.constant 0 : index
    %95 = vector.load %arg5[%c0_103, %c0_104] : memref<1x128xf32, #tpu.memory_space<vmem>>, vector<1x128xf32>
    %96 = vector.broadcast %95 : vector<1x128xf32> to vector<128x128xf32>
    %97 = arith.addf %94, %96 : vector<128x128xf32>
    %cst_105 = arith.constant 0.000000e+00 : f32
    %98 = vector.broadcast %cst_105 : f32 to vector<128x128xf32>
    %99 = arith.maximumf %97, %98 : vector<128x128xf32>
    %100 = arith.truncf %99 : vector<128x128xf32> to vector<128x128xbf16>
    %c0_106 = arith.constant 0 : index
    %c0_107 = arith.constant 0 : index
    %101 = vector.load %arg6[%c0_106, %c0_107] : memref<128x128xbf16, #tpu.memory_space<vmem>>, vector<128x128xbf16>
    %cst_108 = arith.constant dense<0.000000e+00> : vector<128x128xf32>
    %102 = tpu.matmul %100, %101, %cst_108 {dimension_numbers = #tpu.dot_dimension_numbers<[1], [0], [0], [1], [0, 0, 1, 1], [], []>} : vector<128x128xbf16>, vector<128x128xbf16>, vector<128x128xf32> -> vector<128x128xf32>
    %c0_109 = arith.constant 0 : index
    %c0_110 = arith.constant 0 : index
    %103 = vector.load %arg7[%c0_109, %c0_110] : memref<1x128xf32, #tpu.memory_space<vmem>>, vector<1x128xf32>
    %104 = vector.broadcast %103 : vector<1x128xf32> to vector<128x128xf32>
    %105 = arith.addf %102, %104 : vector<128x128xf32>
    %106 = arith.extf %1 : vector<128x128xbf16> to vector<128x128xf32>
    %107 = arith.addf %105, %106 : vector<128x128xf32>
    %cst_111 = arith.constant 0.000000e+00 : f32
    %108 = vector.broadcast %cst_111 : f32 to vector<128x128xf32>
    %109 = arith.maximumf %107, %108 : vector<128x128xf32>
    %110 = arith.truncf %109 : vector<128x128xf32> to vector<128x128xbf16>
    %111 = vector.shape_cast %110 : vector<128x128xbf16> to vector<1x8x16x128xbf16>
    %c0_112 = arith.constant 0 : index
    %c0_113 = arith.constant 0 : index
    %c0_114 = arith.constant 0 : index
    %c0_115 = arith.constant 0 : index
    %112 = vector.load %arg8[%c0_112, %c0_113, %c0_114, %c0_115] : memref<1x8x16x128xbf16, #tpu.memory_space<vmem>>, vector<1x8x16x128xbf16>
    tpu.vector_store %arg8[%c0_112, %c0_113, %c0_114, %c0_115], %111 {strides = array<i32>} : memref<1x8x16x128xbf16, #tpu.memory_space<vmem>>, vector<1x8x16x128xbf16>,
    return
  }
  func.func @transform_0(%arg0: i32) -> (i32, i32, i32, i32) {
    %c0_i32 = arith.constant 0 : i32
    %c0_i32_0 = arith.constant 0 : i32
    %c0_i32_1 = arith.constant 0 : i32
    %c0_i32_2 = arith.constant 0 : i32
    return %arg0, %c0_i32, %c0_i32_0, %c0_i32_1 : i32, i32, i32, i32
  }
  func.func @transform_1(%arg0: i32) -> (i32, i32) {
    %c0_i32 = arith.constant 0 : i32
    %c0_i32_0 = arith.constant 0 : i32
    %c0_i32_1 = arith.constant 0 : i32
    return %c0_i32, %c0_i32_0 : i32, i32
  }
  func.func @transform_2(%arg0: i32) -> (i32, i32) {
    %c0_i32 = arith.constant 0 : i32
    %c0_i32_0 = arith.constant 0 : i32
    %c0_i32_1 = arith.constant 0 : i32
    return %c0_i32, %c0_i32_0 : i32, i32
  }
  func.func @transform_3(%arg0: i32) -> (i32, i32, i32) {
    %c0_i32 = arith.constant 0 : i32
    %c0_i32_0 = arith.constant 0 : i32
    %c0_i32_1 = arith.constant 0 : i32
    %c0_i32_2 = arith.constant 0 : i32
    return %c0_i32, %c0_i32_0, %c0_i32_1 : i32, i32, i32
  }
  func.func @transform_4(%arg0: i32) -> (i32, i32) {
    %c0_i32 = arith.constant 0 : i32
    %c0_i32_0 = arith.constant 0 : i32
    %c0_i32_1 = arith.constant 0 : i32
    return %c0_i32, %c0_i32_0 : i32, i32
  }
  func.func @transform_5(%arg0: i32) -> (i32, i32) {
    %c0_i32 = arith.constant 0 : i32
    %c0_i32_0 = arith.constant 0 : i32
    %c0_i32_1 = arith.constant 0 : i32
    return %c0_i32, %c0_i32_0 : i32, i32
  }
  func.func @transform_6(%arg0: i32) -> (i32, i32) {
    %c0_i32 = arith.constant 0 : i32
    %c0_i32_0 = arith.constant 0 : i32
    %c0_i32_1 = arith.constant 0 : i32
    return %c0_i32, %c0_i32_0 : i32, i32
  }
  func.func @transform_7(%arg0: i32) -> (i32, i32, i32, i32) {
    %c0_i32 = arith.constant 0 : i32
    %c0_i32_0 = arith.constant 0 : i32
    %c0_i32_1 = arith.constant 0 : i32
    %c0_i32_2 = arith.constant 0 : i32
    return %arg0, %c0_i32, %c0_i32_0, %c0_i32_1 : i32, i32, i32, i32
  }
}

module attributes {stable_mosaic.version = 11 : i64} {
  func.func @_bottleneck_kernel(%arg0: i32, %arg1: memref<1x8x16x128xbf16, #tpu.memory_space<vmem>>, %arg2: memref<128x128xbf16, #tpu.memory_space<vmem>>, %arg3: memref<1x128xf32, #tpu.memory_space<vmem>>, %arg4: memref<9x128x128xbf16, #tpu.memory_space<vmem>>, %arg5: memref<1x128xf32, #tpu.memory_space<vmem>>, %arg6: memref<128x128xbf16, #tpu.memory_space<vmem>>, %arg7: memref<1x128xf32, #tpu.memory_space<vmem>>, %arg8: memref<128x128xbf16, #tpu.memory_space<vmem>>, %arg9: memref<1x128xf32, #tpu.memory_space<vmem>>, %arg10: memref<1x8x16x128xbf16, #tpu.memory_space<vmem>>, %arg11: memref<1x176x128xbf16, #tpu.memory_space<vmem>>, %arg12: memref<128x128xf32, #tpu.memory_space<vmem>>) attributes {dimension_semantics = [#tpu.dimension_semantics<parallel>], iteration_bounds = array<i64: 2>, scalar_prefetch = 0 : i64, scratch_operands = 2 : i64, tpu.core_type = #tpu.core_type<tc>, window_params = [{transform_indices = @transform_0, window_bounds = array<i64: 1, 8, 16, 128>}, {pipeline_mode = #tpu.pipeline_mode<synchronous>, transform_indices = @transform_1, window_bounds = array<i64: 128, 128>}, {pipeline_mode = #tpu.pipeline_mode<synchronous>, transform_indices = @transform_2, window_bounds = array<i64: 1, 128>}, {pipeline_mode = #tpu.pipeline_mode<synchronous>, transform_indices = @transform_3, window_bounds = array<i64: 9, 128, 128>}, {pipeline_mode = #tpu.pipeline_mode<synchronous>, transform_indices = @transform_4, window_bounds = array<i64: 1, 128>}, {pipeline_mode = #tpu.pipeline_mode<synchronous>, transform_indices = @transform_5, window_bounds = array<i64: 128, 128>}, {pipeline_mode = #tpu.pipeline_mode<synchronous>, transform_indices = @transform_6, window_bounds = array<i64: 1, 128>}, {pipeline_mode = #tpu.pipeline_mode<synchronous>, transform_indices = @transform_7, window_bounds = array<i64: 128, 128>}, {pipeline_mode = #tpu.pipeline_mode<synchronous>, transform_indices = @transform_8, window_bounds = array<i64: 1, 128>}, {transform_indices = @transform_9, window_bounds = array<i64: 1, 8, 16, 128>}]} {
    %c0 = arith.constant 0 : index
    %c0_0 = arith.constant 0 : index
    %c0_1 = arith.constant 0 : index
    %c0_2 = arith.constant 0 : index
    %0 = vector.load %arg1[%c0, %c0_0, %c0_1, %c0_2] : memref<1x8x16x128xbf16, #tpu.memory_space<vmem>>, vector<1x8x16x128xbf16>
    %1 = vector.shape_cast %0 : vector<1x8x16x128xbf16> to vector<128x128xbf16>
    %c0_3 = arith.constant 0 : index
    %c0_4 = arith.constant 0 : index
    %2 = vector.load %arg2[%c0_3, %c0_4] : memref<128x128xbf16, #tpu.memory_space<vmem>>, vector<128x128xbf16>
    %cst = arith.constant dense<0.000000e+00> : vector<128x128xf32>
    %3 = tpu.matmul %1, %2, %cst {dimension_numbers = #tpu.dot_dimension_numbers<[1], [0], [0], [1], [0, 0, 1, 1], [], []>} : vector<128x128xbf16>, vector<128x128xbf16>, vector<128x128xf32> -> vector<128x128xf32>
    %c0_5 = arith.constant 0 : index
    %c0_6 = arith.constant 0 : index
    %4 = vector.load %arg3[%c0_5, %c0_6] : memref<1x128xf32, #tpu.memory_space<vmem>>, vector<1x128xf32>
    %5 = vector.broadcast %4 : vector<1x128xf32> to vector<128x128xf32>
    %6 = arith.addf %3, %5 : vector<128x128xf32>
    %cst_7 = arith.constant 0.000000e+00 : f32
    %7 = vector.broadcast %cst_7 : f32 to vector<128x128xf32>
    %8 = arith.maximumf %6, %7 : vector<128x128xf32>
    %9 = tpu.iota {dimensions = array<i32: 0>} : vector<16x128xi32>
    %c8_i32 = arith.constant 8 : i32
    %10 = vector.broadcast %c8_i32 : i32 to vector<16x128xi32>
    %11 = arith.cmpi slt, %9, %10 : vector<16x128xi32>
    %12 = vector.shape_cast %8 : vector<128x128xf32> to vector<1x8x16x128xf32>
    %cst_8 = arith.constant 0.000000e+00 : f32
    %13 = vector.shape_cast %11 : vector<16x128xi1> to vector<1x1x16x128xi1>
    %14 = vector.broadcast %13 : vector<1x1x16x128xi1> to vector<1x8x16x128xi1>
    %15 = vector.broadcast %cst_8 : f32 to vector<1x8x16x128xf32>
    %16 = arith.select %14, %12, %15 : vector<1x8x16x128xi1>, vector<1x8x16x128xf32>
    %17 = arith.truncf %16 : vector<1x8x16x128xf32> to vector<1x8x16x128xbf16>
    %cst_9 = arith.constant 0.000000e+00 : bf16
    %18 = vector.broadcast %cst_9 : bf16 to vector<1x24x128xbf16>
    %c0_10 = arith.constant 0 : index
    %c0_11 = arith.constant 0 : index
    %c0_12 = arith.constant 0 : index
    %19 = vector.load %arg11[%c0_10, %c0_11, %c0_12] : memref<1x176x128xbf16, #tpu.memory_space<vmem>>, vector<1x24x128xbf16>
    tpu.vector_store %arg11[%c0_10, %c0_11, %c0_12], %18 {strides = array<i32>} : memref<1x176x128xbf16, #tpu.memory_space<vmem>>, vector<1x24x128xbf16>,
    %cst_13 = arith.constant 0.000000e+00 : bf16
    %20 = vector.broadcast %cst_13 : bf16 to vector<1x24x128xbf16>
    %c0_14 = arith.constant 0 : index
    %c152 = arith.constant 152 : index
    %c0_15 = arith.constant 0 : index
    %21 = vector.load %arg11[%c0_14, %c152, %c0_15] : memref<1x176x128xbf16, #tpu.memory_space<vmem>>, vector<1x24x128xbf16>
    tpu.vector_store %arg11[%c0_14, %c152, %c0_15], %20 {strides = array<i32>} : memref<1x176x128xbf16, #tpu.memory_space<vmem>>, vector<1x24x128xbf16>,
    %22 = vector.shape_cast %17 : vector<1x8x16x128xbf16> to vector<1x128x128xbf16>
    %c0_16 = arith.constant 0 : index
    %c24 = arith.constant 24 : index
    %c0_17 = arith.constant 0 : index
    %23 = vector.load %arg11[%c0_16, %c24, %c0_17] : memref<1x176x128xbf16, #tpu.memory_space<vmem>>, vector<1x128x128xbf16>
    tpu.vector_store %arg11[%c0_16, %c24, %c0_17], %22 {strides = array<i32>} : memref<1x176x128xbf16, #tpu.memory_space<vmem>>, vector<1x128x128xbf16>,
    %c0_18 = arith.constant 0 : index
    %c7 = arith.constant 7 : index
    %c0_19 = arith.constant 0 : index
    %24 = vector.load %arg11[%c0_18, %c7, %c0_19] : memref<1x176x128xbf16, #tpu.memory_space<vmem>>, vector<1x128x128xbf16>
    %25 = vector.shape_cast %24 : vector<1x128x128xbf16> to vector<128x128xbf16>
    %c0_20 = arith.constant 0 : index
    %c0_21 = arith.constant 0 : index
    %c0_22 = arith.constant 0 : index
    %26 = vector.load %arg4[%c0_20, %c0_21, %c0_22] : memref<9x128x128xbf16, #tpu.memory_space<vmem>>, vector<1x128x128xbf16>
    %27 = vector.shape_cast %26 : vector<1x128x128xbf16> to vector<128x128xbf16>
    %cst_23 = arith.constant dense<0.000000e+00> : vector<128x128xf32>
    %28 = tpu.matmul %25, %27, %cst_23 {dimension_numbers = #tpu.dot_dimension_numbers<[1], [0], [0], [1], [0, 0, 1, 1], [], []>} : vector<128x128xbf16>, vector<128x128xbf16>, vector<128x128xf32> -> vector<128x128xf32>
    %c0_24 = arith.constant 0 : index
    %c0_25 = arith.constant 0 : index
    %29 = vector.load %arg12[%c0_24, %c0_25] : memref<128x128xf32, #tpu.memory_space<vmem>>, vector<128x128xf32>
    tpu.vector_store %arg12[%c0_24, %c0_25], %28 {strides = array<i32>} : memref<128x128xf32, #tpu.memory_space<vmem>>, vector<128x128xf32>,
    %c0_26 = arith.constant 0 : index
    %c8 = arith.constant 8 : index
    %c0_27 = arith.constant 0 : index
    %30 = vector.load %arg11[%c0_26, %c8, %c0_27] : memref<1x176x128xbf16, #tpu.memory_space<vmem>>, vector<1x128x128xbf16>
    %31 = vector.shape_cast %30 : vector<1x128x128xbf16> to vector<128x128xbf16>
    %c1 = arith.constant 1 : index
    %c0_28 = arith.constant 0 : index
    %c0_29 = arith.constant 0 : index
    %32 = vector.load %arg4[%c1, %c0_28, %c0_29] : memref<9x128x128xbf16, #tpu.memory_space<vmem>>, vector<1x128x128xbf16>
    %33 = vector.shape_cast %32 : vector<1x128x128xbf16> to vector<128x128xbf16>
    %cst_30 = arith.constant dense<0.000000e+00> : vector<128x128xf32>
    %34 = tpu.matmul %31, %33, %cst_30 {dimension_numbers = #tpu.dot_dimension_numbers<[1], [0], [0], [1], [0, 0, 1, 1], [], []>} : vector<128x128xbf16>, vector<128x128xbf16>, vector<128x128xf32> -> vector<128x128xf32>
    %c0_31 = arith.constant 0 : index
    %c0_32 = arith.constant 0 : index
    %35 = vector.load %arg12[%c0_31, %c0_32] : memref<128x128xf32, #tpu.memory_space<vmem>>, vector<128x128xf32>
    %36 = arith.addf %35, %34 : vector<128x128xf32>
    %c0_33 = arith.constant 0 : index
    %c0_34 = arith.constant 0 : index
    %37 = vector.load %arg12[%c0_33, %c0_34] : memref<128x128xf32, #tpu.memory_space<vmem>>, vector<128x128xf32>
    tpu.vector_store %arg12[%c0_33, %c0_34], %36 {strides = array<i32>} : memref<128x128xf32, #tpu.memory_space<vmem>>, vector<128x128xf32>,
    %c0_35 = arith.constant 0 : index
    %c9 = arith.constant 9 : index
    %c0_36 = arith.constant 0 : index
    %38 = vector.load %arg11[%c0_35, %c9, %c0_36] : memref<1x176x128xbf16, #tpu.memory_space<vmem>>, vector<1x128x128xbf16>
    %39 = vector.shape_cast %38 : vector<1x128x128xbf16> to vector<128x128xbf16>
    %c2 = arith.constant 2 : index
    %c0_37 = arith.constant 0 : index
    %c0_38 = arith.constant 0 : index
    %40 = vector.load %arg4[%c2, %c0_37, %c0_38] : memref<9x128x128xbf16, #tpu.memory_space<vmem>>, vector<1x128x128xbf16>
    %41 = vector.shape_cast %40 : vector<1x128x128xbf16> to vector<128x128xbf16>
    %cst_39 = arith.constant dense<0.000000e+00> : vector<128x128xf32>
    %42 = tpu.matmul %39, %41, %cst_39 {dimension_numbers = #tpu.dot_dimension_numbers<[1], [0], [0], [1], [0, 0, 1, 1], [], []>} : vector<128x128xbf16>, vector<128x128xbf16>, vector<128x128xf32> -> vector<128x128xf32>
    %c0_40 = arith.constant 0 : index
    %c0_41 = arith.constant 0 : index
    %43 = vector.load %arg12[%c0_40, %c0_41] : memref<128x128xf32, #tpu.memory_space<vmem>>, vector<128x128xf32>
    %44 = arith.addf %43, %42 : vector<128x128xf32>
    %c0_42 = arith.constant 0 : index
    %c0_43 = arith.constant 0 : index
    %45 = vector.load %arg12[%c0_42, %c0_43] : memref<128x128xf32, #tpu.memory_space<vmem>>, vector<128x128xf32>
    tpu.vector_store %arg12[%c0_42, %c0_43], %44 {strides = array<i32>} : memref<128x128xf32, #tpu.memory_space<vmem>>, vector<128x128xf32>,
    %c0_44 = arith.constant 0 : index
    %c23 = arith.constant 23 : index
    %c0_45 = arith.constant 0 : index
    %46 = vector.load %arg11[%c0_44, %c23, %c0_45] : memref<1x176x128xbf16, #tpu.memory_space<vmem>>, vector<1x128x128xbf16>
    %47 = vector.shape_cast %46 : vector<1x128x128xbf16> to vector<128x128xbf16>
    %c3 = arith.constant 3 : index
    %c0_46 = arith.constant 0 : index
    %c0_47 = arith.constant 0 : index
    %48 = vector.load %arg4[%c3, %c0_46, %c0_47] : memref<9x128x128xbf16, #tpu.memory_space<vmem>>, vector<1x128x128xbf16>
    %49 = vector.shape_cast %48 : vector<1x128x128xbf16> to vector<128x128xbf16>
    %cst_48 = arith.constant dense<0.000000e+00> : vector<128x128xf32>
    %50 = tpu.matmul %47, %49, %cst_48 {dimension_numbers = #tpu.dot_dimension_numbers<[1], [0], [0], [1], [0, 0, 1, 1], [], []>} : vector<128x128xbf16>, vector<128x128xbf16>, vector<128x128xf32> -> vector<128x128xf32>
    %c0_49 = arith.constant 0 : index
    %c0_50 = arith.constant 0 : index
    %51 = vector.load %arg12[%c0_49, %c0_50] : memref<128x128xf32, #tpu.memory_space<vmem>>, vector<128x128xf32>
    %52 = arith.addf %51, %50 : vector<128x128xf32>
    %c0_51 = arith.constant 0 : index
    %c0_52 = arith.constant 0 : index
    %53 = vector.load %arg12[%c0_51, %c0_52] : memref<128x128xf32, #tpu.memory_space<vmem>>, vector<128x128xf32>
    tpu.vector_store %arg12[%c0_51, %c0_52], %52 {strides = array<i32>} : memref<128x128xf32, #tpu.memory_space<vmem>>, vector<128x128xf32>,
    %c0_53 = arith.constant 0 : index
    %c24_54 = arith.constant 24 : index
    %c0_55 = arith.constant 0 : index
    %54 = vector.load %arg11[%c0_53, %c24_54, %c0_55] : memref<1x176x128xbf16, #tpu.memory_space<vmem>>, vector<1x128x128xbf16>
    %55 = vector.shape_cast %54 : vector<1x128x128xbf16> to vector<128x128xbf16>
    %c4 = arith.constant 4 : index
    %c0_56 = arith.constant 0 : index
    %c0_57 = arith.constant 0 : index
    %56 = vector.load %arg4[%c4, %c0_56, %c0_57] : memref<9x128x128xbf16, #tpu.memory_space<vmem>>, vector<1x128x128xbf16>
    %57 = vector.shape_cast %56 : vector<1x128x128xbf16> to vector<128x128xbf16>
    %cst_58 = arith.constant dense<0.000000e+00> : vector<128x128xf32>
    %58 = tpu.matmul %55, %57, %cst_58 {dimension_numbers = #tpu.dot_dimension_numbers<[1], [0], [0], [1], [0, 0, 1, 1], [], []>} : vector<128x128xbf16>, vector<128x128xbf16>, vector<128x128xf32> -> vector<128x128xf32>
    %c0_59 = arith.constant 0 : index
    %c0_60 = arith.constant 0 : index
    %59 = vector.load %arg12[%c0_59, %c0_60] : memref<128x128xf32, #tpu.memory_space<vmem>>, vector<128x128xf32>
    %60 = arith.addf %59, %58 : vector<128x128xf32>
    %c0_61 = arith.constant 0 : index
    %c0_62 = arith.constant 0 : index
    %61 = vector.load %arg12[%c0_61, %c0_62] : memref<128x128xf32, #tpu.memory_space<vmem>>, vector<128x128xf32>
    tpu.vector_store %arg12[%c0_61, %c0_62], %60 {strides = array<i32>} : memref<128x128xf32, #tpu.memory_space<vmem>>, vector<128x128xf32>,
    %c0_63 = arith.constant 0 : index
    %c25 = arith.constant 25 : index
    %c0_64 = arith.constant 0 : index
    %62 = vector.load %arg11[%c0_63, %c25, %c0_64] : memref<1x176x128xbf16, #tpu.memory_space<vmem>>, vector<1x128x128xbf16>
    %63 = vector.shape_cast %62 : vector<1x128x128xbf16> to vector<128x128xbf16>
    %c5 = arith.constant 5 : index
    %c0_65 = arith.constant 0 : index
    %c0_66 = arith.constant 0 : index
    %64 = vector.load %arg4[%c5, %c0_65, %c0_66] : memref<9x128x128xbf16, #tpu.memory_space<vmem>>, vector<1x128x128xbf16>
    %65 = vector.shape_cast %64 : vector<1x128x128xbf16> to vector<128x128xbf16>
    %cst_67 = arith.constant dense<0.000000e+00> : vector<128x128xf32>
    %66 = tpu.matmul %63, %65, %cst_67 {dimension_numbers = #tpu.dot_dimension_numbers<[1], [0], [0], [1], [0, 0, 1, 1], [], []>} : vector<128x128xbf16>, vector<128x128xbf16>, vector<128x128xf32> -> vector<128x128xf32>
    %c0_68 = arith.constant 0 : index
    %c0_69 = arith.constant 0 : index
    %67 = vector.load %arg12[%c0_68, %c0_69] : memref<128x128xf32, #tpu.memory_space<vmem>>, vector<128x128xf32>
    %68 = arith.addf %67, %66 : vector<128x128xf32>
    %c0_70 = arith.constant 0 : index
    %c0_71 = arith.constant 0 : index
    %69 = vector.load %arg12[%c0_70, %c0_71] : memref<128x128xf32, #tpu.memory_space<vmem>>, vector<128x128xf32>
    tpu.vector_store %arg12[%c0_70, %c0_71], %68 {strides = array<i32>} : memref<128x128xf32, #tpu.memory_space<vmem>>, vector<128x128xf32>,
    %c0_72 = arith.constant 0 : index
    %c39 = arith.constant 39 : index
    %c0_73 = arith.constant 0 : index
    %70 = vector.load %arg11[%c0_72, %c39, %c0_73] : memref<1x176x128xbf16, #tpu.memory_space<vmem>>, vector<1x128x128xbf16>
    %71 = vector.shape_cast %70 : vector<1x128x128xbf16> to vector<128x128xbf16>
    %c6 = arith.constant 6 : index
    %c0_74 = arith.constant 0 : index
    %c0_75 = arith.constant 0 : index
    %72 = vector.load %arg4[%c6, %c0_74, %c0_75] : memref<9x128x128xbf16, #tpu.memory_space<vmem>>, vector<1x128x128xbf16>
    %73 = vector.shape_cast %72 : vector<1x128x128xbf16> to vector<128x128xbf16>
    %cst_76 = arith.constant dense<0.000000e+00> : vector<128x128xf32>
    %74 = tpu.matmul %71, %73, %cst_76 {dimension_numbers = #tpu.dot_dimension_numbers<[1], [0], [0], [1], [0, 0, 1, 1], [], []>} : vector<128x128xbf16>, vector<128x128xbf16>, vector<128x128xf32> -> vector<128x128xf32>
    %c0_77 = arith.constant 0 : index
    %c0_78 = arith.constant 0 : index
    %75 = vector.load %arg12[%c0_77, %c0_78] : memref<128x128xf32, #tpu.memory_space<vmem>>, vector<128x128xf32>
    %76 = arith.addf %75, %74 : vector<128x128xf32>
    %c0_79 = arith.constant 0 : index
    %c0_80 = arith.constant 0 : index
    %77 = vector.load %arg12[%c0_79, %c0_80] : memref<128x128xf32, #tpu.memory_space<vmem>>, vector<128x128xf32>
    tpu.vector_store %arg12[%c0_79, %c0_80], %76 {strides = array<i32>} : memref<128x128xf32, #tpu.memory_space<vmem>>, vector<128x128xf32>,
    %c0_81 = arith.constant 0 : index
    %c40 = arith.constant 40 : index
    %c0_82 = arith.constant 0 : index
    %78 = vector.load %arg11[%c0_81, %c40, %c0_82] : memref<1x176x128xbf16, #tpu.memory_space<vmem>>, vector<1x128x128xbf16>
    %79 = vector.shape_cast %78 : vector<1x128x128xbf16> to vector<128x128xbf16>
    %c7_83 = arith.constant 7 : index
    %c0_84 = arith.constant 0 : index
    %c0_85 = arith.constant 0 : index
    %80 = vector.load %arg4[%c7_83, %c0_84, %c0_85] : memref<9x128x128xbf16, #tpu.memory_space<vmem>>, vector<1x128x128xbf16>
    %81 = vector.shape_cast %80 : vector<1x128x128xbf16> to vector<128x128xbf16>
    %cst_86 = arith.constant dense<0.000000e+00> : vector<128x128xf32>
    %82 = tpu.matmul %79, %81, %cst_86 {dimension_numbers = #tpu.dot_dimension_numbers<[1], [0], [0], [1], [0, 0, 1, 1], [], []>} : vector<128x128xbf16>, vector<128x128xbf16>, vector<128x128xf32> -> vector<128x128xf32>
    %c0_87 = arith.constant 0 : index
    %c0_88 = arith.constant 0 : index
    %83 = vector.load %arg12[%c0_87, %c0_88] : memref<128x128xf32, #tpu.memory_space<vmem>>, vector<128x128xf32>
    %84 = arith.addf %83, %82 : vector<128x128xf32>
    %c0_89 = arith.constant 0 : index
    %c0_90 = arith.constant 0 : index
    %85 = vector.load %arg12[%c0_89, %c0_90] : memref<128x128xf32, #tpu.memory_space<vmem>>, vector<128x128xf32>
    tpu.vector_store %arg12[%c0_89, %c0_90], %84 {strides = array<i32>} : memref<128x128xf32, #tpu.memory_space<vmem>>, vector<128x128xf32>,
    %c0_91 = arith.constant 0 : index
    %c41 = arith.constant 41 : index
    %c0_92 = arith.constant 0 : index
    %86 = vector.load %arg11[%c0_91, %c41, %c0_92] : memref<1x176x128xbf16, #tpu.memory_space<vmem>>, vector<1x128x128xbf16>
    %87 = vector.shape_cast %86 : vector<1x128x128xbf16> to vector<128x128xbf16>
    %c8_93 = arith.constant 8 : index
    %c0_94 = arith.constant 0 : index
    %c0_95 = arith.constant 0 : index
    %88 = vector.load %arg4[%c8_93, %c0_94, %c0_95] : memref<9x128x128xbf16, #tpu.memory_space<vmem>>, vector<1x128x128xbf16>
    %89 = vector.shape_cast %88 : vector<1x128x128xbf16> to vector<128x128xbf16>
    %cst_96 = arith.constant dense<0.000000e+00> : vector<128x128xf32>
    %90 = tpu.matmul %87, %89, %cst_96 {dimension_numbers = #tpu.dot_dimension_numbers<[1], [0], [0], [1], [0, 0, 1, 1], [], []>} : vector<128x128xbf16>, vector<128x128xbf16>, vector<128x128xf32> -> vector<128x128xf32>
    %c0_97 = arith.constant 0 : index
    %c0_98 = arith.constant 0 : index
    %91 = vector.load %arg12[%c0_97, %c0_98] : memref<128x128xf32, #tpu.memory_space<vmem>>, vector<128x128xf32>
    %92 = arith.addf %91, %90 : vector<128x128xf32>
    %c0_99 = arith.constant 0 : index
    %c0_100 = arith.constant 0 : index
    %93 = vector.load %arg12[%c0_99, %c0_100] : memref<128x128xf32, #tpu.memory_space<vmem>>, vector<128x128xf32>
    tpu.vector_store %arg12[%c0_99, %c0_100], %92 {strides = array<i32>} : memref<128x128xf32, #tpu.memory_space<vmem>>, vector<128x128xf32>,
    %c0_101 = arith.constant 0 : index
    %c0_102 = arith.constant 0 : index
    %94 = vector.load %arg12[%c0_101, %c0_102] : memref<128x128xf32, #tpu.memory_space<vmem>>, vector<128x128xf32>
    %c0_103 = arith.constant 0 : index
    %c0_104 = arith.constant 0 : index
    %95 = vector.load %arg5[%c0_103, %c0_104] : memref<1x128xf32, #tpu.memory_space<vmem>>, vector<1x128xf32>
    %96 = vector.broadcast %95 : vector<1x128xf32> to vector<128x128xf32>
    %97 = arith.addf %94, %96 : vector<128x128xf32>
    %cst_105 = arith.constant 0.000000e+00 : f32
    %98 = vector.broadcast %cst_105 : f32 to vector<128x128xf32>
    %99 = arith.maximumf %97, %98 : vector<128x128xf32>
    %100 = arith.truncf %99 : vector<128x128xf32> to vector<128x128xbf16>
    %c0_106 = arith.constant 0 : index
    %c0_107 = arith.constant 0 : index
    %101 = vector.load %arg6[%c0_106, %c0_107] : memref<128x128xbf16, #tpu.memory_space<vmem>>, vector<128x128xbf16>
    %cst_108 = arith.constant dense<0.000000e+00> : vector<128x128xf32>
    %102 = tpu.matmul %100, %101, %cst_108 {dimension_numbers = #tpu.dot_dimension_numbers<[1], [0], [0], [1], [0, 0, 1, 1], [], []>} : vector<128x128xbf16>, vector<128x128xbf16>, vector<128x128xf32> -> vector<128x128xf32>
    %c0_109 = arith.constant 0 : index
    %c0_110 = arith.constant 0 : index
    %103 = vector.load %arg7[%c0_109, %c0_110] : memref<1x128xf32, #tpu.memory_space<vmem>>, vector<1x128xf32>
    %104 = vector.broadcast %103 : vector<1x128xf32> to vector<128x128xf32>
    %105 = arith.addf %102, %104 : vector<128x128xf32>
    %c0_111 = arith.constant 0 : index
    %c0_112 = arith.constant 0 : index
    %106 = vector.load %arg8[%c0_111, %c0_112] : memref<128x128xbf16, #tpu.memory_space<vmem>>, vector<128x128xbf16>
    %cst_113 = arith.constant dense<0.000000e+00> : vector<128x128xf32>
    %107 = tpu.matmul %1, %106, %cst_113 {dimension_numbers = #tpu.dot_dimension_numbers<[1], [0], [0], [1], [0, 0, 1, 1], [], []>} : vector<128x128xbf16>, vector<128x128xbf16>, vector<128x128xf32> -> vector<128x128xf32>
    %108 = arith.addf %105, %107 : vector<128x128xf32>
    %c0_114 = arith.constant 0 : index
    %c0_115 = arith.constant 0 : index
    %109 = vector.load %arg9[%c0_114, %c0_115] : memref<1x128xf32, #tpu.memory_space<vmem>>, vector<1x128xf32>
    %110 = vector.broadcast %109 : vector<1x128xf32> to vector<128x128xf32>
    %111 = arith.addf %108, %110 : vector<128x128xf32>
    %cst_116 = arith.constant 0.000000e+00 : f32
    %112 = vector.broadcast %cst_116 : f32 to vector<128x128xf32>
    %113 = arith.maximumf %111, %112 : vector<128x128xf32>
    %114 = arith.truncf %113 : vector<128x128xf32> to vector<128x128xbf16>
    %115 = vector.shape_cast %114 : vector<128x128xbf16> to vector<1x8x16x128xbf16>
    %c0_117 = arith.constant 0 : index
    %c0_118 = arith.constant 0 : index
    %c0_119 = arith.constant 0 : index
    %c0_120 = arith.constant 0 : index
    %116 = vector.load %arg10[%c0_117, %c0_118, %c0_119, %c0_120] : memref<1x8x16x128xbf16, #tpu.memory_space<vmem>>, vector<1x8x16x128xbf16>
    tpu.vector_store %arg10[%c0_117, %c0_118, %c0_119, %c0_120], %115 {strides = array<i32>} : memref<1x8x16x128xbf16, #tpu.memory_space<vmem>>, vector<1x8x16x128xbf16>,
    return
  }
  func.func @transform_0(%arg0: i32) -> (i32, i32, i32, i32) {
    %c0_i32 = arith.constant 0 : i32
    %c0_i32_0 = arith.constant 0 : i32
    %c0_i32_1 = arith.constant 0 : i32
    %c0_i32_2 = arith.constant 0 : i32
    return %arg0, %c0_i32, %c0_i32_0, %c0_i32_1 : i32, i32, i32, i32
  }
  func.func @transform_1(%arg0: i32) -> (i32, i32) {
    %c0_i32 = arith.constant 0 : i32
    %c0_i32_0 = arith.constant 0 : i32
    %c0_i32_1 = arith.constant 0 : i32
    return %c0_i32, %c0_i32_0 : i32, i32
  }
  func.func @transform_2(%arg0: i32) -> (i32, i32) {
    %c0_i32 = arith.constant 0 : i32
    %c0_i32_0 = arith.constant 0 : i32
    %c0_i32_1 = arith.constant 0 : i32
    return %c0_i32, %c0_i32_0 : i32, i32
  }
  func.func @transform_3(%arg0: i32) -> (i32, i32, i32) {
    %c0_i32 = arith.constant 0 : i32
    %c0_i32_0 = arith.constant 0 : i32
    %c0_i32_1 = arith.constant 0 : i32
    %c0_i32_2 = arith.constant 0 : i32
    return %c0_i32, %c0_i32_0, %c0_i32_1 : i32, i32, i32
  }
  func.func @transform_4(%arg0: i32) -> (i32, i32) {
    %c0_i32 = arith.constant 0 : i32
    %c0_i32_0 = arith.constant 0 : i32
    %c0_i32_1 = arith.constant 0 : i32
    return %c0_i32, %c0_i32_0 : i32, i32
  }
  func.func @transform_5(%arg0: i32) -> (i32, i32) {
    %c0_i32 = arith.constant 0 : i32
    %c0_i32_0 = arith.constant 0 : i32
    %c0_i32_1 = arith.constant 0 : i32
    return %c0_i32, %c0_i32_0 : i32, i32
  }
  func.func @transform_6(%arg0: i32) -> (i32, i32) {
    %c0_i32 = arith.constant 0 : i32
    %c0_i32_0 = arith.constant 0 : i32
    %c0_i32_1 = arith.constant 0 : i32
    return %c0_i32, %c0_i32_0 : i32, i32
  }
  func.func @transform_7(%arg0: i32) -> (i32, i32) {
    %c0_i32 = arith.constant 0 : i32
    %c0_i32_0 = arith.constant 0 : i32
    %c0_i32_1 = arith.constant 0 : i32
    return %c0_i32, %c0_i32_0 : i32, i32
  }
  func.func @transform_8(%arg0: i32) -> (i32, i32) {
    %c0_i32 = arith.constant 0 : i32
    %c0_i32_0 = arith.constant 0 : i32
    %c0_i32_1 = arith.constant 0 : i32
    return %c0_i32, %c0_i32_0 : i32, i32
  }
  func.func @transform_9(%arg0: i32) -> (i32, i32, i32, i32) {
    %c0_i32 = arith.constant 0 : i32
    %c0_i32_0 = arith.constant 0 : i32
    %c0_i32_1 = arith.constant 0 : i32
    %c0_i32_2 = arith.constant 0 : i32
    return %arg0, %c0_i32, %c0_i32_0, %c0_i32_1 : i32, i32, i32, i32
  }
}

module attributes {stable_mosaic.version = 11 : i64} {
  func.func @_deconv_logits_kernel(%arg0: i32, %arg1: memref<1x8x16x128xbf16, #tpu.memory_space<vmem>>, %arg2: memref<128x512xbf16, #tpu.memory_space<vmem>>, %arg3: memref<1x128xf32, #tpu.memory_space<vmem>>, %arg4: memref<128x128xbf16, #tpu.memory_space<vmem>>, %arg5: memref<1x128xf32, #tpu.memory_space<vmem>>, %arg6: memref<1x4x8x16x128xf32, #tpu.memory_space<vmem>>) attributes {dimension_semantics = [#tpu.dimension_semantics<parallel>], iteration_bounds = array<i64: 2>, scalar_prefetch = 0 : i64, scratch_operands = 0 : i64, tpu.core_type = #tpu.core_type<tc>, window_params = [{transform_indices = @transform_0, window_bounds = array<i64: 1, 8, 16, 128>}, {pipeline_mode = #tpu.pipeline_mode<synchronous>, transform_indices = @transform_1, window_bounds = array<i64: 128, 512>}, {pipeline_mode = #tpu.pipeline_mode<synchronous>, transform_indices = @transform_2, window_bounds = array<i64: 1, 128>}, {pipeline_mode = #tpu.pipeline_mode<synchronous>, transform_indices = @transform_3, window_bounds = array<i64: 128, 128>}, {pipeline_mode = #tpu.pipeline_mode<synchronous>, transform_indices = @transform_4, window_bounds = array<i64: 1, 128>}, {transform_indices = @transform_5, window_bounds = array<i64: 1, 4, 8, 16, 128>}]} {
    %c0 = arith.constant 0 : index
    %c0_0 = arith.constant 0 : index
    %c0_1 = arith.constant 0 : index
    %c0_2 = arith.constant 0 : index
    %0 = vector.load %arg1[%c0, %c0_0, %c0_1, %c0_2] : memref<1x8x16x128xbf16, #tpu.memory_space<vmem>>, vector<1x8x16x128xbf16>
    %1 = vector.shape_cast %0 : vector<1x8x16x128xbf16> to vector<128x128xbf16>
    %c0_3 = arith.constant 0 : index
    %c0_4 = arith.constant 0 : index
    %2 = vector.load %arg2[%c0_3, %c0_4] : memref<128x512xbf16, #tpu.memory_space<vmem>>, vector<128x128xbf16>
    %cst = arith.constant dense<0.000000e+00> : vector<128x128xf32>
    %3 = tpu.matmul %1, %2, %cst {dimension_numbers = #tpu.dot_dimension_numbers<[1], [0], [0], [1], [0, 0, 1, 1], [], []>} : vector<128x128xbf16>, vector<128x128xbf16>, vector<128x128xf32> -> vector<128x128xf32>
    %c0_5 = arith.constant 0 : index
    %c0_6 = arith.constant 0 : index
    %4 = vector.load %arg3[%c0_5, %c0_6] : memref<1x128xf32, #tpu.memory_space<vmem>>, vector<1x128xf32>
    %5 = vector.broadcast %4 : vector<1x128xf32> to vector<128x128xf32>
    %6 = arith.addf %3, %5 : vector<128x128xf32>
    %cst_7 = arith.constant 0.000000e+00 : f32
    %7 = vector.broadcast %cst_7 : f32 to vector<128x128xf32>
    %8 = arith.maximumf %6, %7 : vector<128x128xf32>
    %9 = arith.truncf %8 : vector<128x128xf32> to vector<128x128xbf16>
    %c0_8 = arith.constant 0 : index
    %c0_9 = arith.constant 0 : index
    %10 = vector.load %arg4[%c0_8, %c0_9] : memref<128x128xbf16, #tpu.memory_space<vmem>>, vector<128x128xbf16>
    %cst_10 = arith.constant dense<0.000000e+00> : vector<128x128xf32>
    %11 = tpu.matmul %9, %10, %cst_10 {dimension_numbers = #tpu.dot_dimension_numbers<[1], [0], [0], [1], [0, 0, 1, 1], [], []>} : vector<128x128xbf16>, vector<128x128xbf16>, vector<128x128xf32> -> vector<128x128xf32>
    %c0_11 = arith.constant 0 : index
    %c0_12 = arith.constant 0 : index
    %12 = vector.load %arg5[%c0_11, %c0_12] : memref<1x128xf32, #tpu.memory_space<vmem>>, vector<1x128xf32>
    %13 = vector.broadcast %12 : vector<1x128xf32> to vector<128x128xf32>
    %14 = arith.addf %11, %13 : vector<128x128xf32>
    %15 = vector.shape_cast %14 : vector<128x128xf32> to vector<1x8x16x128xf32>
    %c0_13 = arith.constant 0 : index
    %c0_14 = arith.constant 0 : index
    %c0_15 = arith.constant 0 : index
    %c0_16 = arith.constant 0 : index
    %c0_17 = arith.constant 0 : index
    %16 = vector.load %arg6[%c0_13, %c0_14, %c0_15, %c0_16, %c0_17] : memref<1x4x8x16x128xf32, #tpu.memory_space<vmem>>, vector<1x1x8x16x128xf32>
    %17 = vector.shape_cast %16 : vector<1x1x8x16x128xf32> to vector<1x8x16x128xf32>
    %18 = vector.shape_cast %15 : vector<1x8x16x128xf32> to vector<1x1x8x16x128xf32>
    tpu.vector_store %arg6[%c0_13, %c0_14, %c0_15, %c0_16, %c0_17], %18 {strides = array<i32>} : memref<1x4x8x16x128xf32, #tpu.memory_space<vmem>>, vector<1x1x8x16x128xf32>,
    %c0_18 = arith.constant 0 : index
    %c128 = arith.constant 128 : index
    %19 = vector.load %arg2[%c0_18, %c128] : memref<128x512xbf16, #tpu.memory_space<vmem>>, vector<128x128xbf16>
    %cst_19 = arith.constant dense<0.000000e+00> : vector<128x128xf32>
    %20 = tpu.matmul %1, %19, %cst_19 {dimension_numbers = #tpu.dot_dimension_numbers<[1], [0], [0], [1], [0, 0, 1, 1], [], []>} : vector<128x128xbf16>, vector<128x128xbf16>, vector<128x128xf32> -> vector<128x128xf32>
    %c0_20 = arith.constant 0 : index
    %c0_21 = arith.constant 0 : index
    %21 = vector.load %arg3[%c0_20, %c0_21] : memref<1x128xf32, #tpu.memory_space<vmem>>, vector<1x128xf32>
    %22 = vector.broadcast %21 : vector<1x128xf32> to vector<128x128xf32>
    %23 = arith.addf %20, %22 : vector<128x128xf32>
    %cst_22 = arith.constant 0.000000e+00 : f32
    %24 = vector.broadcast %cst_22 : f32 to vector<128x128xf32>
    %25 = arith.maximumf %23, %24 : vector<128x128xf32>
    %26 = arith.truncf %25 : vector<128x128xf32> to vector<128x128xbf16>
    %c0_23 = arith.constant 0 : index
    %c0_24 = arith.constant 0 : index
    %27 = vector.load %arg4[%c0_23, %c0_24] : memref<128x128xbf16, #tpu.memory_space<vmem>>, vector<128x128xbf16>
    %cst_25 = arith.constant dense<0.000000e+00> : vector<128x128xf32>
    %28 = tpu.matmul %26, %27, %cst_25 {dimension_numbers = #tpu.dot_dimension_numbers<[1], [0], [0], [1], [0, 0, 1, 1], [], []>} : vector<128x128xbf16>, vector<128x128xbf16>, vector<128x128xf32> -> vector<128x128xf32>
    %c0_26 = arith.constant 0 : index
    %c0_27 = arith.constant 0 : index
    %29 = vector.load %arg5[%c0_26, %c0_27] : memref<1x128xf32, #tpu.memory_space<vmem>>, vector<1x128xf32>
    %30 = vector.broadcast %29 : vector<1x128xf32> to vector<128x128xf32>
    %31 = arith.addf %28, %30 : vector<128x128xf32>
    %32 = vector.shape_cast %31 : vector<128x128xf32> to vector<1x8x16x128xf32>
    %c0_28 = arith.constant 0 : index
    %c1 = arith.constant 1 : index
    %c0_29 = arith.constant 0 : index
    %c0_30 = arith.constant 0 : index
    %c0_31 = arith.constant 0 : index
    %33 = vector.load %arg6[%c0_28, %c1, %c0_29, %c0_30, %c0_31] : memref<1x4x8x16x128xf32, #tpu.memory_space<vmem>>, vector<1x1x8x16x128xf32>
    %34 = vector.shape_cast %33 : vector<1x1x8x16x128xf32> to vector<1x8x16x128xf32>
    %35 = vector.shape_cast %32 : vector<1x8x16x128xf32> to vector<1x1x8x16x128xf32>
    tpu.vector_store %arg6[%c0_28, %c1, %c0_29, %c0_30, %c0_31], %35 {strides = array<i32>} : memref<1x4x8x16x128xf32, #tpu.memory_space<vmem>>, vector<1x1x8x16x128xf32>,
    %c0_32 = arith.constant 0 : index
    %c256 = arith.constant 256 : index
    %36 = vector.load %arg2[%c0_32, %c256] : memref<128x512xbf16, #tpu.memory_space<vmem>>, vector<128x128xbf16>
    %cst_33 = arith.constant dense<0.000000e+00> : vector<128x128xf32>
    %37 = tpu.matmul %1, %36, %cst_33 {dimension_numbers = #tpu.dot_dimension_numbers<[1], [0], [0], [1], [0, 0, 1, 1], [], []>} : vector<128x128xbf16>, vector<128x128xbf16>, vector<128x128xf32> -> vector<128x128xf32>
    %c0_34 = arith.constant 0 : index
    %c0_35 = arith.constant 0 : index
    %38 = vector.load %arg3[%c0_34, %c0_35] : memref<1x128xf32, #tpu.memory_space<vmem>>, vector<1x128xf32>
    %39 = vector.broadcast %38 : vector<1x128xf32> to vector<128x128xf32>
    %40 = arith.addf %37, %39 : vector<128x128xf32>
    %cst_36 = arith.constant 0.000000e+00 : f32
    %41 = vector.broadcast %cst_36 : f32 to vector<128x128xf32>
    %42 = arith.maximumf %40, %41 : vector<128x128xf32>
    %43 = arith.truncf %42 : vector<128x128xf32> to vector<128x128xbf16>
    %c0_37 = arith.constant 0 : index
    %c0_38 = arith.constant 0 : index
    %44 = vector.load %arg4[%c0_37, %c0_38] : memref<128x128xbf16, #tpu.memory_space<vmem>>, vector<128x128xbf16>
    %cst_39 = arith.constant dense<0.000000e+00> : vector<128x128xf32>
    %45 = tpu.matmul %43, %44, %cst_39 {dimension_numbers = #tpu.dot_dimension_numbers<[1], [0], [0], [1], [0, 0, 1, 1], [], []>} : vector<128x128xbf16>, vector<128x128xbf16>, vector<128x128xf32> -> vector<128x128xf32>
    %c0_40 = arith.constant 0 : index
    %c0_41 = arith.constant 0 : index
    %46 = vector.load %arg5[%c0_40, %c0_41] : memref<1x128xf32, #tpu.memory_space<vmem>>, vector<1x128xf32>
    %47 = vector.broadcast %46 : vector<1x128xf32> to vector<128x128xf32>
    %48 = arith.addf %45, %47 : vector<128x128xf32>
    %49 = vector.shape_cast %48 : vector<128x128xf32> to vector<1x8x16x128xf32>
    %c0_42 = arith.constant 0 : index
    %c2 = arith.constant 2 : index
    %c0_43 = arith.constant 0 : index
    %c0_44 = arith.constant 0 : index
    %c0_45 = arith.constant 0 : index
    %50 = vector.load %arg6[%c0_42, %c2, %c0_43, %c0_44, %c0_45] : memref<1x4x8x16x128xf32, #tpu.memory_space<vmem>>, vector<1x1x8x16x128xf32>
    %51 = vector.shape_cast %50 : vector<1x1x8x16x128xf32> to vector<1x8x16x128xf32>
    %52 = vector.shape_cast %49 : vector<1x8x16x128xf32> to vector<1x1x8x16x128xf32>
    tpu.vector_store %arg6[%c0_42, %c2, %c0_43, %c0_44, %c0_45], %52 {strides = array<i32>} : memref<1x4x8x16x128xf32, #tpu.memory_space<vmem>>, vector<1x1x8x16x128xf32>,
    %c0_46 = arith.constant 0 : index
    %c384 = arith.constant 384 : index
    %53 = vector.load %arg2[%c0_46, %c384] : memref<128x512xbf16, #tpu.memory_space<vmem>>, vector<128x128xbf16>
    %cst_47 = arith.constant dense<0.000000e+00> : vector<128x128xf32>
    %54 = tpu.matmul %1, %53, %cst_47 {dimension_numbers = #tpu.dot_dimension_numbers<[1], [0], [0], [1], [0, 0, 1, 1], [], []>} : vector<128x128xbf16>, vector<128x128xbf16>, vector<128x128xf32> -> vector<128x128xf32>
    %c0_48 = arith.constant 0 : index
    %c0_49 = arith.constant 0 : index
    %55 = vector.load %arg3[%c0_48, %c0_49] : memref<1x128xf32, #tpu.memory_space<vmem>>, vector<1x128xf32>
    %56 = vector.broadcast %55 : vector<1x128xf32> to vector<128x128xf32>
    %57 = arith.addf %54, %56 : vector<128x128xf32>
    %cst_50 = arith.constant 0.000000e+00 : f32
    %58 = vector.broadcast %cst_50 : f32 to vector<128x128xf32>
    %59 = arith.maximumf %57, %58 : vector<128x128xf32>
    %60 = arith.truncf %59 : vector<128x128xf32> to vector<128x128xbf16>
    %c0_51 = arith.constant 0 : index
    %c0_52 = arith.constant 0 : index
    %61 = vector.load %arg4[%c0_51, %c0_52] : memref<128x128xbf16, #tpu.memory_space<vmem>>, vector<128x128xbf16>
    %cst_53 = arith.constant dense<0.000000e+00> : vector<128x128xf32>
    %62 = tpu.matmul %60, %61, %cst_53 {dimension_numbers = #tpu.dot_dimension_numbers<[1], [0], [0], [1], [0, 0, 1, 1], [], []>} : vector<128x128xbf16>, vector<128x128xbf16>, vector<128x128xf32> -> vector<128x128xf32>
    %c0_54 = arith.constant 0 : index
    %c0_55 = arith.constant 0 : index
    %63 = vector.load %arg5[%c0_54, %c0_55] : memref<1x128xf32, #tpu.memory_space<vmem>>, vector<1x128xf32>
    %64 = vector.broadcast %63 : vector<1x128xf32> to vector<128x128xf32>
    %65 = arith.addf %62, %64 : vector<128x128xf32>
    %66 = vector.shape_cast %65 : vector<128x128xf32> to vector<1x8x16x128xf32>
    %c0_56 = arith.constant 0 : index
    %c3 = arith.constant 3 : index
    %c0_57 = arith.constant 0 : index
    %c0_58 = arith.constant 0 : index
    %c0_59 = arith.constant 0 : index
    %67 = vector.load %arg6[%c0_56, %c3, %c0_57, %c0_58, %c0_59] : memref<1x4x8x16x128xf32, #tpu.memory_space<vmem>>, vector<1x1x8x16x128xf32>
    %68 = vector.shape_cast %67 : vector<1x1x8x16x128xf32> to vector<1x8x16x128xf32>
    %69 = vector.shape_cast %66 : vector<1x8x16x128xf32> to vector<1x1x8x16x128xf32>
    tpu.vector_store %arg6[%c0_56, %c3, %c0_57, %c0_58, %c0_59], %69 {strides = array<i32>} : memref<1x4x8x16x128xf32, #tpu.memory_space<vmem>>, vector<1x1x8x16x128xf32>,
    return
  }
  func.func @transform_0(%arg0: i32) -> (i32, i32, i32, i32) {
    %c0_i32 = arith.constant 0 : i32
    %c0_i32_0 = arith.constant 0 : i32
    %c0_i32_1 = arith.constant 0 : i32
    %c0_i32_2 = arith.constant 0 : i32
    return %arg0, %c0_i32, %c0_i32_0, %c0_i32_1 : i32, i32, i32, i32
  }
  func.func @transform_1(%arg0: i32) -> (i32, i32) {
    %c0_i32 = arith.constant 0 : i32
    %c0_i32_0 = arith.constant 0 : i32
    %c0_i32_1 = arith.constant 0 : i32
    return %c0_i32, %c0_i32_0 : i32, i32
  }
  func.func @transform_2(%arg0: i32) -> (i32, i32) {
    %c0_i32 = arith.constant 0 : i32
    %c0_i32_0 = arith.constant 0 : i32
    %c0_i32_1 = arith.constant 0 : i32
    return %c0_i32, %c0_i32_0 : i32, i32
  }
  func.func @transform_3(%arg0: i32) -> (i32, i32) {
    %c0_i32 = arith.constant 0 : i32
    %c0_i32_0 = arith.constant 0 : i32
    %c0_i32_1 = arith.constant 0 : i32
    return %c0_i32, %c0_i32_0 : i32, i32
  }
  func.func @transform_4(%arg0: i32) -> (i32, i32) {
    %c0_i32 = arith.constant 0 : i32
    %c0_i32_0 = arith.constant 0 : i32
    %c0_i32_1 = arith.constant 0 : i32
    return %c0_i32, %c0_i32_0 : i32, i32
  }
  func.func @transform_5(%arg0: i32) -> (i32, i32, i32, i32, i32) {
    %c0_i32 = arith.constant 0 : i32
    %c0_i32_0 = arith.constant 0 : i32
    %c0_i32_1 = arith.constant 0 : i32
    %c0_i32_2 = arith.constant 0 : i32
    %c0_i32_3 = arith.constant 0 : i32
    return %arg0, %c0_i32, %c0_i32_0, %c0_i32_1, %c0_i32_2 : i32, i32, i32, i32, i32
  }
}

</mosaic_0001>

<bundles_post_ra>
// kernel: res_mask_head_forward.7
= control target key start
LH: loop header
LB: loop body
LE: loop exit
PB: predicated region body
PF: predicated region fallthrough
CT: control target
= control target key end

     0   :  { %s2495_s18 = smov 0   ;;  %s2970_s0 = inlined_call_operand.vmem [shape: bf16[2,8,16,128], index: 0, kind: input, shape index: {}]   ;;  %s2971_s1 = inlined_call_operand.vmem [shape: bf16[128,512], index: 1, kind: input, shape index: {}]   ;;  %s2972_s2 = inlined_call_operand.vmem [shape: f32[1,128], index: 2, kind: input, shape index: {}]   ;;  %s2973_s3 = inlined_call_operand.vmem [shape: bf16[128,128], index: 3, kind: input, shape index: {}]   ;;  %s2974_s4 = inlined_call_operand.vmem [shape: f32[1,128], index: 4, kind: input, shape index: {}]   ;;  %s2975_s5 = inlined_call_operand.vmem [shape: f32[2,4,8,16,128], index: 5, kind: output, shape index: {}]  }
   0x1 LB: > { %s1852_s19 = sadd.s32 4294967295, %s2463_s18   ;;  %p1856_p0 = scmp.ge.s32.totalorder %s2463_s18, 1  ;;  %s2463_s18 = sphi %s2495_s18, %s15_s18  }
   0x2   : > { %p187_p1 = scmp.lt.s32.totalorder %s2463_s18, 3 }
   0x4   : > { %p188_p2 = pnand %p1856_p0, %p187_p1 }
   0x5   : > { %v2385_v0 = vld [vmem:[%s2971_s1] ss:$16 sps:$4 sm:$0xff] (!%p188_p2)   ;;  %p215_p3 = scmp.lt.s32.totalorder (!%p188_p2), %s1852_s19, 1  ;;  %v2395_v9 = vld [vmem:[%s2971_s1 + $0x4] ss:$16 sps:$4 sm:$0xff] (!%p188_p2)   ;;  %v2426_v18 = vld [vmem:[%s2973_s3 + $0x8] sm:$0xff] (!%p188_p2)  }
   0x6   : > { %191 = sbr.rel (%p188_p2) target bundleno = 598 (0x256), region = 40  ;;  %v2386_v1 = vld [vmem:[%s2971_s1 + $0x20] ss:$16 sps:$4 sm:$0xff] (!%p188_p2)   ;;  %2121 = vmatprep.subr.bf16.mxu0 (!%p188_p2), %v2385_v0  ;;  %v2396_v12 = vld [vmem:[%s2971_s1 + $0x24] ss:$16 sps:$4 sm:$0xff] (!%p188_p2)   ;;  %v2428_v24 = vld [vmem:[%s2973_s3 + $0x18] sm:$0xff] (!%p188_p2)  }
   0x7   : > { %2122 = vmatpush3.bf16.msra.mxu0 (!%p188_p2), %v2385_v0  ;;  %v2387_v2 = vld [vmem:[%s2971_s1 + $0x40] ss:$16 sps:$4 sm:$0xff] (!%p188_p2)   ;;  %v2399_v13 = vld [vmem:[%s2971_s1 + $0x44] ss:$16 sps:$4 sm:$0xff] (!%p188_p2)   ;;  %v2430_v29 = vld [vmem:[%s2973_s3 + $0x28] sm:$0xff] (!%p188_p2)  }
   0x8   : > { %2123 = vmatprep.subr.bf16.mxu0 (!%p188_p2), %v2386_v1  ;;  %v2388_v3 = vld [vmem:[%s2971_s1 + $0x60] ss:$16 sps:$4 sm:$0xff] (!%p188_p2)   ;;  %v2400_v16 = vld [vmem:[%s2971_s1 + $0x64] ss:$16 sps:$4 sm:$0xff] (!%p188_p2)   ;;  %v2409_v30 = vld [vmem:[%s2971_s1 + $0x8] ss:$16 sps:$4 sm:$0xff] (!%p188_p2)  }
   0x9   : > { %v2389_v4 = vld [vmem:[%s2971_s1 + $0x80] ss:$16 sps:$4 sm:$0xff] (!%p188_p2)   ;;  %v2403_v19 = vld [vmem:[%s2971_s1 + $0x84] ss:$16 sps:$4 sm:$0xff] (!%p188_p2)   ;;  %v2410_v31 = vld [vmem:[%s2971_s1 + $0x28] ss:$16 sps:$4 sm:$0xff] (!%p188_p2)  }
   0xa   : > { %v2390_v6 = vld [vmem:[%s2971_s1 + $0xa0] ss:$16 sps:$4 sm:$0xff] (!%p188_p2)   ;;  %v2404_v22 = vld [vmem:[%s2971_s1 + $0xa4] ss:$16 sps:$4 sm:$0xff] (!%p188_p2)   ;;  %v2411_v32 = vld [vmem:[%s2971_s1 + $0x48] ss:$16 sps:$4 sm:$0xff] (!%p188_p2)  }
   0xb   : > { %2124 = vmatpush3.bf16.msra.mxu0 (!%p188_p2), %v2386_v1  ;;  %v2391_v7 = vld [vmem:[%s2971_s1 + $0xc0] ss:$16 sps:$4 sm:$0xff] (!%p188_p2)   ;;  %v2407_v25 = vld [vmem:[%s2971_s1 + $0xc4] ss:$16 sps:$4 sm:$0xff] (!%p188_p2)   ;;  %v2412_v33 = vld [vmem:[%s2971_s1 + $0x68] ss:$16 sps:$4 sm:$0xff] (!%p188_p2)  }
   0xc   : > { %2125 = vmatprep.subr.bf16.mxu0 (!%p188_p2), %v2387_v2  ;;  %v2392_v8 = vld [vmem:[%s2971_s1 + $0xe0] ss:$16 sps:$4 sm:$0xff] (!%p188_p2)   ;;  %v2408_v28 = vld [vmem:[%s2971_s1 + $0xe4] ss:$16 sps:$4 sm:$0xff] (!%p188_p2)   ;;  %v2413_v34 = vld [vmem:[%s2971_s1 + $0x88] ss:$16 sps:$4 sm:$0xff] (!%p188_p2)  }
   0xd   : > { %s2977_s19 = smov (!%p215_p3, %s1852_s19), 1  ;;  %v2425_v17 = vld [vmem:[%s2973_s3] sm:$0xff]   ;;  %v2427_v23 = vld [vmem:[%s2973_s3 + $0x10] sm:$0xff]   ;;  %v2414_v35 = vld [vmem:[%s2971_s1 + $0xa8] ss:$16 sps:$4 sm:$0xff]  }
   0xe   : > { %s1991_s30 = sshll.u32 %s2977_s19, 6  ;;  %2153 = vmatprep.subr.bf16.mxu1 %v2425_v17  ;;  %v2429_v27 = vld [vmem:[%s2973_s3 + $0x20] sm:$0xff]   ;;  %v2415_v36 = vld [vmem:[%s2971_s1 + $0xc8] ss:$16 sps:$4 sm:$0xff]   ;;  %v2417_v38 = vld [vmem:[%s2971_s1 + $0xc] ss:$16 sps:$4 sm:$0xff]  }
   0xf   : > { %2126 = vmatpush3.bf16.msra.mxu0 %v2387_v2  ;;  %s2524_s8 = scalar_lea.vmem %s2970_s0, %s1991_s30  ;;  %2154 = vmatpush3.bf16.msra.mxu1 %v2425_v17  ;;  %v2416_v37 = vld [vmem:[%s2971_s1 + $0xe8] ss:$16 sps:$4 sm:$0xff]   ;;  %v2418_v39 = vld [vmem:[%s2971_s1 + $0x2c] ss:$16 sps:$4 sm:$0xff]   ;;  %v2431_v45 = vld [vmem:[%s2973_s3 + $0x30] sm:$0xff]   ;;  %s1992_s15 = sshll.u32 %s2977_s19, 9 }
  0x10   : > { %2127 = vmatprep.subr.bf16.mxu0 %v2388_v3  ;;  %v2527_v5 = vld [vmem:[%s2524_s8] sm:$0xff]   ;;  %v2543_v10 = vld [vmem:[%s2524_s8 + $0x8] sm:$0xff]   ;;  %v2546_v11 = vld [vmem:[%s2524_s8 + $0x10] sm:$0xff]   ;;  %2155 = vmatprep.subr.bf16.mxu1 %v2426_v18  ;;  %s2837_s22 = scalar_lea.vmem %s2975_s5, %s1992_s15 }
  0x11   : > { %2137 = vmatprep.mubr.bf16.mxu0 %v2527_v5  ;;  %v2557_v14 = vld [vmem:[%s2524_s8 + $0x18] sm:$0xff]   ;;  %v2560_v15 = vld [vmem:[%s2524_s8 + $0x20] sm:$0xff]   ;;  %v2577_v20 = vld [vmem:[%s2524_s8 + $0x28] sm:$0xff]  }
  0x12   : > { %v2580_v21 = vld [vmem:[%s2524_s8 + $0x30] sm:$0xff]   ;;  %v2597_v26 = vld [vmem:[%s2524_s8 + $0x38] sm:$0xff]   ;;  %v2433_v48 = vld [vmem:[%s2973_s3] sm:$0xff]  }
  0x13   : > { %2128 = vmatpush3.bf16.msra.mxu0 %v2388_v3  ;;  %2156 = vmatpush3.bf16.msra.mxu1 %v2426_v18  ;;  %v2419_v40 = vld [vmem:[%s2971_s1 + $0x4c] ss:$16 sps:$4 sm:$0xff]   ;;  %v2693_v49 = vld [vmem:[%s2972_s2] ss:$0 sm:$0xff] }
  0x14   : > { %2129 = vmatprep.subr.bf16.mxu0 %v2389_v4  ;;  %2157 = vmatprep.subr.bf16.mxu1 %v2427_v23  ;;  %v2420_v41 = vld [vmem:[%s2971_s1 + $0x6c] ss:$16 sps:$4 sm:$0xff]  }
  0x15   : > { %v2421_v42 = vld [vmem:[%s2971_s1 + $0x8c] ss:$16 sps:$4 sm:$0xff]  }
  0x16   : > { %v2422_v43 = vld [vmem:[%s2971_s1 + $0xac] ss:$16 sps:$4 sm:$0xff]  }
  0x17   : > { %2130 = vmatpush3.bf16.msra.mxu0 %v2389_v4  ;;  %2158 = vmatpush3.bf16.msra.mxu1 %v2427_v23  ;;  %v2423_v44 = vld [vmem:[%s2971_s1 + $0xcc] ss:$16 sps:$4 sm:$0xff]  }
  0x18   : > { %2131 = vmatprep.subr.bf16.mxu0 %v2390_v6  ;;  %2159 = vmatprep.subr.bf16.mxu1 %v2428_v24  ;;  %v2424_v46 = vld [vmem:[%s2971_s1 + $0xec] ss:$16 sps:$4 sm:$0xff]  }
  0x19   : > { %v2432_v47 = vld [vmem:[%s2973_s3 + $0x38] sm:$0xff]   ;;  %v2434_v3 = vld [vmem:[%s2973_s3 + $0x8] sm:$0xff]  }
  0x1b   : > { %2132 = vmatpush3.bf16.msra.mxu0 %v2390_v6  ;;  %2160 = vmatpush3.bf16.msra.mxu1 %v2428_v24 }
  0x1c   : > { %2133 = vmatprep.subr.bf16.mxu0 %v2391_v7  ;;  %2161 = vmatprep.subr.bf16.mxu1 %v2429_v27 }
  0x1f   : > { %2134 = vmatpush3.bf16.msra.mxu0 %v2391_v7  ;;  %2162 = vmatpush3.bf16.msra.mxu1 %v2429_v27  ;;  %v2437_v27 = vld [vmem:[%s2973_s3 + $0x20] sm:$0xff]  }
  0x20   : > { %2135 = vmatprep.subr.bf16.mxu0 %v2392_v8  ;;  %2163 = vmatprep.subr.bf16.mxu1 %v2430_v29 }
  0x23   : > { %2136 = vmatpush3.bf16.msra.mxu0 %v2392_v8  ;;  %2164 = vmatpush3.bf16.msra.mxu1 %v2430_v29 }
  0x24   : > { %2185 = vmatprep.subr.bf16.mxu0 %v2395_v9  ;;  %2165 = vmatprep.subr.bf16.mxu1 %v2431_v45 }
  0x26   : > { %2138 = vmatmul.mubr.bf16.vlgmr.msra.gmra.mrb[0].mxu0 %v2543_v10 }
  0x27   : > { %2186 = vmatpush3.bf16.msra.mxu0 %v2395_v9  ;;  %2141 = vmatprep.mubr.bf16.mxu0 %v2546_v11 }
  0x28   : > { %2187 = vmatprep.subr.bf16.mxu0 %v2396_v12  ;;  %2166 = vmatpush3.bf16.msra.mxu1 %v2431_v45 }
  0x29   : > { %2167 = vmatprep.subr.bf16.mxu1 %v2432_v47 }
  0x2b   : > { %2188 = vmatpush3.bf16.msra.mxu0 %v2396_v12 }
  0x2c   : > { %2189 = vmatprep.subr.bf16.mxu0 %v2399_v13  ;;  %2168 = vmatpush3.bf16.msra.mxu1 %v2432_v47 }
  0x2d   : > { %2217 = vmatprep.subr.bf16.mxu1 %v2433_v48 }
  0x2e   : > { %2142 = vmatmul.mubr.bf16.gmra.mrb[4].mxu0 %v2557_v14 }
  0x2f   : > { %2190 = vmatpush3.bf16.msra.mxu0 %v2399_v13  ;;  %2145 = vmatprep.mubr.bf16.mxu0 %v2560_v15 }
  0x30   : > { %2191 = vmatprep.subr.bf16.mxu0 %v2400_v16 }
  0x33   : > { %2192 = vmatpush3.bf16.msra.mxu0 %v2400_v16 }
  0x34   : > { %2193 = vmatprep.subr.bf16.mxu0 %v2403_v19 }
  0x36   : > { %2146 = vmatmul.mubr.bf16.gmra.mrb[8].mxu0 %v2577_v20 }
  0x37   : > { %2194 = vmatpush3.bf16.msra.mxu0 %v2403_v19  ;;  %2149 = vmatprep.mubr.bf16.mxu0 %v2580_v21  ;;  %v2436_v19 = vld [vmem:[%s2973_s3 + $0x18] sm:$0xff]  }
  0x38   : > { %2195 = vmatprep.subr.bf16.mxu0 %v2404_v22 }
  0x3b   : > { %2196 = vmatpush3.bf16.msra.mxu0 %v2404_v22 }
  0x3c   : > { %2197 = vmatprep.subr.bf16.mxu0 %v2407_v25 }
  0x3e   : > { %2150 = vmatmul.mubr.bf16.gmra.mrb[12].mxu0 %v2597_v26 }
  0x3f   : > { %2198 = vmatpush3.bf16.msra.mxu0 %v2407_v25  ;;  %2201 = vmatprep.mubr.bf16.mxu0 %v2527_v5 }
  0x40   : > { %2199 = vmatprep.subr.bf16.mxu0 %v2408_v28 }
  0x43   : > { %2200 = vmatpush3.bf16.msra.mxu0 %v2408_v28 }
  0x44   : > { %2249 = vmatprep.subr.bf16.mxu0 %v2409_v30 }
  0x46   : > { %2202 = vmatmul.mubr.bf16.vlgmr.msra.gmra.mrb[16].mxu0 %v2543_v10 }
  0x47   : > { %2250 = vmatpush3.bf16.msra.mxu0 %v2409_v30  ;;  %2205 = vmatprep.mubr.bf16.mxu0 %v2546_v11 }
  0x48   : > { %2251 = vmatprep.subr.bf16.mxu0 %v2410_v31 }
  0x4b   : > { %2252 = vmatpush3.bf16.msra.mxu0 %v2410_v31 }
  0x4c   : > { %2253 = vmatprep.subr.bf16.mxu0 %v2411_v32 }
  0x4e   : > { %2206 = vmatmul.mubr.bf16.gmra.mrb[20].mxu0 %v2557_v14 }
  0x4f   : > { %2254 = vmatpush3.bf16.msra.mxu0 %v2411_v32  ;;  %2209 = vmatprep.mubr.bf16.mxu0 %v2560_v15 }
  0x50   : > { %2255 = vmatprep.subr.bf16.mxu0 %v2412_v33 }
  0x53   : > { %2256 = vmatpush3.bf16.msra.mxu0 %v2412_v33 }
  0x54   : > { %2257 = vmatprep.subr.bf16.mxu0 %v2413_v34 }
  0x56   : > { %2210 = vmatmul.mubr.bf16.gmra.mrb[24].mxu0 %v2577_v20 }
  0x57   : > { %2258 = vmatpush3.bf16.msra.mxu0 %v2413_v34  ;;  %2213 = vmatprep.mubr.bf16.mxu0 %v2580_v21 }
  0x58   : > { %2259 = vmatprep.subr.bf16.mxu0 %v2414_v35 }
  0x5b   : > { %2260 = vmatpush3.bf16.msra.mxu0 %v2414_v35  ;;  %v2438_v35 = vld [vmem:[%s2973_s3 + $0x28] sm:$0xff]  }
  0x5c   : > { %2261 = vmatprep.subr.bf16.mxu0 %v2415_v36 }
  0x5e   : > { %2214 = vmatmul.mubr.bf16.gmra.mrb[28].mxu0 %v2597_v26 }
  0x5f   : > { %2262 = vmatpush3.bf16.msra.mxu0 %v2415_v36  ;;  %2265 = vmatprep.mubr.bf16.mxu0 %v2527_v5 }
  0x60   : > { %2263 = vmatprep.subr.bf16.mxu0 %v2416_v37 }
  0x63   : > { %2264 = vmatpush3.bf16.msra.mxu0 %v2416_v37 }
  0x64   : > { %2313 = vmatprep.subr.bf16.mxu0 %v2417_v38 }
  0x66   : > { %2266 = vmatmul.mubr.bf16.vlgmr.msra.gmra.mrb[32].mxu0 %v2543_v10 }
  0x67   : > { %2314 = vmatpush3.bf16.msra.mxu0 %v2417_v38  ;;  %2269 = vmatprep.mubr.bf16.mxu0 %v2546_v11 }
  0x68   : > { %2315 = vmatprep.subr.bf16.mxu0 %v2418_v39 }
  0x6b   : > { %2316 = vmatpush3.bf16.msra.mxu0 %v2418_v39 }
  0x6c   : > { %2317 = vmatprep.subr.bf16.mxu0 %v2419_v40 }
  0x6e   : > { %2270 = vmatmul.mubr.bf16.gmra.mrb[36].mxu0 %v2557_v14 }
  0x6f   : > { %2318 = vmatpush3.bf16.msra.mxu0 %v2419_v40  ;;  %2273 = vmatprep.mubr.bf16.mxu0 %v2560_v15 }
  0x70   : > { %2319 = vmatprep.subr.bf16.mxu0 %v2420_v41 }
  0x73   : > { %2320 = vmatpush3.bf16.msra.mxu0 %v2420_v41 }
  0x74   : > { %2321 = vmatprep.subr.bf16.mxu0 %v2421_v42 }
  0x76   : > { %2274 = vmatmul.mubr.bf16.gmra.mrb[40].mxu0 %v2577_v20 }
  0x77   : > { %2322 = vmatpush3.bf16.msra.mxu0 %v2421_v42  ;;  %2277 = vmatprep.mubr.bf16.mxu0 %v2580_v21 }
  0x78   : > { %2323 = vmatprep.subr.bf16.mxu0 %v2422_v43 }
  0x7b   : > { %2324 = vmatpush3.bf16.msra.mxu0 %v2422_v43  ;;  %v2439_v43 = vld [vmem:[%s2973_s3 + $0x30] sm:$0xff]  }
  0x7c   : > { %2325 = vmatprep.subr.bf16.mxu0 %v2423_v44 }
  0x7e   : > { %2278 = vmatmul.mubr.bf16.gmra.mrb[44].mxu0 %v2597_v26 }
  0x7f   : > { %2326 = vmatpush3.bf16.msra.mxu0 %v2423_v44  ;;  %2329 = vmatprep.mubr.bf16.mxu0 %v2527_v5 }
  0x80   : > { %2327 = vmatprep.subr.bf16.mxu0 %v2424_v46 }
  0x83   : > { %2328 = vmatpush3.bf16.msra.mxu0 %v2424_v46 }
  0x86   : > { %2330 = vmatmul.mubr.bf16.vlgmr.msra.gmra.mrb[48].mxu0 %v2543_v10 }
  0x87   : > { %2333 = vmatprep.mubr.bf16.mxu0 %v2546_v11  ;;  %v2435_v11 = vld [vmem:[%s2973_s3 + $0x10] sm:$0xff]  }
  0x8e   : > { %2334 = vmatmul.mubr.bf16.gmra.mrb[52].mxu0 %v2557_v14 }
  0x8f   : > { %2337 = vmatprep.mubr.bf16.mxu0 %v2560_v15 }
  0x96   : > { %2338 = vmatmul.mubr.bf16.gmra.mrb[56].mxu0 %v2577_v20 }
  0x97   : > { %2341 = vmatprep.mubr.bf16.mxu0 %v2580_v21 }
  0x9e   : > { %2342 = vmatmul.mubr.bf16.gmra.mrb[60].mxu0 %v2597_v26 }
  0xf9   : > { %v2139_v50 = vpop.f32.mrb[0].mxu0 }
  0xfa   : > { %v404_v51 = vadd.f32 %v2139_v50, %v2693_v49  ;;  %v395_v52 = vpop.f32.mrb[1].mxu0 }
  0xfb   : > { %v396_v53 = vadd.f32 %v2693_v49, %v395_v52  ;;  %v2140_v54 = vpop.f32.mrb[2].mxu0  ;;  %v2440_v52 = vld [vmem:[%s2973_s3 + $0x38] sm:$0xff]  }
  0xfc   : > { %v407_v55 = vadd.f32 %v2140_v54, %v2693_v49  ;;  %v398_v56 = vpop.f32.mrb[3].mxu0  ;;  %v460_v58 = vmax.f32 %v404_v51, 0.0 }
  0xfd   : > { %v399_v57 = vadd.f32 %v2693_v49, %v398_v56  ;;  %v458_v60 = vmax.f32 %v396_v53, 0.0 }
  0xfe   : > { %v461_v59 = vmax.f32 %v407_v55, 0.0 }
  0xff   : > { %v459_v61 = vmax.f32 %v399_v57, 0.0 }
 0x100   : > { %v475_v62 = vpack.c.bf16 %v461_v59, %v460_v58 }
 0x101   : > { %v2143_v63 = vpop.f32.mrb[4].mxu0  ;;  %v474_v0 = vpack.c.bf16 %v459_v61, %v458_v60  ;;  %v2441_v60 = vld [vmem:[%s2973_s3] sm:$0xff]  }
 0x102   : > { %v420_v1 = vadd.f32 %v2143_v63, %v2693_v49  ;;  %v411_v2 = vpop.f32.mrb[5].mxu0 }
 0x103   : > { %v412_v4 = vadd.f32 %v2693_v49, %v411_v2  ;;  %v2144_v5 = vpop.f32.mrb[6].mxu0  ;;  %2169 = vmatprep.mubr.bf16.mxu1 %v474_v0 }
 0x104   : > { %v423_v6 = vadd.f32 %v2144_v5, %v2693_v49  ;;  %v414_v7 = vpop.f32.mrb[7].mxu0  ;;  %2170 = vmatmul.mubr.bf16.vlgmr.msra.gmra.mrb[0].mxu1 %v475_v62  ;;  %v464_v9 = vmax.f32 %v420_v1, 0.0 }
 0x105   : > { %v415_v8 = vadd.f32 %v2693_v49, %v414_v7  ;;  %2218 = vmatpush3.bf16.msra.mxu1 %v2433_v48  ;;  %v462_v12 = vmax.f32 %v412_v4, 0.0  ;;  %v2442_v4 = vld [vmem:[%s2973_s3 + $0x8] sm:$0xff]  }
 0x106   : > { %v465_v10 = vmax.f32 %v423_v6, 0.0  ;;  %2219 = vmatprep.subr.bf16.mxu1 %v2434_v3 }
 0x107   : > { %v463_v13 = vmax.f32 %v415_v8, 0.0 }
 0x108   : > { %v477_v14 = vpack.c.bf16 %v465_v10, %v464_v9 }
 0x109   : > { %v476_v15 = vpack.c.bf16 %v463_v13, %v462_v12  ;;  %v2147_v16 = vpop.f32.mrb[8].mxu0  ;;  %2220 = vmatpush3.bf16.msra.mxu1 %v2434_v3  ;;  %v2443_v12 = vld [vmem:[%s2973_s3 + $0x10] sm:$0xff]  }
 0x10a   : > { %v436_v17 = vadd.f32 %v2147_v16, %v2693_v49  ;;  %v427_v18 = vpop.f32.mrb[9].mxu0  ;;  %2221 = vmatprep.subr.bf16.mxu1 %v2435_v11 }
 0x10b   : > { %v428_v20 = vadd.f32 %v2693_v49, %v427_v18  ;;  %v2148_v21 = vpop.f32.mrb[10].mxu0  ;;  %2173 = vmatprep.mubr.bf16.mxu1 %v476_v15 }
 0x10c   : > { %v439_v22 = vadd.f32 %v2148_v21, %v2693_v49  ;;  %v430_v23 = vpop.f32.mrb[11].mxu0  ;;  %2174 = vmatmul.mubr.bf16.gmra.mrb[4].mxu1 %v477_v14  ;;  %v468_v25 = vmax.f32 %v436_v17, 0.0 }
 0x10d   : > { %v431_v24 = vadd.f32 %v2693_v49, %v430_v23  ;;  %2222 = vmatpush3.bf16.msra.mxu1 %v2435_v11  ;;  %v466_v28 = vmax.f32 %v428_v20, 0.0  ;;  %v2444_v20 = vld [vmem:[%s2973_s3 + $0x18] sm:$0xff]  }
 0x10e   : > { %v469_v26 = vmax.f32 %v439_v22, 0.0  ;;  %2223 = vmatprep.subr.bf16.mxu1 %v2436_v19 }
 0x10f   : > { %v467_v29 = vmax.f32 %v431_v24, 0.0 }
 0x110   : > { %v479_v30 = vpack.c.bf16 %v469_v26, %v468_v25 }
 0x111   : > { %v478_v31 = vpack.c.bf16 %v467_v29, %v466_v28  ;;  %v2151_v32 = vpop.f32.mrb[12].mxu0  ;;  %2224 = vmatpush3.bf16.msra.mxu1 %v2436_v19  ;;  %v2445_v28 = vld [vmem:[%s2973_s3 + $0x20] sm:$0xff]  }
 0x112   : > { %v452_v33 = vadd.f32 %v2151_v32, %v2693_v49  ;;  %v443_v34 = vpop.f32.mrb[13].mxu0  ;;  %2225 = vmatprep.subr.bf16.mxu1 %v2437_v27 }
 0x113   : > { %v444_v36 = vadd.f32 %v2693_v49, %v443_v34  ;;  %v2152_v37 = vpop.f32.mrb[14].mxu0  ;;  %2177 = vmatprep.mubr.bf16.mxu1 %v478_v31 }
 0x114   : > { %v455_v38 = vadd.f32 %v2152_v37, %v2693_v49  ;;  %v446_v39 = vpop.f32.mrb[15].mxu0  ;;  %2178 = vmatmul.mubr.bf16.gmra.mrb[8].mxu1 %v479_v30  ;;  %v472_v41 = vmax.f32 %v452_v33, 0.0 }
 0x115   : > { %v447_v40 = vadd.f32 %v2693_v49, %v446_v39  ;;  %2226 = vmatpush3.bf16.msra.mxu1 %v2437_v27  ;;  %v470_v44 = vmax.f32 %v444_v36, 0.0  ;;  %v2446_v36 = vld [vmem:[%s2973_s3 + $0x28] sm:$0xff]  }
 0x116   : > { %v473_v42 = vmax.f32 %v455_v38, 0.0  ;;  %2227 = vmatprep.subr.bf16.mxu1 %v2438_v35 }
 0x117   : > { %v471_v45 = vmax.f32 %v447_v40, 0.0 }
 0x118   : > { %v481_v46 = vpack.c.bf16 %v473_v42, %v472_v41 }
 0x119   : > { %v480_v47 = vpack.c.bf16 %v471_v45, %v470_v44  ;;  %v2203_v48 = vpop.f32.mrb[16].mxu0  ;;  %2228 = vmatpush3.bf16.msra.mxu1 %v2438_v35  ;;  %v2447_v44 = vld [vmem:[%s2973_s3 + $0x30] sm:$0xff]  }
 0x11a   : > { %v780_v50 = vadd.f32 %v2203_v48, %v2693_v49  ;;  %v771_v51 = vpop.f32.mrb[17].mxu0  ;;  %2229 = vmatprep.subr.bf16.mxu1 %v2439_v43 }
 0x11b   : > { %v772_v53 = vadd.f32 %v2693_v49, %v771_v51  ;;  %2181 = vmatprep.mubr.bf16.mxu1 %v480_v47  ;;  %v2204_v54 = vpop.f32.mrb[18].mxu0 }
 0x11c   : > { %v783_v55 = vadd.f32 %v2204_v54, %v2693_v49  ;;  %2182 = vmatmul.mubr.bf16.gmra.mrb[12].mxu1 %v481_v46  ;;  %v774_v56 = vpop.f32.mrb[19].mxu0  ;;  %v836_v58 = vmax.f32 %v780_v50, 0.0 }
 0x11d   : > { %v775_v57 = vadd.f32 %v2693_v49, %v774_v56  ;;  %2230 = vmatpush3.bf16.msra.mxu1 %v2439_v43  ;;  %v834_v61 = vmax.f32 %v772_v53, 0.0  ;;  %v2448_v53 = vld [vmem:[%s2973_s3 + $0x38] sm:$0xff]  }
 0x11e   : > { %v837_v59 = vmax.f32 %v783_v55, 0.0  ;;  %2231 = vmatprep.subr.bf16.mxu1 %v2440_v52 }
 0x11f   : > { %v835_v62 = vmax.f32 %v775_v57, 0.0 }
 0x120   : > { %v851_v63 = vpack.c.bf16 %v837_v59, %v836_v58 }
 0x121   : > { %v850_v0 = vpack.c.bf16 %v835_v62, %v834_v61  ;;  %v2207_v1 = vpop.f32.mrb[20].mxu0  ;;  %2232 = vmatpush3.bf16.msra.mxu1 %v2440_v52  ;;  %v2449_v61 = vld [vmem:[%s2973_s3] sm:$0xff]  }
 0x122   : > { %v796_v2 = vadd.f32 %v2207_v1, %v2693_v49  ;;  %v787_v3 = vpop.f32.mrb[21].mxu0  ;;  %2281 = vmatprep.subr.bf16.mxu1 %v2441_v60 }
 0x123   : > { %v788_v5 = vadd.f32 %v2693_v49, %v787_v3  ;;  %v2208_v6 = vpop.f32.mrb[22].mxu0  ;;  %2233 = vmatprep.mubr.bf16.mxu1 %v850_v0 }
 0x124   : > { %v799_v7 = vadd.f32 %v2208_v6, %v2693_v49  ;;  %v790_v8 = vpop.f32.mrb[23].mxu0  ;;  %2234 = vmatmul.mubr.bf16.vlgmr.msra.gmra.mrb[16].mxu1 %v851_v63  ;;  %v840_v10 = vmax.f32 %v796_v2, 0.0 }
 0x125   : > { %v791_v9 = vadd.f32 %v2693_v49, %v790_v8  ;;  %2282 = vmatpush3.bf16.msra.mxu1 %v2441_v60  ;;  %v838_v13 = vmax.f32 %v788_v5, 0.0  ;;  %v2450_v5 = vld [vmem:[%s2973_s3 + $0x8] sm:$0xff]  }
 0x126   : > { %v841_v11 = vmax.f32 %v799_v7, 0.0  ;;  %2283 = vmatprep.subr.bf16.mxu1 %v2442_v4 }
 0x127   : > { %v839_v14 = vmax.f32 %v791_v9, 0.0 }
 0x128   : > { %v853_v15 = vpack.c.bf16 %v841_v11, %v840_v10 }
 0x129   : > { %v852_v16 = vpack.c.bf16 %v839_v14, %v838_v13  ;;  %v2211_v17 = vpop.f32.mrb[24].mxu0  ;;  %2284 = vmatpush3.bf16.msra.mxu1 %v2442_v4  ;;  %v2451_v13 = vld [vmem:[%s2973_s3 + $0x10] sm:$0xff]  }
 0x12a   : > { %v812_v18 = vadd.f32 %v2211_v17, %v2693_v49  ;;  %v803_v19 = vpop.f32.mrb[25].mxu0  ;;  %2285 = vmatprep.subr.bf16.mxu1 %v2443_v12 }
 0x12b   : > { %v804_v21 = vadd.f32 %v2693_v49, %v803_v19  ;;  %v2212_v22 = vpop.f32.mrb[26].mxu0  ;;  %2237 = vmatprep.mubr.bf16.mxu1 %v852_v16 }
 0x12c   : > { %v815_v23 = vadd.f32 %v2212_v22, %v2693_v49  ;;  %v806_v24 = vpop.f32.mrb[27].mxu0  ;;  %2238 = vmatmul.mubr.bf16.gmra.mrb[20].mxu1 %v853_v15  ;;  %v844_v26 = vmax.f32 %v812_v18, 0.0 }
 0x12d   : > { %v807_v25 = vadd.f32 %v2693_v49, %v806_v24  ;;  %2286 = vmatpush3.bf16.msra.mxu1 %v2443_v12  ;;  %v842_v29 = vmax.f32 %v804_v21, 0.0  ;;  %v2452_v21 = vld [vmem:[%s2973_s3 + $0x18] sm:$0xff]  }
 0x12e   : > { %v845_v27 = vmax.f32 %v815_v23, 0.0  ;;  %2287 = vmatprep.subr.bf16.mxu1 %v2444_v20 }
 0x12f   : > { %v843_v30 = vmax.f32 %v807_v25, 0.0 }
 0x130   : > { %v855_v31 = vpack.c.bf16 %v845_v27, %v844_v26 }
 0x131   : > { %v854_v32 = vpack.c.bf16 %v843_v30, %v842_v29  ;;  %v2215_v33 = vpop.f32.mrb[28].mxu0  ;;  %2288 = vmatpush3.bf16.msra.mxu1 %v2444_v20  ;;  %v2453_v29 = vld [vmem:[%s2973_s3 + $0x20] sm:$0xff]  }
 0x132   : > { %v828_v34 = vadd.f32 %v2215_v33, %v2693_v49  ;;  %v819_v35 = vpop.f32.mrb[29].mxu0  ;;  %2289 = vmatprep.subr.bf16.mxu1 %v2445_v28 }
 0x133   : > { %v820_v37 = vadd.f32 %v2693_v49, %v819_v35  ;;  %v2216_v38 = vpop.f32.mrb[30].mxu0  ;;  %2241 = vmatprep.mubr.bf16.mxu1 %v854_v32 }
 0x134   : > { %v831_v39 = vadd.f32 %v2216_v38, %v2693_v49  ;;  %v822_v40 = vpop.f32.mrb[31].mxu0  ;;  %2242 = vmatmul.mubr.bf16.gmra.mrb[24].mxu1 %v855_v31  ;;  %v848_v42 = vmax.f32 %v828_v34, 0.0 }
 0x135   : > { %v823_v41 = vadd.f32 %v2693_v49, %v822_v40  ;;  %2290 = vmatpush3.bf16.msra.mxu1 %v2445_v28  ;;  %v846_v45 = vmax.f32 %v820_v37, 0.0  ;;  %v2454_v37 = vld [vmem:[%s2973_s3 + $0x28] sm:$0xff]  }
 0x136   : > { %v849_v43 = vmax.f32 %v831_v39, 0.0  ;;  %2291 = vmatprep.subr.bf16.mxu1 %v2446_v36 }
 0x137   : > { %v847_v46 = vmax.f32 %v823_v41, 0.0 }
 0x138   : > { %v857_v47 = vpack.c.bf16 %v849_v43, %v848_v42 }
 0x139   : > { %v856_v48 = vpack.c.bf16 %v847_v46, %v846_v45  ;;  %v2267_v50 = vpop.f32.mrb[32].mxu0  ;;  %2292 = vmatpush3.bf16.msra.mxu1 %v2446_v36  ;;  %v2455_v45 = vld [vmem:[%s2973_s3 + $0x30] sm:$0xff]  }
 0x13a   : > { %v1157_v51 = vadd.f32 %v2267_v50, %v2693_v49  ;;  %v1148_v52 = vpop.f32.mrb[33].mxu0  ;;  %2293 = vmatprep.subr.bf16.mxu1 %v2447_v44 }
 0x13b   : > { %v1149_v54 = vadd.f32 %v2693_v49, %v1148_v52  ;;  %2245 = vmatprep.mubr.bf16.mxu1 %v856_v48  ;;  %v2268_v55 = vpop.f32.mrb[34].mxu0 }
 0x13c   : > { %v1160_v56 = vadd.f32 %v2268_v55, %v2693_v49  ;;  %2246 = vmatmul.mubr.bf16.gmra.mrb[28].mxu1 %v857_v47  ;;  %v1151_v57 = vpop.f32.mrb[35].mxu0  ;;  %v1213_v59 = vmax.f32 %v1157_v51, 0.0 }
 0x13d   : > { %v1152_v58 = vadd.f32 %v2693_v49, %v1151_v57  ;;  %2294 = vmatpush3.bf16.msra.mxu1 %v2447_v44  ;;  %v1211_v62 = vmax.f32 %v1149_v54, 0.0  ;;  %v2456_v54 = vld [vmem:[%s2973_s3 + $0x38] sm:$0xff]  }
 0x13e   : > { %v1214_v60 = vmax.f32 %v1160_v56, 0.0  ;;  %2295 = vmatprep.subr.bf16.mxu1 %v2448_v53 }
 0x13f   : > { %v1212_v63 = vmax.f32 %v1152_v58, 0.0 }
 0x140   : > { %v1228_v0 = vpack.c.bf16 %v1214_v60, %v1213_v59 }
 0x141   : > { %v1227_v1 = vpack.c.bf16 %v1212_v63, %v1211_v62  ;;  %v2271_v2 = vpop.f32.mrb[36].mxu0  ;;  %2296 = vmatpush3.bf16.msra.mxu1 %v2448_v53 }
 0x142   : > { %v1173_v3 = vadd.f32 %v2271_v2, %v2693_v49  ;;  %v1164_v4 = vpop.f32.mrb[37].mxu0  ;;  %2345 = vmatprep.subr.bf16.mxu1 %v2449_v61 }
 0x143   : > { %v1165_v6 = vadd.f32 %v2693_v49, %v1164_v4  ;;  %v2272_v7 = vpop.f32.mrb[38].mxu0  ;;  %2297 = vmatprep.mubr.bf16.mxu1 %v1227_v1 }
 0x144   : > { %v1176_v8 = vadd.f32 %v2272_v7, %v2693_v49  ;;  %v1167_v9 = vpop.f32.mrb[39].mxu0  ;;  %2298 = vmatmul.mubr.bf16.vlgmr.msra.gmra.mrb[32].mxu1 %v1228_v0  ;;  %v1217_v11 = vmax.f32 %v1173_v3, 0.0 }
 0x145   : > { %v1168_v10 = vadd.f32 %v2693_v49, %v1167_v9  ;;  %2346 = vmatpush3.bf16.msra.mxu1 %v2449_v61  ;;  %v1215_v14 = vmax.f32 %v1165_v6, 0.0 }
 0x146   : > { %v1218_v12 = vmax.f32 %v1176_v8, 0.0  ;;  %2347 = vmatprep.subr.bf16.mxu1 %v2450_v5 }
 0x147   : > { %v1216_v15 = vmax.f32 %v1168_v10, 0.0 }
 0x148   : > { %v1230_v16 = vpack.c.bf16 %v1218_v12, %v1217_v11 }
 0x149   : > { %v1229_v17 = vpack.c.bf16 %v1216_v15, %v1215_v14  ;;  %v2275_v18 = vpop.f32.mrb[40].mxu0  ;;  %2348 = vmatpush3.bf16.msra.mxu1 %v2450_v5 }
 0x14a   : > { %v1189_v19 = vadd.f32 %v2275_v18, %v2693_v49  ;;  %v1180_v20 = vpop.f32.mrb[41].mxu0  ;;  %2349 = vmatprep.subr.bf16.mxu1 %v2451_v13 }
 0x14b   : > { %v1181_v22 = vadd.f32 %v2693_v49, %v1180_v20  ;;  %v2276_v23 = vpop.f32.mrb[42].mxu0  ;;  %2301 = vmatprep.mubr.bf16.mxu1 %v1229_v17 }
 0x14c   : > { %v1192_v24 = vadd.f32 %v2276_v23, %v2693_v49  ;;  %v1183_v25 = vpop.f32.mrb[43].mxu0  ;;  %2302 = vmatmul.mubr.bf16.gmra.mrb[36].mxu1 %v1230_v16  ;;  %v1221_v27 = vmax.f32 %v1189_v19, 0.0 }
 0x14d   : > { %v1184_v26 = vadd.f32 %v2693_v49, %v1183_v25  ;;  %2350 = vmatpush3.bf16.msra.mxu1 %v2451_v13  ;;  %v1219_v30 = vmax.f32 %v1181_v22, 0.0 }
 0x14e   : > { %v1222_v28 = vmax.f32 %v1192_v24, 0.0  ;;  %2351 = vmatprep.subr.bf16.mxu1 %v2452_v21 }
 0x14f   : > { %v1220_v31 = vmax.f32 %v1184_v26, 0.0 }
 0x150   : > { %v1232_v32 = vpack.c.bf16 %v1222_v28, %v1221_v27 }
 0x151   : > { %v1231_v33 = vpack.c.bf16 %v1220_v31, %v1219_v30  ;;  %v2279_v34 = vpop.f32.mrb[44].mxu0  ;;  %2352 = vmatpush3.bf16.msra.mxu1 %v2452_v21 }
 0x152   : > { %v1205_v35 = vadd.f32 %v2279_v34, %v2693_v49  ;;  %v1196_v36 = vpop.f32.mrb[45].mxu0  ;;  %2353 = vmatprep.subr.bf16.mxu1 %v2453_v29 }
 0x153   : > { %v1197_v38 = vadd.f32 %v2693_v49, %v1196_v36  ;;  %v2280_v39 = vpop.f32.mrb[46].mxu0  ;;  %2305 = vmatprep.mubr.bf16.mxu1 %v1231_v33 }
 0x154   : > { %v1208_v40 = vadd.f32 %v2280_v39, %v2693_v49  ;;  %v1199_v41 = vpop.f32.mrb[47].mxu0  ;;  %2306 = vmatmul.mubr.bf16.gmra.mrb[40].mxu1 %v1232_v32  ;;  %v1225_v43 = vmax.f32 %v1205_v35, 0.0 }
 0x155   : > { %v1200_v42 = vadd.f32 %v2693_v49, %v1199_v41  ;;  %2354 = vmatpush3.bf16.msra.mxu1 %v2453_v29  ;;  %v1223_v46 = vmax.f32 %v1197_v38, 0.0 }
 0x156   : > { %v1226_v44 = vmax.f32 %v1208_v40, 0.0  ;;  %2355 = vmatprep.subr.bf16.mxu1 %v2454_v37 }
 0x157   : > { %v1224_v47 = vmax.f32 %v1200_v42, 0.0 }
 0x158   : > { %v1234_v48 = vpack.c.bf16 %v1226_v44, %v1225_v43  ;;  %v2832_v44 = vld [vmem:[%s2974_s4] ss:$0 sm:$0xff] }
 0x159   : > { %v1233_v50 = vpack.c.bf16 %v1224_v47, %v1223_v46  ;;  %v2331_v51 = vpop.f32.mrb[48].mxu0  ;;  %2356 = vmatpush3.bf16.msra.mxu1 %v2454_v37 }
 0x15a   : > { %v1534_v52 = vadd.f32 %v2331_v51, %v2693_v49  ;;  %v1525_v53 = vpop.f32.mrb[49].mxu0  ;;  %2357 = vmatprep.subr.bf16.mxu1 %v2455_v45 }
 0x15b   : > { %v1526_v55 = vadd.f32 %v2693_v49, %v1525_v53  ;;  %2309 = vmatprep.mubr.bf16.mxu1 %v1233_v50  ;;  %v2332_v56 = vpop.f32.mrb[50].mxu0 }
 0x15c   : > { %v1537_v57 = vadd.f32 %v2332_v56, %v2693_v49  ;;  %2310 = vmatmul.mubr.bf16.gmra.mrb[44].mxu1 %v1234_v48  ;;  %v1528_v58 = vpop.f32.mrb[51].mxu0  ;;  %v1590_v60 = vmax.f32 %v1534_v52, 0.0 }
 0x15d   : > { %v1529_v59 = vadd.f32 %v2693_v49, %v1528_v58  ;;  %2358 = vmatpush3.bf16.msra.mxu1 %v2455_v45  ;;  %v1588_v62 = vmax.f32 %v1526_v55, 0.0 }
 0x15e   : > { %v1591_v61 = vmax.f32 %v1537_v57, 0.0  ;;  %2359 = vmatprep.subr.bf16.mxu1 %v2456_v54 }
 0x15f   : > { %v1589_v63 = vmax.f32 %v1529_v59, 0.0 }
 0x160   : > { %v1605_v0 = vpack.c.bf16 %v1591_v61, %v1590_v60 }
 0x161   : > { %v1604_v1 = vpack.c.bf16 %v1589_v63, %v1588_v62  ;;  %v2335_v2 = vpop.f32.mrb[52].mxu0  ;;  %2360 = vmatpush3.bf16.msra.mxu1 %v2456_v54 }
 0x162   : > { %v1550_v3 = vadd.f32 %v2335_v2, %v2693_v49  ;;  %v1541_v4 = vpop.f32.mrb[53].mxu0 }
 0x163   : > { %v1542_v5 = vadd.f32 %v2693_v49, %v1541_v4  ;;  %v2336_v6 = vpop.f32.mrb[54].mxu0  ;;  %2361 = vmatprep.mubr.bf16.mxu1 %v1604_v1 }
 0x164   : > { %v1553_v7 = vadd.f32 %v2336_v6, %v2693_v49  ;;  %v1544_v8 = vpop.f32.mrb[55].mxu0  ;;  %2362 = vmatmul.mubr.bf16.vlgmr.msra.gmra.mrb[48].mxu1 %v1605_v0  ;;  %v1594_v10 = vmax.f32 %v1550_v3, 0.0 }
 0x165   : > { %v1545_v9 = vadd.f32 %v2693_v49, %v1544_v8  ;;  %v1592_v12 = vmax.f32 %v1542_v5, 0.0 }
 0x166   : > { %v1595_v11 = vmax.f32 %v1553_v7, 0.0 }
 0x167   : > { %v1593_v13 = vmax.f32 %v1545_v9, 0.0 }
 0x168   : > { %v1607_v14 = vpack.c.bf16 %v1595_v11, %v1594_v10 }
 0x169   : > { %v1606_v15 = vpack.c.bf16 %v1593_v13, %v1592_v12  ;;  %v2339_v16 = vpop.f32.mrb[56].mxu0 }
 0x16a   : > { %v1566_v17 = vadd.f32 %v2339_v16, %v2693_v49  ;;  %v1557_v18 = vpop.f32.mrb[57].mxu0 }
 0x16b   : > { %v1558_v19 = vadd.f32 %v2693_v49, %v1557_v18  ;;  %v2340_v20 = vpop.f32.mrb[58].mxu0  ;;  %2365 = vmatprep.mubr.bf16.mxu1 %v1606_v15 }
 0x16c   : > { %v1569_v21 = vadd.f32 %v2340_v20, %v2693_v49  ;;  %v1560_v22 = vpop.f32.mrb[59].mxu0  ;;  %2366 = vmatmul.mubr.bf16.gmra.mrb[52].mxu1 %v1607_v14  ;;  %v1598_v24 = vmax.f32 %v1566_v17, 0.0 }
 0x16d   : > { %v1561_v23 = vadd.f32 %v2693_v49, %v1560_v22  ;;  %v1596_v26 = vmax.f32 %v1558_v19, 0.0 }
 0x16e   : > { %v1599_v25 = vmax.f32 %v1569_v21, 0.0 }
 0x16f   : > { %v1597_v27 = vmax.f32 %v1561_v23, 0.0 }
 0x170   : > { %v1609_v28 = vpack.c.bf16 %v1599_v25, %v1598_v24 }
 0x171   : > { %v1608_v29 = vpack.c.bf16 %v1597_v27, %v1596_v26  ;;  %v2343_v30 = vpop.f32.mrb[60].mxu0 }
 0x172   : > { %v1582_v31 = vadd.f32 %v2343_v30, %v2693_v49  ;;  %v1573_v32 = vpop.f32.mrb[61].mxu0 }
 0x173   : > { %v1574_v33 = vadd.f32 %v2693_v49, %v1573_v32  ;;  %v2344_v34 = vpop.f32.mrb[62].mxu0  ;;  %2369 = vmatprep.mubr.bf16.mxu1 %v1608_v29 }
 0x174   : > { %v1585_v35 = vadd.f32 %v2344_v34, %v2693_v49  ;;  %v1576_v36 = vpop.f32.mrb[63].mxu0  ;;  %2370 = vmatmul.mubr.bf16.gmra.mrb[56].mxu1 %v1609_v28  ;;  %v1602_v38 = vmax.f32 %v1582_v31, 0.0 }
 0x175   : > { %v1577_v37 = vadd.f32 %v2693_v49, %v1576_v36  ;;  %v1600_v40 = vmax.f32 %v1574_v33, 0.0 }
 0x176   : > { %v1603_v39 = vmax.f32 %v1585_v35, 0.0 }
 0x177   : > { %v1601_v41 = vmax.f32 %v1577_v37, 0.0 }
 0x178   : > { %v1611_v42 = vpack.c.bf16 %v1603_v39, %v1602_v38 }
 0x179   : > { %v1610_v43 = vpack.c.bf16 %v1601_v41, %v1600_v40 }
 0x17b   : > { %2373 = vmatprep.mubr.bf16.mxu1 %v1610_v43 }
 0x17c   : > { %2374 = vmatmul.mubr.bf16.gmra.mrb[60].mxu1 %v1611_v42 }
 0x1d7   : > { %v2171_v49 = vpop.f32.mrb[0].mxu1 }
 0x1d8   : > { %v596_v45 = vadd.f32 %v2171_v49, %v2832_v44  ;;  %v587_v46 = vpop.f32.mrb[1].mxu1 }
 0x1d9   : > { %v588_v47 = vadd.f32 %v2832_v44, %v587_v46  ;;  %v2172_v48 = vpop.f32.mrb[2].mxu1 }
 0x1da   : > { %652 = vst [vmem:[%s2837_s22 + $0x10] sm:$0xff] %v596_v45  ;;  %v599_v50 = vadd.f32 %v2172_v48, %v2832_v44  ;;  %v590_v51 = vpop.f32.mrb[3].mxu1 }
 0x1db   : > { %650 = vst [vmem:[%s2837_s22] sm:$0xff] %v588_v47  ;;  %v591_v52 = vadd.f32 %v2832_v44, %v590_v51 }
 0x1dc   : > { %653 = vst [vmem:[%s2837_s22 + $0x18] sm:$0xff] %v599_v50 }
 0x1dd   : > { %651 = vst [vmem:[%s2837_s22 + $0x8] sm:$0xff] %v591_v52 }
 0x1df   : > { %v2175_v53 = vpop.f32.mrb[4].mxu1 }
 0x1e0   : > { %v612_v54 = vadd.f32 %v2175_v53, %v2832_v44  ;;  %v603_v55 = vpop.f32.mrb[5].mxu1 }
 0x1e1   : > { %v604_v56 = vadd.f32 %v2832_v44, %v603_v55  ;;  %v2176_v57 = vpop.f32.mrb[6].mxu1 }
 0x1e2   : > { %656 = vst [vmem:[%s2837_s22 + $0x30] sm:$0xff] %v612_v54  ;;  %v615_v58 = vadd.f32 %v2176_v57, %v2832_v44  ;;  %v606_v59 = vpop.f32.mrb[7].mxu1 }
 0x1e3   : > { %654 = vst [vmem:[%s2837_s22 + $0x20] sm:$0xff] %v604_v56  ;;  %v607_v60 = vadd.f32 %v2832_v44, %v606_v59 }
 0x1e4   : > { %657 = vst [vmem:[%s2837_s22 + $0x38] sm:$0xff] %v615_v58 }
 0x1e5   : > { %655 = vst [vmem:[%s2837_s22 + $0x28] sm:$0xff] %v607_v60 }
 0x1e7   : > { %v2179_v61 = vpop.f32.mrb[8].mxu1 }
 0x1e8   : > { %v628_v62 = vadd.f32 %v2179_v61, %v2832_v44  ;;  %v619_v63 = vpop.f32.mrb[9].mxu1 }
 0x1e9   : > { %v620_v0 = vadd.f32 %v2832_v44, %v619_v63  ;;  %v2180_v1 = vpop.f32.mrb[10].mxu1 }
 0x1ea   : > { %660 = vst [vmem:[%s2837_s22 + $0x50] sm:$0xff] %v628_v62  ;;  %v631_v2 = vadd.f32 %v2180_v1, %v2832_v44  ;;  %v622_v3 = vpop.f32.mrb[11].mxu1 }
 0x1eb   : > { %658 = vst [vmem:[%s2837_s22 + $0x40] sm:$0xff] %v620_v0  ;;  %v623_v4 = vadd.f32 %v2832_v44, %v622_v3 }
 0x1ec   : > { %661 = vst [vmem:[%s2837_s22 + $0x58] sm:$0xff] %v631_v2 }
 0x1ed   : > { %659 = vst [vmem:[%s2837_s22 + $0x48] sm:$0xff] %v623_v4 }
 0x1ef   : > { %v2183_v5 = vpop.f32.mrb[12].mxu1 }
 0x1f0   : > { %v644_v6 = vadd.f32 %v2183_v5, %v2832_v44  ;;  %v635_v7 = vpop.f32.mrb[13].mxu1 }
 0x1f1   : > { %v636_v8 = vadd.f32 %v2832_v44, %v635_v7  ;;  %v2184_v9 = vpop.f32.mrb[14].mxu1 }
 0x1f2   : > { %664 = vst [vmem:[%s2837_s22 + $0x70] sm:$0xff] %v644_v6  ;;  %v647_v10 = vadd.f32 %v2184_v9, %v2832_v44  ;;  %v638_v11 = vpop.f32.mrb[15].mxu1 }
 0x1f3   : > { %662 = vst [vmem:[%s2837_s22 + $0x60] sm:$0xff] %v636_v8  ;;  %v639_v12 = vadd.f32 %v2832_v44, %v638_v11 }
 0x1f4   : > { %665 = vst [vmem:[%s2837_s22 + $0x78] sm:$0xff] %v647_v10 }
 0x1f5   : > { %663 = vst [vmem:[%s2837_s22 + $0x68] sm:$0xff] %v639_v12 }
 0x1f7   : > { %v2235_v13 = vpop.f32.mrb[16].mxu1 }
 0x1f8   : > { %v972_v14 = vadd.f32 %v2235_v13, %v2832_v44  ;;  %v963_v15 = vpop.f32.mrb[17].mxu1 }
 0x1f9   : > { %v964_v16 = vadd.f32 %v2832_v44, %v963_v15  ;;  %v2236_v17 = vpop.f32.mrb[18].mxu1 }
 0x1fa   : > { %1907 = vst [vmem:[%s2837_s22 + $0x90] sm:$0xff] %v972_v14  ;;  %v975_v18 = vadd.f32 %v2236_v17, %v2832_v44  ;;  %v966_v19 = vpop.f32.mrb[19].mxu1 }
 0x1fb   : > { %1905 = vst [vmem:[%s2837_s22 + $0x80] sm:$0xff] %v964_v16  ;;  %v967_v20 = vadd.f32 %v2832_v44, %v966_v19 }
 0x1fc   : > { %1908 = vst [vmem:[%s2837_s22 + $0x98] sm:$0xff] %v975_v18 }
 0x1fd   : > { %1906 = vst [vmem:[%s2837_s22 + $0x88] sm:$0xff] %v967_v20 }
 0x1ff   : > { %v2239_v21 = vpop.f32.mrb[20].mxu1 }
 0x200   : > { %v988_v22 = vadd.f32 %v2239_v21, %v2832_v44  ;;  %v979_v23 = vpop.f32.mrb[21].mxu1 }
 0x201   : > { %v980_v24 = vadd.f32 %v2832_v44, %v979_v23  ;;  %v2240_v25 = vpop.f32.mrb[22].mxu1 }
 0x202   : > { %1911 = vst [vmem:[%s2837_s22 + $0xb0] sm:$0xff] %v988_v22  ;;  %v991_v26 = vadd.f32 %v2240_v25, %v2832_v44  ;;  %v982_v27 = vpop.f32.mrb[23].mxu1 }
 0x203   : > { %1909 = vst [vmem:[%s2837_s22 + $0xa0] sm:$0xff] %v980_v24  ;;  %v983_v28 = vadd.f32 %v2832_v44, %v982_v27 }
 0x204   : > { %1912 = vst [vmem:[%s2837_s22 + $0xb8] sm:$0xff] %v991_v26 }
 0x205   : > { %1910 = vst [vmem:[%s2837_s22 + $0xa8] sm:$0xff] %v983_v28 }
 0x207   : > { %v2243_v29 = vpop.f32.mrb[24].mxu1 }
 0x208   : > { %v1004_v30 = vadd.f32 %v2243_v29, %v2832_v44  ;;  %v995_v31 = vpop.f32.mrb[25].mxu1 }
 0x209   : > { %v996_v32 = vadd.f32 %v2832_v44, %v995_v31  ;;  %v2244_v33 = vpop.f32.mrb[26].mxu1 }
 0x20a   : > { %1915 = vst [vmem:[%s2837_s22 + $0xd0] sm:$0xff] %v1004_v30  ;;  %v1007_v34 = vadd.f32 %v2244_v33, %v2832_v44  ;;  %v998_v35 = vpop.f32.mrb[27].mxu1 }
 0x20b   : > { %1913 = vst [vmem:[%s2837_s22 + $0xc0] sm:$0xff] %v996_v32  ;;  %v999_v36 = vadd.f32 %v2832_v44, %v998_v35 }
 0x20c   : > { %1916 = vst [vmem:[%s2837_s22 + $0xd8] sm:$0xff] %v1007_v34 }
 0x20d   : > { %1914 = vst [vmem:[%s2837_s22 + $0xc8] sm:$0xff] %v999_v36 }
 0x20f   : > { %v2247_v37 = vpop.f32.mrb[28].mxu1 }
 0x210   : > { %v1020_v38 = vadd.f32 %v2247_v37, %v2832_v44  ;;  %v1011_v39 = vpop.f32.mrb[29].mxu1 }
 0x211   : > { %v1012_v40 = vadd.f32 %v2832_v44, %v1011_v39  ;;  %v2248_v41 = vpop.f32.mrb[30].mxu1 }
 0x212   : > { %1919 = vst [vmem:[%s2837_s22 + $0xf0] sm:$0xff] %v1020_v38  ;;  %v1023_v42 = vadd.f32 %v2248_v41, %v2832_v44  ;;  %v1014_v43 = vpop.f32.mrb[31].mxu1 }
 0x213   : > { %1917 = vst [vmem:[%s2837_s22 + $0xe0] sm:$0xff] %v1012_v40  ;;  %v1015_v49 = vadd.f32 %v2832_v44, %v1014_v43 }
 0x214   : > { %1920 = vst [vmem:[%s2837_s22 + $0xf8] sm:$0xff] %v1023_v42 }
 0x215   : > { %1918 = vst [vmem:[%s2837_s22 + $0xe8] sm:$0xff] %v1015_v49 }
 0x217   : > { %v2299_v45 = vpop.f32.mrb[32].mxu1 }
 0x218   : > { %v1349_v46 = vadd.f32 %v2299_v45, %v2832_v44  ;;  %v1340_v47 = vpop.f32.mrb[33].mxu1 }
 0x219   : > { %v1341_v48 = vadd.f32 %v2832_v44, %v1340_v47  ;;  %v2300_v50 = vpop.f32.mrb[34].mxu1 }
 0x21a   : > { %1941 = vst [vmem:[%s2837_s22 + $0x110] sm:$0xff] %v1349_v46  ;;  %v1352_v51 = vadd.f32 %v2300_v50, %v2832_v44  ;;  %v1343_v52 = vpop.f32.mrb[35].mxu1 }
 0x21b   : > { %1939 = vst [vmem:[%s2837_s22 + $0x100] sm:$0xff] %v1341_v48  ;;  %v1344_v53 = vadd.f32 %v2832_v44, %v1343_v52 }
 0x21c   : > { %1942 = vst [vmem:[%s2837_s22 + $0x118] sm:$0xff] %v1352_v51 }
 0x21d   : > { %1940 = vst [vmem:[%s2837_s22 + $0x108] sm:$0xff] %v1344_v53 }
 0x21f   : > { %v2303_v54 = vpop.f32.mrb[36].mxu1 }
 0x220   : > { %v1365_v55 = vadd.f32 %v2303_v54, %v2832_v44  ;;  %v1356_v56 = vpop.f32.mrb[37].mxu1 }
 0x221   : > { %v1357_v57 = vadd.f32 %v2832_v44, %v1356_v56  ;;  %v2304_v58 = vpop.f32.mrb[38].mxu1 }
 0x222   : > { %1945 = vst [vmem:[%s2837_s22 + $0x130] sm:$0xff] %v1365_v55  ;;  %v1368_v59 = vadd.f32 %v2304_v58, %v2832_v44  ;;  %v1359_v60 = vpop.f32.mrb[39].mxu1 }
 0x223   : > { %1943 = vst [vmem:[%s2837_s22 + $0x120] sm:$0xff] %v1357_v57  ;;  %v1360_v61 = vadd.f32 %v2832_v44, %v1359_v60 }
 0x224   : > { %1946 = vst [vmem:[%s2837_s22 + $0x138] sm:$0xff] %v1368_v59 }
 0x225   : > { %1944 = vst [vmem:[%s2837_s22 + $0x128] sm:$0xff] %v1360_v61 }
 0x227   : > { %v2307_v62 = vpop.f32.mrb[40].mxu1 }
 0x228   : > { %v1381_v63 = vadd.f32 %v2307_v62, %v2832_v44  ;;  %v1372_v0 = vpop.f32.mrb[41].mxu1 }
 0x229   : > { %v1373_v1 = vadd.f32 %v2832_v44, %v1372_v0  ;;  %v2308_v2 = vpop.f32.mrb[42].mxu1 }
 0x22a   : > { %1949 = vst [vmem:[%s2837_s22 + $0x150] sm:$0xff] %v1381_v63  ;;  %v1384_v3 = vadd.f32 %v2308_v2, %v2832_v44  ;;  %v1375_v4 = vpop.f32.mrb[43].mxu1 }
 0x22b   : > { %1947 = vst [vmem:[%s2837_s22 + $0x140] sm:$0xff] %v1373_v1  ;;  %v1376_v5 = vadd.f32 %v2832_v44, %v1375_v4 }
 0x22c   : > { %1950 = vst [vmem:[%s2837_s22 + $0x158] sm:$0xff] %v1384_v3 }
 0x22d   : > { %1948 = vst [vmem:[%s2837_s22 + $0x148] sm:$0xff] %v1376_v5 }
 0x22f   : > { %v2311_v6 = vpop.f32.mrb[44].mxu1 }
 0x230   : > { %v1397_v7 = vadd.f32 %v2311_v6, %v2832_v44  ;;  %v1388_v8 = vpop.f32.mrb[45].mxu1 }
 0x231   : > { %v1389_v9 = vadd.f32 %v2832_v44, %v1388_v8  ;;  %v2312_v10 = vpop.f32.mrb[46].mxu1 }
 0x232   : > { %1953 = vst [vmem:[%s2837_s22 + $0x170] sm:$0xff] %v1397_v7  ;;  %v1400_v11 = vadd.f32 %v2312_v10, %v2832_v44  ;;  %v1391_v12 = vpop.f32.mrb[47].mxu1 }
 0x233   : > { %1951 = vst [vmem:[%s2837_s22 + $0x160] sm:$0xff] %v1389_v9  ;;  %v1392_v13 = vadd.f32 %v2832_v44, %v1391_v12 }
 0x234   : > { %1954 = vst [vmem:[%s2837_s22 + $0x178] sm:$0xff] %v1400_v11 }
 0x235   : > { %1952 = vst [vmem:[%s2837_s22 + $0x168] sm:$0xff] %v1392_v13 }
 0x237   : > { %v2363_v14 = vpop.f32.mrb[48].mxu1 }
 0x238   : > { %v1726_v15 = vadd.f32 %v2363_v14, %v2832_v44  ;;  %v1717_v16 = vpop.f32.mrb[49].mxu1 }
 0x239   : > { %v1718_v17 = vadd.f32 %v2832_v44, %v1717_v16  ;;  %v2364_v18 = vpop.f32.mrb[50].mxu1 }
 0x23a   : > { %1975 = vst [vmem:[%s2837_s22 + $0x190] sm:$0xff] %v1726_v15  ;;  %v1729_v19 = vadd.f32 %v2364_v18, %v2832_v44  ;;  %v1720_v20 = vpop.f32.mrb[51].mxu1 }
 0x23b   : > { %1973 = vst [vmem:[%s2837_s22 + $0x180] sm:$0xff] %v1718_v17  ;;  %v1721_v21 = vadd.f32 %v2832_v44, %v1720_v20 }
 0x23c   : > { %1976 = vst [vmem:[%s2837_s22 + $0x198] sm:$0xff] %v1729_v19 }
 0x23d   : > { %1974 = vst [vmem:[%s2837_s22 + $0x188] sm:$0xff] %v1721_v21 }
 0x23f   : > { %v2367_v22 = vpop.f32.mrb[52].mxu1 }
 0x240   : > { %v1742_v23 = vadd.f32 %v2367_v22, %v2832_v44  ;;  %v1733_v24 = vpop.f32.mrb[53].mxu1 }
 0x241   : > { %v1734_v25 = vadd.f32 %v2832_v44, %v1733_v24  ;;  %v2368_v26 = vpop.f32.mrb[54].mxu1 }
 0x242   : > { %1979 = vst [vmem:[%s2837_s22 + $0x1b0] sm:$0xff] %v1742_v23  ;;  %v1745_v27 = vadd.f32 %v2368_v26, %v2832_v44  ;;  %v1736_v28 = vpop.f32.mrb[55].mxu1 }
 0x243   : > { %1977 = vst [vmem:[%s2837_s22 + $0x1a0] sm:$0xff] %v1734_v25  ;;  %v1737_v29 = vadd.f32 %v2832_v44, %v1736_v28 }
 0x244   : > { %1980 = vst [vmem:[%s2837_s22 + $0x1b8] sm:$0xff] %v1745_v27 }
 0x245   : > { %1978 = vst [vmem:[%s2837_s22 + $0x1a8] sm:$0xff] %v1737_v29 }
 0x247   : > { %v2371_v30 = vpop.f32.mrb[56].mxu1 }
 0x248   : > { %v1758_v31 = vadd.f32 %v2371_v30, %v2832_v44  ;;  %v1749_v32 = vpop.f32.mrb[57].mxu1 }
 0x249   : > { %v1750_v33 = vadd.f32 %v2832_v44, %v1749_v32  ;;  %v2372_v34 = vpop.f32.mrb[58].mxu1 }
 0x24a   : > { %1983 = vst [vmem:[%s2837_s22 + $0x1d0] sm:$0xff] %v1758_v31  ;;  %v1761_v35 = vadd.f32 %v2372_v34, %v2832_v44  ;;  %v1752_v36 = vpop.f32.mrb[59].mxu1 }
 0x24b   : > { %1981 = vst [vmem:[%s2837_s22 + $0x1c0] sm:$0xff] %v1750_v33  ;;  %v1753_v37 = vadd.f32 %v2832_v44, %v1752_v36 }
 0x24c   : > { %1984 = vst [vmem:[%s2837_s22 + $0x1d8] sm:$0xff] %v1761_v35 }
 0x24d   : > { %1982 = vst [vmem:[%s2837_s22 + $0x1c8] sm:$0xff] %v1753_v37 }
 0x24f   : > { %v2375_v38 = vpop.f32.mrb[60].mxu1 }
 0x250   : > { %v1774_v39 = vadd.f32 %v2375_v38, %v2832_v44  ;;  %v1765_v40 = vpop.f32.mrb[61].mxu1 }
 0x251   : > { %v1766_v41 = vadd.f32 %v2832_v44, %v1765_v40  ;;  %v2376_v42 = vpop.f32.mrb[62].mxu1 }
 0x252   : > { %1987 = vst [vmem:[%s2837_s22 + $0x1f0] sm:$0xff] %v1774_v39  ;;  %v1777_v43 = vadd.f32 %v2376_v42, %v2832_v44  ;;  %v1768_v49 = vpop.f32.mrb[63].mxu1 }
 0x253   : > { %1985 = vst [vmem:[%s2837_s22 + $0x1e0] sm:$0xff] %v1766_v41  ;;  %v1769_v45 = vadd.f32 %v2832_v44, %v1768_v49 }
 0x254   : > { %1988 = vst [vmem:[%s2837_s22 + $0x1f8] sm:$0xff] %v1777_v43 }
 0x255   : > { %1986 = vst [vmem:[%s2837_s22 + $0x1e8] sm:$0xff] %v1769_v45 }
 0x256 PF: > { %s15_s18 = sadd.s32 1, %s2463_s18  }
 0x257   : > { %p12_p4 = scmp.ge.s32.totalorder %s15_s18, 4  }
 0x259   :  { %14 = sbr.rel (!%p12_p4) target bundleno = 1 (0x1), region = 73 }

// kernel: res_mask_head_forward.5
= control target key start
LH: loop header
LB: loop body
LE: loop exit
PB: predicated region body
PF: predicated region fallthrough
CT: control target
= control target key end

     0   :  { %s4738_s24 = smov 0   ;;  %s5480_s0 = inlined_call_operand.vmem [shape: bf16[2,8,16,128], index: 0, kind: input, shape index: {}]   ;;  %s5481_s1 = inlined_call_operand.vmem [shape: bf16[128,128], index: 1, kind: input, shape index: {}]   ;;  %s5482_s2 = inlined_call_operand.vmem [shape: f32[1,128], index: 2, kind: input, shape index: {}]   ;;  %s5483_s3 = inlined_call_operand.vmem [shape: bf16[9,128,128], index: 3, kind: input, shape index: {}]   ;;  %s5484_s4 = inlined_call_operand.vmem [shape: f32[1,128], index: 4, kind: input, shape index: {}]   ;;  %s5485_s5 = inlined_call_operand.vmem [shape: bf16[128,128], index: 5, kind: input, shape index: {}]   ;;  %s5486_s6 = inlined_call_operand.vmem [shape: f32[1,128], index: 6, kind: input, shape index: {}]   ;;  %s5487_s7 = inlined_call_operand.vmem [shape: bf16[2,8,16,128], index: 7, kind: output, shape index: {}]  }
   0x1 LB: > { %s3591_s25 = sadd.s32 4294967295, %s4694_s24   ;;  %p3595_p0 = scmp.ge.s32.totalorder %s4694_s24, 1  ;;  %s4694_s24 = sphi %s4738_s24, %s17_s24  }
   0x2   : > { %p237_p1 = scmp.lt.s32.totalorder %s4694_s24, 3 }
   0x4   : > { %p238_p2 = pnand %p3595_p0, %p237_p1 }
   0x5   : > { %v4576_v0 = vld [vmem:[%s5481_s1] sm:$0xff] (!%p238_p2)   ;;  %p269_p3 = scmp.lt.s32.totalorder (!%p238_p2), %s3591_s25, 1  ;;  %v4577_v1 = vld [vmem:[%s5481_s1 + $0x8] sm:$0xff] (!%p238_p2)   ;;  %v4578_v2 = vld [vmem:[%s5481_s1 + $0x10] sm:$0xff] (!%p238_p2)   ;;  %v4696_v26 = vmov (!%p238_p2), 0   ;;  %v4697_v44 = vmov (!%p238_p2), 0.0  }
   0x6   : > { %241 = sbr.rel (%p238_p2) target bundleno = 910 (0x38e), region = 48  ;;  %4086 = vmatprep.subr.bf16.mxu0 (!%p238_p2), %v4576_v0  ;;  %v4579_v3 = vld [vmem:[%s5481_s1 + $0x18] sm:$0xff] (!%p238_p2)   ;;  %v4580_v5 = vld [vmem:[%s5481_s1 + $0x20] sm:$0xff] (!%p238_p2)   ;;  %v4581_v6 = vld [vmem:[%s5481_s1 + $0x28] sm:$0xff] (!%p238_p2)   ;;  %561 = vst [vmem:[#allocation2] sm:$0xff] (!%p238_p2), %v4696_v26  ;;  %vm573_vm0 = vcmask (!%p238_p2), 1043456  }
   0x7   : > { %4087 = vmatpush3.bf16.msra.mxu0 (!%p238_p2), %v4576_v0  ;;  %v4582_v7 = vld [vmem:[%s5481_s1 + $0x30] sm:$0xff] (!%p238_p2)   ;;  %v4583_v8 = vld [vmem:[%s5481_s1 + $0x38] sm:$0xff] (!%p238_p2)   ;;  %v4592_v11 = vld [vmem:[%s5483_s3] sm:$0xff] (!%p238_p2)   ;;  %562 = vst [vmem:[#allocation2 + $0x8] sm:$0xf] (!%p238_p2), %v4696_v26 }
   0x8   : > { %4088 = vmatprep.subr.bf16.mxu0 (!%p238_p2), %v4577_v1  ;;  %v4593_v12 = vld [vmem:[%s5483_s3 + $0x8] sm:$0xff] (!%p238_p2)   ;;  %v4594_v18 = vld [vmem:[%s5483_s3 + $0xc0] sm:$0xff] (!%p238_p2)   ;;  %v4595_v20 = vld [vmem:[%s5483_s3 + $0x10] sm:$0xff] (!%p238_p2)   ;;  %563 = vst [vmem:[#allocation2 + $0x48] sm:$0xf0] (!%p238_p2), %v4696_v26 }
   0x9   : > { %4214 = vmatprep.subr.bf16.mxu1 (!%p238_p2), %v4594_v18  ;;  %v4596_v19 = vld [vmem:[%s5483_s3 + $0xc8] sm:$0xff] (!%p238_p2)   ;;  %v4598_v21 = vld [vmem:[%s5483_s3 + $0xd0] sm:$0xff] (!%p238_p2)   ;;  %v4597_v22 = vld [vmem:[%s5483_s3 + $0x18] sm:$0xff] (!%p238_p2)   ;;  %564 = vst [vmem:[#allocation2 + $0x50] sm:$0xff] (!%p238_p2), %v4696_v26  ;;  %vm632_vm1 = vsmask.f32 (!%p238_p2), 4352 }
   0xa   : > { %4215 = vmatpush3.bf16.msra.mxu1 (!%p238_p2), %v4594_v18  ;;  %v4600_v23 = vld [vmem:[%s5483_s3 + $0xd8] sm:$0xff] (!%p238_p2)   ;;  %v4599_v24 = vld [vmem:[%s5483_s3 + $0x20] sm:$0xff] (!%p238_p2)   ;;  %v4601_v27 = vld [vmem:[%s5483_s3 + $0x28] sm:$0xff] (!%p238_p2)   ;;  %vm1161_vm2 = vsmask.f32 (!%p238_p2), 3328 }
   0xb   : > { %4089 = vmatpush3.bf16.msra.mxu0 (!%p238_p2), %v4577_v1  ;;  %4216 = vmatprep.subr.bf16.mxu1 (!%p238_p2), %v4596_v19  ;;  %v4602_v25 = vld [vmem:[%s5483_s3 + $0xe0] sm:$0xff] (!%p238_p2)   ;;  %v4604_v28 = vld [vmem:[%s5483_s3 + $0xe8] sm:$0xff] (!%p238_p2)   ;;  %v4603_v29 = vld [vmem:[%s5483_s3 + $0x30] sm:$0xff] (!%p238_p2)  }
   0xc   : > { %4090 = vmatprep.subr.bf16.mxu0 (!%p238_p2), %v4578_v2  ;;  %v4606_v30 = vld [vmem:[%s5483_s3 + $0xf0] sm:$0xff] (!%p238_p2)   ;;  %v4605_v31 = vld [vmem:[%s5483_s3 + $0x38] sm:$0xff] (!%p238_p2)   ;;  %v4839_v33 = vld [vmem:[%s5483_s3 + $0x40] sm:$0xff] (!%p238_p2)  }
   0xd   : > { %s5489_s25 = smov (!%p269_p3, %s3591_s25), 1  ;;  %v4608_v32 = vld [vmem:[%s5483_s3 + $0xf8] sm:$0xff]   ;;  %v4844_v34 = vld [vmem:[%s5483_s3 + $0x100] sm:$0xff]  }
   0xe   : > { %s3845_s9 = sshll.u32 %s5489_s25, 6  ;;  %4217 = vmatpush3.bf16.msra.mxu1 %v4596_v19  ;;  %v4851_v35 = vld [vmem:[%s5482_s2] ss:$0 sm:$0xff]  ;;  %v607_v46 = vld [vmem:[#allocation2] sm:$0xf8] }
   0xf   : > { %s4763_s12 = scalar_lea.vmem %s5480_s0, %s3845_s9  ;;  %4091 = vmatpush3.bf16.msra.mxu0 %v4578_v2  ;;  %4218 = vmatprep.subr.bf16.mxu1 %v4598_v21  ;;  %v634_v51 = vshrl.u32 %v607_v46, 16  ;;  %v637_v52 = vshll.u32 %v607_v46, 16  ;;  %s5450_s20 = scalar_lea.vmem %s5487_s7, %s3845_s9 }
  0x10   : > { %v280_v4 = vld [vmem:[%s4763_s12] sm:$0xff]   ;;  %4092 = vmatprep.subr.bf16.mxu0 %v4579_v3  ;;  %v282_v9 = vld [vmem:[%s4763_s12 + $0x8] sm:$0xff]   ;;  %v284_v10 = vld [vmem:[%s4763_s12 + $0x10] sm:$0xff]  }
  0x11   : > { %4102 = vmatprep.mubr.bf16.mxu0 %v280_v4  ;;  %v286_v13 = vld [vmem:[%s4763_s12 + $0x18] sm:$0xff]   ;;  %v288_v14 = vld [vmem:[%s4763_s12 + $0x20] sm:$0xff]   ;;  %v290_v15 = vld [vmem:[%s4763_s12 + $0x28] sm:$0xff]   ;;  %v636_v63 = vrot.slane %v634_v51, 3  ;;  %v639_v0 = vrot.slane %v637_v52, 4 }
  0x12   : > { %v292_v16 = vld [vmem:[%s4763_s12 + $0x30] sm:$0xff]   ;;  %v294_v17 = vld [vmem:[%s4763_s12 + $0x38] sm:$0xff]   ;;  %4219 = vmatpush3.bf16.msra.mxu1 %v4598_v21 }
  0x13   : > { %4093 = vmatpush3.bf16.msra.mxu0 %v4579_v3  ;;  %4220 = vmatprep.subr.bf16.mxu1 %v4600_v23 }
  0x14   : > { %4094 = vmatprep.subr.bf16.mxu0 %v4580_v5 }
  0x16   : > { %4221 = vmatpush3.bf16.msra.mxu1 %v4600_v23 }
  0x17   : > { %4095 = vmatpush3.bf16.msra.mxu0 %v4580_v5  ;;  %4222 = vmatprep.subr.bf16.mxu1 %v4602_v25 }
  0x18   : > { %4096 = vmatprep.subr.bf16.mxu0 %v4581_v6 }
  0x1a   : > { %4223 = vmatpush3.bf16.msra.mxu1 %v4602_v25 }
  0x1b   : > { %4097 = vmatpush3.bf16.msra.mxu0 %v4581_v6  ;;  %4224 = vmatprep.subr.bf16.mxu1 %v4604_v28 }
  0x1c   : > { %4098 = vmatprep.subr.bf16.mxu0 %v4582_v7 }
  0x1e   : > { %4225 = vmatpush3.bf16.msra.mxu1 %v4604_v28 }
  0x1f   : > { %4099 = vmatpush3.bf16.msra.mxu0 %v4582_v7  ;;  %4226 = vmatprep.subr.bf16.mxu1 %v4606_v30 }
  0x20   : > { %4100 = vmatprep.subr.bf16.mxu0 %v4583_v8 }
  0x22   : > { %4227 = vmatpush3.bf16.msra.mxu1 %v4606_v30 }
  0x23   : > { %4101 = vmatpush3.bf16.msra.mxu0 %v4583_v8  ;;  %4228 = vmatprep.subr.bf16.mxu1 %v4608_v32 }
  0x24   : > { %4118 = vmatprep.subr.bf16.mxu0 %v4592_v11 }
  0x26   : > { %4103 = vmatmul.mubr.bf16.vlgmr.msra.gmra.mrb[0].mxu0 %v282_v9  ;;  %4229 = vmatpush3.bf16.msra.mxu1 %v4608_v32 }
  0x27   : > { %4106 = vmatprep.mubr.bf16.mxu0 %v284_v10  ;;  %4119 = vmatpush3.bf16.msra.mxu0 %v4592_v11 }
  0x28   : > { %4120 = vmatprep.subr.bf16.mxu0 %v4593_v12  ;;  %4246 = vmatprep.subr.bf16.mxu1 %v4844_v34 }
  0x2b   : > { %4121 = vmatpush3.bf16.msra.mxu0 %v4593_v12 }
  0x2c   : > { %4122 = vmatprep.subr.bf16.mxu0 %v4595_v20 }
  0x2e   : > { %4107 = vmatmul.mubr.bf16.gmra.mrb[4].mxu0 %v286_v13 }
  0x2f   : > { %4110 = vmatprep.mubr.bf16.mxu0 %v288_v14  ;;  %4123 = vmatpush3.bf16.msra.mxu0 %v4595_v20  ;;  %v640_v14 = vor.u32 %v639_v0, %v636_v63 }
  0x30   : > { %4124 = vmatprep.subr.bf16.mxu0 %v4597_v22 }
  0x33   : > { %4125 = vmatpush3.bf16.msra.mxu0 %v4597_v22 }
  0x34   : > { %4126 = vmatprep.subr.bf16.mxu0 %v4599_v24 }
  0x36   : > { %4111 = vmatmul.mubr.bf16.gmra.mrb[8].mxu0 %v290_v15 }
  0x37   : > { %4114 = vmatprep.mubr.bf16.mxu0 %v292_v16  ;;  %4127 = vmatpush3.bf16.msra.mxu0 %v4599_v24 }
  0x38   : > { %4128 = vmatprep.subr.bf16.mxu0 %v4601_v27 }
  0x3b   : > { %4129 = vmatpush3.bf16.msra.mxu0 %v4601_v27 }
  0x3c   : > { %4130 = vmatprep.subr.bf16.mxu0 %v4603_v29 }
  0x3e   : > { %4115 = vmatmul.mubr.bf16.gmra.mrb[12].mxu0 %v294_v17 }
  0x3f   : > { %4131 = vmatpush3.bf16.msra.mxu0 %v4603_v29 }
  0x40   : > { %4132 = vmatprep.subr.bf16.mxu0 %v4605_v31 }
  0x43   : > { %4133 = vmatpush3.bf16.msra.mxu0 %v4605_v31 }
  0x44   : > { %4150 = vmatprep.subr.bf16.mxu0 %v4839_v33 }
  0xf9   : > { %v4104_v36 = vpop.f32.mrb[0].mxu0 }
  0xfa   : > { %v458_v37 = vadd.f32 %v4104_v36, %v4851_v35  ;;  %v449_v38 = vpop.f32.mrb[1].mxu0 }
  0xfb   : > { %v450_v39 = vadd.f32 %v4851_v35, %v449_v38  ;;  %v4105_v40 = vpop.f32.mrb[2].mxu0 }
  0xfc   : > { %v514_v41 = vmax.f32 %v458_v37, 0.0  ;;  %v452_v42 = vpop.f32.mrb[3].mxu0 }
  0xfd   : > { %v512_v43 = vmax.f32 %v450_v39, 0.0 }
  0xfe   : > { %v554_v45 = vpack.c.bf16 %v4697_v44, %v514_v41 }
  0xff   : > { %v553_v47 = vpack.c.bf16 %v4697_v44, %v512_v43 }
 0x100   : > { %v575_v48 = vrot.slane %v554_v45, 4 }
 0x101   : > { %v574_v49 = vrot.slane %v553_v47, 4  ;;  %v4108_v50 = vpop.f32.mrb[4].mxu0 }
 0x102   : > { %v474_v53 = vadd.f32 %v4108_v50, %v4851_v35  ;;  %v465_v54 = vpop.f32.mrb[5].mxu0 }
 0x103   : > { %v4859_v55 = vsel %vm573_vm0, %v574_v49, %v575_v48  ;;  %598 = vst [vmem:[#allocation2 + $0x8] sm:$0xf0] %v574_v49  ;;  %v466_v56 = vadd.f32 %v4851_v35, %v465_v54  ;;  %v4109_v57 = vpop.f32.mrb[6].mxu0 }
 0x104   : > { %599 = vst [vmem:[#allocation2 + $0x10] sm:$0xff] %v4859_v55  ;;  %v518_v58 = vmax.f32 %v474_v53, 0.0  ;;  %v468_v59 = vpop.f32.mrb[7].mxu0  ;;  %v651_v60 = vshrl.u32 %v4859_v55, 16  ;;  %v654_v61 = vshll.u32 %v4859_v55, 16  ;;  %v4609_v57 = vld [vmem:[%s5483_s3 + $0x48] sm:$0xff]  }
 0x105   : > { %v516_v62 = vmax.f32 %v466_v56, 0.0 }
 0x106   : > { %v556_v1 = vpack.c.bf16 %v4697_v44, %v518_v58  ;;  %v653_v2 = vrot.slane %v651_v60, 3  ;;  %v656_v3 = vrot.slane %v654_v61, 4  ;;  %v1182_v4 = vrot.slane %v651_v60, 4 }
 0x107   : > { %v555_v5 = vpack.c.bf16 %v4697_v44, %v516_v62  ;;  %v1185_v6 = vrot.slane %v654_v61, 5 }
 0x108   : > { %v579_v7 = vrot.slane %v556_v1, 4  ;;  %v657_v15 = vor.u32 %v656_v3, %v653_v2  ;;  %v4612_v2 = vld [vmem:[%s5483_s3 + $0x108] sm:$0xff]  }
 0x109   : > { %v577_v8 = vrot.slane %v555_v5, 4  ;;  %v4112_v9 = vpop.f32.mrb[8].mxu0  ;;  %v4867_v10 = vor.u32 %v1185_v6, %v1182_v4 }
 0x10a   : > { %v490_v11 = vadd.f32 %v4112_v9, %v4851_v35  ;;  %v481_v12 = vpop.f32.mrb[9].mxu0  ;;  %v4870_v13 = vld [vmem:[#allocation2 + $0x8] sm:$0xff]  ;;  %v4611_v9 = vld [vmem:[%s5483_s3 + $0x50] sm:$0xff]  }
 0x10b   : > { %v1443_v16 = vld [vmem:[#allocation2 + $0x8] sm:$0xf8]  ;;  %v4873_v17 = vsel %vm573_vm0, %v575_v48, %v577_v8  ;;  %v4876_v18 = vsel %vm573_vm0, %v577_v8, %v579_v7  ;;  %v482_v19 = vadd.f32 %v4851_v35, %v481_v12  ;;  %v4113_v20 = vpop.f32.mrb[10].mxu0  ;;  %v642_v21 = vshrl.u32 %v4870_v13, 16 }
 0x10c   : > { %600 = vst [vmem:[#allocation2 + $0x18] sm:$0xff] %v4873_v17  ;;  %601 = vst [vmem:[#allocation2 + $0x20] sm:$0xff] %v4876_v18  ;;  %v522_v22 = vmax.f32 %v490_v11, 0.0  ;;  %v484_v23 = vpop.f32.mrb[11].mxu0  ;;  %v645_v24 = vshll.u32 %v4870_v13, 16  ;;  %v1470_v25 = vshrl.u32 %v1443_v16, 16 }
 0x10d   : > { %v1473_v26 = vshll.u32 %v1443_v16, 16  ;;  %v520_v27 = vmax.f32 %v482_v19, 0.0  ;;  %v644_v28 = vrot.slane %v642_v21, 3  ;;  %v660_v29 = vshrl.u32 %v4873_v17, 16  ;;  %v4614_v20 = vld [vmem:[%s5483_s3 + $0x110] sm:$0xff]  }
 0x10e   : > { %v663_v30 = vshll.u32 %v4873_v17, 16  ;;  %v4888_v31 = vpack.c.bf16 %v4697_v44, %v522_v22  ;;  %v647_v32 = vrot.slane %v645_v24, 4  ;;  %v1472_v36 = vrot.slane %v1470_v25, 3 }
 0x10f   : > { %v1475_v37 = vrot.slane %v1473_v26, 4  ;;  %v557_v38 = vpack.c.bf16 %v4697_v44, %v520_v27  ;;  %v662_v39 = vrot.slane %v660_v29, 3  ;;  %v669_v41 = vshrl.u32 %v4876_v18, 16  ;;  %v4613_v27 = vld [vmem:[%s5483_s3 + $0x58] sm:$0xff]  }
 0x110   : > { %v665_v40 = vrot.slane %v663_v30, 4  ;;  %v583_v42 = vrot.slane %v4888_v31, 4  ;;  %v648_v43 = vor.u32 %v647_v32, %v644_v28  ;;  %v672_v46 = vshll.u32 %v4876_v18, 16  ;;  %v4616_v31 = vld [vmem:[%s5483_s3 + $0x118] sm:$0xff]  }
 0x111   : > { %v1476_v45 = vor.u32 %v1475_v37, %v1472_v36  ;;  %v581_v47 = vrot.slane %v557_v38, 4  ;;  %v4116_v48 = vpop.f32.mrb[12].mxu0  ;;  %v671_v50 = vrot.slane %v669_v41, 3  ;;  %v4942_v23 = vrot.slane %v4859_v55, 4 }
 0x112   : > { %v666_v49 = vor.u32 %v665_v40, %v662_v39  ;;  %v506_v51 = vadd.f32 %v4116_v48, %v4851_v35  ;;  %v497_v52 = vpop.f32.mrb[13].mxu0  ;;  %v649_v53 = vsel %vm632_vm1, %v640_v14, %v648_v43  ;;  %v658_v54 = vsel %vm632_vm1, %v648_v43, %v657_v15  ;;  %v4615_v48 = vld [vmem:[%s5483_s3 + $0x60] sm:$0xff]  }
 0x113   : > { %v1485_v56 = vsel %vm632_vm1, %v1476_v45, %v657_v15  ;;  %v4908_v58 = vsel %vm573_vm0, %v579_v7, %v581_v47  ;;  %v4913_v59 = vsel %vm573_vm0, %v581_v47, %v583_v42  ;;  %v498_v60 = vadd.f32 %v4851_v35, %v497_v52  ;;  %4134 = vmatprep.mubr.bf16.mxu0 %v649_v53  ;;  %v4117_v61 = vpop.f32.mrb[14].mxu0 }
 0x114   : > { %4230 = vmatprep.mubr.bf16.mxu1 %v1485_v56  ;;  %v674_v62 = vrot.slane %v672_v46, 4  ;;  %602 = vst [vmem:[#allocation2 + $0x28] sm:$0xff] %v4908_v58  ;;  %603 = vst [vmem:[#allocation2 + $0x30] sm:$0xff] %v4913_v59  ;;  %v526_v63 = vmax.f32 %v506_v51, 0.0  ;;  %4135 = vmatmul.mubr.bf16.vlgmr.msra.gmra.mrb[16].mxu0 %v658_v54  ;;  %v500_v0 = vpop.f32.mrb[15].mxu0  ;;  %v667_v1 = vsel %vm632_vm1, %v657_v15, %v666_v49  ;;  %v678_v3 = vshrl.u32 %v4908_v58, 16 }
 0x115   : > { %v681_v35 = vshll.u32 %v4908_v58, 16  ;;  %v524_v4 = vmax.f32 %v498_v60, 0.0  ;;  %4151 = vmatpush3.bf16.msra.mxu0 %v4839_v33  ;;  %4138 = vmatprep.mubr.bf16.mxu0 %v667_v1  ;;  %v687_v6 = vshrl.u32 %v4913_v59, 16  ;;  %v690_v7 = vshll.u32 %v4913_v59, 16  ;;  %v4618_v56 = vld [vmem:[%s5483_s3 + $0x120] sm:$0xff]  }
 0x116   : > { %v675_v5 = vor.u32 %v674_v62, %v671_v50  ;;  %v560_v8 = vpack.c.bf16 %v4697_v44, %v526_v63  ;;  %4152 = vmatprep.subr.bf16.mxu0 %v4609_v57  ;;  %4231 = vmatmul.mubr.bf16.vlgmr.msra.gmra.mrb[0].mxu1 %v667_v1  ;;  %v680_v11 = vrot.slane %v678_v3, 3  ;;  %v924_v26 = vrot.slane %v4876_v18, 4  ;;  %v4617_v62 = vld [vmem:[%s5483_s3 + $0x68] sm:$0xff]  }
 0x117   : > { %v683_v33 = vrot.slane %v681_v35, 4  ;;  %v559_v12 = vpack.c.bf16 %v4697_v44, %v524_v4  ;;  %4247 = vmatpush3.bf16.msra.mxu1 %v4844_v34  ;;  %v689_v15 = vrot.slane %v687_v6, 3  ;;  %v692_v16 = vrot.slane %v690_v7, 4  ;;  %v882_v7 = vld [vmem:[#allocation2] sm:$0xf0] }
 0x118   : > { %v676_v14 = vsel %vm632_vm1, %v666_v49, %v675_v5  ;;  %v587_v19 = vrot.slane %v560_v8, 4  ;;  %4248 = vmatprep.subr.bf16.mxu1 %v4612_v2  ;;  %v922_v34 = vrot.slane %v4873_v17, 4  ;;  %v926_v32 = vrot.slane %v4908_v58, 4  ;;  %v4620_v8 = vld [vmem:[%s5483_s3 + $0x128] sm:$0xff]   ;;  %v4621_v17 = vld [vmem:[%s5483_s3 + $0x78] sm:$0xff]  }
 0x119   : > { %4234 = vmatprep.mubr.bf16.mxu1 %v676_v14  ;;  %v684_v22 = vor.u32 %v683_v33, %v680_v11  ;;  %v585_v25 = vrot.slane %v559_v12, 4  ;;  %4153 = vmatpush3.bf16.msra.mxu0 %v4609_v57  ;;  %v693_v44 = vor.u32 %v692_v16, %v689_v15  ;;  %v928_v55 = vrot.slane %v4913_v59, 4  ;;  %v1750_v16 = vld [vmem:[#allocation2 + $0x8] sm:$0xf0] }
 0x11a   : > { %606 = vst [vmem:[#allocation2 + $0x48] sm:$0xf] %v587_v19  ;;  %4154 = vmatprep.subr.bf16.mxu0 %v4611_v9  ;;  %v4963_v38 = vsel %vm573_vm0, %v4942_v23, %v922_v34  ;;  %v4975_v43 = vsel %vm573_vm0, %v922_v34, %v924_v26  ;;  %v4978_v45 = vsel %vm573_vm0, %v924_v26, %v926_v32  ;;  %v917_v15 = vrot.slane %v882_v7, 4 }
 0x11b   : > { %v685_v28 = vsel %vm632_vm1, %v675_v5, %v684_v22  ;;  %v4955_v36 = vsel %vm573_vm0, %v583_v42, %v585_v25  ;;  %v4958_v37 = vsel %vm573_vm0, %v585_v25, %v587_v19  ;;  %4249 = vmatpush3.bf16.msra.mxu1 %v4612_v2  ;;  %v694_v18 = vsel %vm632_vm1, %v684_v22, %v693_v44 }
 0x11c   : > { %604 = vst [vmem:[#allocation2 + $0x38] sm:$0xff] %v4955_v36  ;;  %605 = vst [vmem:[#allocation2 + $0x40] sm:$0xff] %v4958_v37  ;;  %4139 = vmatmul.mubr.bf16.gmra.mrb[20].mxu0 %v676_v14  ;;  %4250 = vmatprep.subr.bf16.mxu1 %v4614_v20  ;;  %v696_v39 = vshrl.u32 %v4955_v36, 16  ;;  %v699_v40 = vshll.u32 %v4955_v36, 16  ;;  %v1532_v41 = vshrl.u32 %v4958_v37, 16  ;;  %v1535_v42 = vshll.u32 %v4958_v37, 16 }
 0x11d   : > { %4155 = vmatpush3.bf16.msra.mxu0 %v4611_v9  ;;  %4142 = vmatprep.mubr.bf16.mxu0 %v685_v28  ;;  %v4981_v46 = vsel %vm573_vm0, %v926_v32, %v928_v55  ;;  %v4984_v47 = vrot.slane %v4955_v36, 4  ;;  %v1798_v54 = vrot.slane %v4958_v37, 4  ;;  %v4619_v14 = vld [vmem:[%s5483_s3 + $0x70] sm:$0xff]   ;;  %v1191_v19 = vrot.slane %v660_v29, 4  ;;  %v4628_v36 = vld [vmem:[%s5483_s3 + $0x148] sm:$0xff]  }
 0x11e   : > { %4156 = vmatprep.subr.bf16.mxu0 %v4613_v27  ;;  %4235 = vmatmul.mubr.bf16.gmra.mrb[4].mxu1 %v685_v28  ;;  %v698_v49 = vrot.slane %v696_v39, 3  ;;  %v701_v50 = vrot.slane %v699_v40, 4  ;;  %v1534_v51 = vrot.slane %v1532_v41, 3  ;;  %v1537_v52 = vrot.slane %v1535_v42, 4 }
 0x11f   : > { %4251 = vmatpush3.bf16.msra.mxu1 %v4614_v20  ;;  %4238 = vmatprep.mubr.bf16.mxu1 %v694_v18  ;;  %v4995_v53 = vsel %vm573_vm0, %v928_v55, %v4984_v47  ;;  %v5005_v61 = vsel %vm573_vm0, %v4984_v47, %v1798_v54  ;;  %v1194_v20 = vrot.slane %v663_v30, 5  ;;  %v918_v25 = vrot.slane %v4870_v13, 4 }
 0x120   : > { %4252 = vmatprep.subr.bf16.mxu1 %v4616_v31  ;;  %v702_v57 = vor.u32 %v701_v50, %v698_v49  ;;  %v1538_v59 = vor.u32 %v1537_v52, %v1534_v51  ;;  %v1785_v29 = vrot.slane %v1750_v16, 4  ;;  %v1209_v30 = vrot.slane %v678_v3, 4  ;;  %v4625_v49 = vld [vmem:[%s5483_s3 + $0x88] sm:$0xff]   ;;  %v1135_v51 = vld [vmem:[#allocation2] sm:$0xf0] }
 0x121   : > { %4157 = vmatpush3.bf16.msra.mxu0 %v4613_v27  ;;  %v1451_v60 = vld [vmem:[#allocation2 + $0x48] sm:$0xf]  ;;  %v5026_v26 = vor.u32 %v1194_v20, %v1191_v19  ;;  %v1212_v28 = vrot.slane %v681_v35, 5  ;;  %v919_v55 = vsel %vm573_vm0, %v917_v15, %v918_v25  ;;  %v1227_v3 = vrot.slane %v696_v39, 4  ;;  %v4623_v35 = vld [vmem:[%s5483_s3 + $0x80] sm:$0xff]  }
 0x122   : > { %4158 = vmatprep.subr.bf16.mxu0 %v4615_v48  ;;  %v703_v63 = vsel %vm632_vm1, %v693_v44, %v702_v57  ;;  %v1539_v0 = vsel %vm632_vm1, %v702_v57, %v1538_v59  ;;  %v1541_v1 = vshrl.u32 %v1451_v60, 16  ;;  %v1544_v2 = vshll.u32 %v1451_v60, 16  ;;  %v4622_v44 = vld [vmem:[%s5483_s3 + $0x130] sm:$0xff]   ;;  %v4632_v60 = vld [vmem:[%s5483_s3 + $0x158] sm:$0xff]  }
 0x123   : > { %4253 = vmatpush3.bf16.msra.mxu1 %v4616_v31  ;;  %v615_v4 = vld [vmem:[#allocation2 + $0x40] sm:$0xf]  ;;  %v5039_v32 = vsel %vm1161_vm2, %v4867_v10, %v5026_v26  ;;  %v5045_v31 = vor.u32 %v1212_v28, %v1209_v30  ;;  %v1787_v41 = vsel %vm573_vm0, %v1785_v29, %v4942_v23  ;;  %v1230_v42 = vrot.slane %v699_v40, 5  ;;  %v4627_v40 = vld [vmem:[%s5483_s3 + $0x90] sm:$0xff]  }
 0x124   : > { %4143 = vmatmul.mubr.bf16.gmra.mrb[24].mxu0 %v694_v18  ;;  %4254 = vmatprep.subr.bf16.mxu1 %v4618_v56  ;;  %v705_v5 = vshrl.u32 %v615_v4, 16  ;;  %v708_v6 = vshll.u32 %v615_v4, 16  ;;  %v1543_v9 = vrot.slane %v1541_v1, 3  ;;  %v1546_v11 = vrot.slane %v1544_v2, 4  ;;  %v4624_v18 = vld [vmem:[%s5483_s3 + $0x138] sm:$0xff]   ;;  %v2004_v1 = vld [vmem:[#allocation2 + $0x10] sm:$0xff] }
 0x125   : > { %4159 = vmatpush3.bf16.msra.mxu0 %v4615_v48  ;;  %4146 = vmatprep.mubr.bf16.mxu0 %v703_v63  ;;  %v4626_v48 = vld [vmem:[%s5483_s3 + $0x140] sm:$0xff]   ;;  %v5060_v39 = vor.u32 %v1230_v42, %v1227_v3  ;;  %v921_v50 = vsel %vm573_vm0, %v918_v25, %v4942_v23  ;;  %v4630_v23 = vld [vmem:[%s5483_s3 + $0x150] sm:$0xff]   ;;  %v2038_v15 = vshrl.u32 %v2004_v1, 16  ;;  %v2041_v19 = vshll.u32 %v2004_v1, 16 }
 0x126   : > { %4160 = vmatprep.subr.bf16.mxu0 %v4617_v62  ;;  %4239 = vmatmul.mubr.bf16.gmra.mrb[8].mxu1 %v703_v63  ;;  %v707_v33 = vrot.slane %v705_v5, 3  ;;  %v710_v12 = vrot.slane %v708_v6, 4  ;;  %v1547_v34 = vor.u32 %v1546_v11, %v1543_v9  ;;  %v2878_v52 = vld [vmem:[#allocation2 + $0x50] sm:$0x1f]  ;;  %v5097_v5 = vld [vmem:[#allocation2 + $0x18] sm:$0xff]  ;;  %v1176_v28 = vrot.slane %v645_v24, 5 }
 0x127   : > { %4255 = vmatpush3.bf16.msra.mxu1 %v4618_v56  ;;  %4242 = vmatprep.mubr.bf16.mxu1 %v1539_v0  ;;  %v5082_v56 = vld [vmem:[#allocation2 + $0x20] sm:$0xff]  ;;  %v2968_v63 = vshrl.u32 %v2878_v52, 16  ;;  %v2003_v0 = vld [vmem:[#allocation2 + $0x8] sm:$0xf0]  ;;  %v2971_v6 = vshll.u32 %v2878_v52, 16  ;;  %v2345_v25 = vshrl.u32 %v5097_v5, 16 }
 0x128   : > { %v711_v22 = vor.u32 %v710_v12, %v707_v33  ;;  %4256 = vmatprep.subr.bf16.mxu1 %v4620_v8  ;;  %v1548_v58 = vsel %vm632_vm1, %v1538_v59, %v1547_v34  ;;  %v1166_v59 = vshll.u32 %v1135_v51, 16  ;;  %v1198_v2 = vshrl.u32 %v5082_v56, 16  ;;  %v5106_v33 = vld [vmem:[#allocation2 + $0x48] sm:$0xff]  ;;  %v890_v3 = vld [vmem:[#allocation2 + $0x40] sm:$0xf]  ;;  %v4635_v42 = vld [vmem:[%s5483_s3 + $0xb0] sm:$0xff]  }
 0x129   : > { %4161 = vmatpush3.bf16.msra.mxu0 %v4617_v62  ;;  %v5088_v62 = vld [vmem:[#allocation2 + $0x40] sm:$0xff]  ;;  %v1201_v4 = vshll.u32 %v5082_v56, 16  ;;  %v2030_v12 = vshrl.u32 %v2003_v0, 16  ;;  %v5111_v16 = vrot.slane %v2968_v63, 4  ;;  %v4633_v34 = vld [vmem:[%s5483_s3 + $0xa8] sm:$0xff]   ;;  %v2399_v29 = vshrl.u32 %v5106_v33, 16 }
 0x12a   : > { %v712_v27 = vsel %vm632_vm1, %v702_v57, %v711_v22  ;;  %4162 = vmatprep.subr.bf16.mxu0 %v4619_v14  ;;  %v1163_v57 = vshrl.u32 %v1135_v51, 16  ;;  %v2092_v9 = vshrl.u32 %v5088_v62, 16  ;;  %v2095_v11 = vshll.u32 %v5088_v62, 16 }
 0x12b   : > { %4257 = vmatpush3.bf16.msra.mxu1 %v4620_v8  ;;  %v5102_v8 = vrot.slane %v1166_v59, 5  ;;  %v1200_v20 = vrot.slane %v1198_v2, 4  ;;  %v1203_v22 = vrot.slane %v1201_v4, 5  ;;  %v2973_v30 = vrot.slane %v2971_v6, 5 }
 0x12c   : > { %4147 = vmatmul.mubr.bf16.gmra.mrb[28].mxu0 %v712_v27  ;;  %4258 = vmatprep.subr.bf16.mxu1 %v4622_v44  ;;  %v5100_v7 = vrot.slane %v1163_v57, 4  ;;  %v1173_v27 = vrot.slane %v642_v21, 4  ;;  %v2402_v21 = vshll.u32 %v5106_v33, 16  ;;  %v2961_v52 = vrot.slane %v2399_v29, 4 }
 0x12d   : > { %4163 = vmatpush3.bf16.msra.mxu0 %v4619_v14  ;;  %4166 = vmatprep.mubr.bf16.mxu0 %v919_v55  ;;  %v2033_v14 = vshll.u32 %v2003_v0, 16  ;;  %v4636_v55 = vld [vmem:[%s5483_s3 + $0x168] sm:$0xff]   ;;  %v4638_v0 = vld [vmem:[%s5483_s3 + $0x170] sm:$0xff]  }
 0x12e   : > { %4164 = vmatprep.subr.bf16.mxu0 %v4621_v17  ;;  %4243 = vmatmul.mubr.bf16.gmra.mrb[12].mxu1 %v1548_v58  ;;  %v2097_v58 = vrot.slane %v2095_v11, 5  ;;  %v2964_v59 = vrot.slane %v2402_v21, 5  ;;  %v1177_v63 = vor.u32 %v1176_v28, %v1173_v27  ;;  %v5189_v27 = vld [vmem:[#allocation2 + $0x30] sm:$0xff] }
 0x12f   : > { %4259 = vmatpush3.bf16.msra.mxu1 %v4622_v44  ;;  %4262 = vmatprep.mubr.bf16.mxu1 %v1787_v41  ;;  %v2870_v44 = vld [vmem:[#allocation2 + $0x10] sm:$0xf0]  ;;  %v2035_v41 = vrot.slane %v2033_v14, 5  ;;  %v1216_v28 = vshrl.u32 %v5189_v27, 16 }
 0x130   : > { %4260 = vmatprep.subr.bf16.mxu1 %v4624_v18  ;;  %v2897_v13 = vshrl.u32 %v2870_v44, 16  ;;  %v2900_v24 = vshll.u32 %v2870_v44, 16  ;;  %v2965_v6 = vor.u32 %v2964_v59, %v2961_v52 }
 0x131   : > { %4165 = vmatpush3.bf16.msra.mxu0 %v4621_v17  ;;  %v2348_v17 = vshll.u32 %v5097_v5, 16 }
 0x132   : > { %4182 = vmatprep.subr.bf16.mxu0 %v4623_v35 }
 0x133   : > { %4261 = vmatpush3.bf16.msra.mxu1 %v4624_v18  ;;  %v2094_v18 = vrot.slane %v2092_v9, 4  ;;  %v2910_v51 = vrot.slane %v2348_v17, 5 }
 0x134   : > { %4167 = vmatmul.mubr.bf16.vlgmr.msra.gmra.mrb[16].mxu0 %v921_v50  ;;  %4278 = vmatprep.subr.bf16.mxu1 %v4626_v48  ;;  %v5140_v50 = vor.u32 %v1203_v22, %v1200_v20  ;;  %v4639_v22 = vld [vmem:[%s5483_s3 + $0x178] sm:$0xff]  }
 0x135   : > { %4170 = vmatprep.mubr.bf16.mxu0 %v4963_v38  ;;  %4183 = vmatpush3.bf16.msra.mxu0 %v4623_v35  ;;  %v2032_v35 = vrot.slane %v2030_v12, 4  ;;  %v5150_v57 = vor.u32 %v2097_v58, %v2094_v18  ;;  %v1187_v18 = vsel %vm1161_vm2, %v1177_v63, %v4867_v10  ;;  %v4641_v58 = vld [vmem:[%s5483_s3 + $0x188] sm:$0xff]  }
 0x136   : > { %4184 = vmatprep.subr.bf16.mxu0 %v4625_v49  ;;  %4263 = vmatmul.mubr.bf16.vlgmr.msra.gmra.mrb[0].mxu1 %v4963_v38  ;;  %v4629_v38 = vld [vmem:[%s5483_s3 + $0x98] sm:$0xff]   ;;  %v2063_v10 = vsel %vm1161_vm2, %v5026_v26, %v5140_v50 }
 0x137   : > { %4279 = vmatpush3.bf16.msra.mxu1 %v4626_v48  ;;  %4266 = vmatprep.mubr.bf16.mxu1 %v4975_v43  ;;  %v2040_v48 = vrot.slane %v2038_v15, 4  ;;  %v2036_v12 = vor.u32 %v2035_v41, %v2032_v35 }
 0x138   : > { %4280 = vmatprep.subr.bf16.mxu1 %v4628_v36 }
 0x139   : > { %4185 = vmatpush3.bf16.msra.mxu0 %v4625_v49  ;;  %v2043_v49 = vrot.slane %v2041_v19, 5 }
 0x13a   : > { %4186 = vmatprep.subr.bf16.mxu0 %v4627_v40 }
 0x13b   : > { %4281 = vmatpush3.bf16.msra.mxu1 %v4628_v36  ;;  %v1758_v36 = vld [vmem:[#allocation2 + $0x48] sm:$0xf]  ;;  %v2044_v14 = vor.u32 %v2043_v49, %v2040_v48 }
 0x13c   : > { %4171 = vmatmul.mubr.bf16.gmra.mrb[20].mxu0 %v4975_v43  ;;  %4282 = vmatprep.subr.bf16.mxu1 %v4630_v23  ;;  %v4631_v43 = vld [vmem:[%s5483_s3 + $0xa0] sm:$0xff]  }
 0x13d   : > { %4174 = vmatprep.mubr.bf16.mxu0 %v4978_v45  ;;  %4187 = vmatpush3.bf16.msra.mxu0 %v4627_v40  ;;  %v2899_v40 = vrot.slane %v2897_v13, 4  ;;  %v2045_v44 = vsel %vm1161_vm2, %v2036_v12, %v2044_v14  ;;  %v1218_v13 = vrot.slane %v1216_v28, 4 }
 0x13e   : > { %4188 = vmatprep.subr.bf16.mxu0 %v4629_v38  ;;  %4267 = vmatmul.mubr.bf16.gmra.mrb[4].mxu1 %v4978_v45  ;;  %v4634_v45 = vld [vmem:[%s5483_s3 + $0x160] sm:$0xff]  }
 0x13f   : > { %4283 = vmatpush3.bf16.msra.mxu1 %v4630_v23  ;;  %4270 = vmatprep.mubr.bf16.mxu1 %v4981_v46  ;;  %v2902_v23 = vrot.slane %v2900_v24, 5  ;;  %v5217_v24 = vld [vmem:[#allocation2 + $0x38] sm:$0xff] }
 0x140   : > { %4284 = vmatprep.subr.bf16.mxu1 %v4632_v60  ;;  %v2083_v49 = vshrl.u32 %v5217_v24, 16 }
 0x141   : > { %4189 = vmatpush3.bf16.msra.mxu0 %v4629_v38  ;;  %v932_v38 = vrot.slane %v890_v3, 4  ;;  %v2903_v1 = vor.u32 %v2902_v23, %v2899_v40  ;;  %v2054_v3 = vsel %vm1161_vm2, %v2044_v14, %v5026_v26  ;;  %v2086_v26 = vshll.u32 %v5217_v24, 16  ;;  %v4643_v40 = vld [vmem:[%s5483_s3 + $0x198] sm:$0xff]   ;;  %v1143_v23 = vld [vmem:[#allocation2 + $0x40] sm:$0x1f] }
 0x142   : > { %4190 = vmatprep.subr.bf16.mxu0 %v4631_v43  ;;  %v2085_v52 = vrot.slane %v2083_v49, 4 }
 0x143   : > { %4285 = vmatpush3.bf16.msra.mxu1 %v4632_v60  ;;  %v1169_v60 = vor.u32 %v5102_v8, %v5100_v7  ;;  %v933_v15 = vsel %vm573_vm0, %v4984_v47, %v932_v38  ;;  %v2088_v38 = vrot.slane %v2086_v26, 5 }
 0x144   : > { %4175 = vmatmul.mubr.bf16.gmra.mrb[24].mxu0 %v4981_v46  ;;  %4286 = vmatprep.subr.bf16.mxu1 %v4634_v45  ;;  %v2907_v46 = vrot.slane %v2345_v25, 4 }
 0x145   : > { %4178 = vmatprep.mubr.bf16.mxu0 %v4995_v53  ;;  %4191 = vmatpush3.bf16.msra.mxu0 %v4631_v43  ;;  %v1178_v20 = vsel %vm1161_vm2, %v1169_v60, %v1177_v63  ;;  %v1237_v60 = vshll.u32 %v1143_v23, 16  ;;  %v2011_v63 = vld [vmem:[#allocation2 + $0x48] sm:$0x1f] }
 0x146   : > { %4192 = vmatprep.subr.bf16.mxu0 %v4633_v34  ;;  %4271 = vmatmul.mubr.bf16.gmra.mrb[8].mxu1 %v4995_v53  ;;  %v2974_v53 = vor.u32 %v2973_v30, %v5111_v16  ;;  %v2911_v43 = vor.u32 %v2910_v51, %v2907_v46  ;;  %v5174_v16 = vsel %vm1161_vm2, %v5150_v57, %v2965_v6  ;;  %v4640_v30 = vld [vmem:[%s5483_s3 + $0x180] sm:$0xff]   ;;  %v2104_v12 = vshll.u32 %v2011_v63, 16 }
 0x147   : > { %4287 = vmatpush3.bf16.msra.mxu1 %v4634_v45  ;;  %4274 = vmatprep.mubr.bf16.mxu1 %v5005_v61  ;;  %v1800_v61 = vrot.slane %v1758_v36, 4  ;;  %v4637_v45 = vld [vmem:[%s5483_s3 + $0xb8] sm:$0xff]   ;;  %v1214_v36 = vsel %vm1161_vm2, %v5140_v50, %v5045_v31 }
 0x148   : > { %4288 = vmatprep.subr.bf16.mxu1 %v4636_v55  ;;  %v5164_v7 = vsel %vm1161_vm2, %v2903_v1, %v2911_v43  ;;  %v5168_v8 = vsel %vm1161_vm2, %v2911_v43, %v5140_v50  ;;  %v5177_v19 = vsel %vm1161_vm2, %v2965_v6, %v2974_v53  ;;  %v1234_v53 = vshrl.u32 %v1143_v23, 16  ;;  %v2310_v1 = vld [vmem:[#allocation2 + $0x10] sm:$0xf8] }
 0x149   : > { %4193 = vmatpush3.bf16.msra.mxu0 %v4633_v34  ;;  %v1801_v47 = vsel %vm573_vm0, %v1798_v54, %v1800_v61  ;;  %v5187_v34 = vld [vmem:[#allocation2 + $0x28] sm:$0xff]  ;;  %v1239_v6 = vrot.slane %v1237_v60, 5  ;;  %v2383_v60 = vrot.slane %v2083_v49, 3 }
 0x14a   : > { %4194 = vmatprep.subr.bf16.mxu0 %v4635_v42  ;;  %v2065_v37 = vshrl.u32 %v5187_v34, 16  ;;  %v2068_v54 = vshll.u32 %v5187_v34, 16  ;;  %v1236_v61 = vrot.slane %v1234_v53, 4 }
 0x14b   : > { %4289 = vmatpush3.bf16.msra.mxu1 %v4636_v55  ;;  %v1219_v55 = vshll.u32 %v5189_v27, 16 }
 0x14c   : > { %4179 = vmatmul.mubr.bf16.gmra.mrb[28].mxu0 %v933_v15  ;;  %4290 = vmatprep.subr.bf16.mxu1 %v4638_v0  ;;  %v2067_v35 = vrot.slane %v2065_v37, 4  ;;  %v2070_v41 = vrot.slane %v2068_v54, 5  ;;  %v4645_v15 = vld [vmem:[%s5483_s3 + $0x1a8] sm:$0xff]   ;;  %v2368_v23 = vrot.slane %v2068_v54, 4  ;;  %v2374_v54 = vrot.slane %v1216_v28, 3 }
 0x14d   : > { %4195 = vmatpush3.bf16.msra.mxu0 %v4635_v42  ;;  %4198 = vmatprep.mubr.bf16.mxu0 %v1178_v20  ;;  %v4642_v42 = vld [vmem:[%s5483_s3 + $0x190] sm:$0xff]   ;;  %v2337_v20 = vshrl.u32 %v2310_v1, 16 }
 0x14e   : > { %4196 = vmatprep.subr.bf16.mxu0 %v4637_v45  ;;  %4275 = vmatmul.mubr.bf16.gmra.mrb[12].mxu1 %v1801_v47  ;;  %v2071_v48 = vor.u32 %v2070_v41, %v2067_v35  ;;  %v4646_v35 = vld [vmem:[%s5483_s3 + $0x1b0] sm:$0xff]  }
 0x14f   : > { %4291 = vmatpush3.bf16.msra.mxu1 %v4638_v0  ;;  %4294 = vmatprep.mubr.bf16.mxu1 %v2045_v44  ;;  %v2089_v0 = vor.u32 %v2088_v38, %v2085_v52  ;;  %v2347_v44 = vrot.slane %v2345_v25, 3  ;;  %v2339_v41 = vrot.slane %v2337_v20, 3  ;;  %v2377_v38 = vrot.slane %v1219_v55, 4  ;;  %v4653_v20 = vld [vmem:[%s5483_s3 + $0x1e8] sm:$0xff]  }
 0x150   : > { %4292 = vmatprep.subr.bf16.mxu1 %v4639_v22  ;;  %v5232_v51 = vsel %vm1161_vm2, %v5140_v50, %v2071_v48  ;;  %v4644_v50 = vld [vmem:[%s5483_s3 + $0x1a0] sm:$0xff]  }
 0x151   : > { %4197 = vmatpush3.bf16.msra.mxu0 %v4637_v45  ;;  %v2101_v45 = vshrl.u32 %v2011_v63, 16  ;;  %v4650_v63 = vld [vmem:[%s5483_s3 + $0x1d0] sm:$0xff]   ;;  %v2378_v28 = vor.u32 %v2377_v38, %v2374_v54  ;;  %v4664_v38 = vld [vmem:[%s5485_s5] sm:$0xff]  }
 0x152   : > { %4406 = vmatprep.subr.bf16.mxu0 %v4664_v38 }
 0x153   : > { %4293 = vmatpush3.bf16.msra.mxu1 %v4639_v22  ;;  %v2340_v22 = vshll.u32 %v2310_v1, 16  ;;  %v2395_v1 = vrot.slane %v2095_v11, 4 }
 0x154   : > { %4199 = vmatmul.mubr.bf16.vlgmr.msra.gmra.mrb[16].mxu0 %v1187_v18  ;;  %4310 = vmatprep.subr.bf16.mxu1 %v4640_v30  ;;  %v1240_v18 = vor.u32 %v1239_v6, %v1236_v61  ;;  %v2318_v61 = vld [vmem:[#allocation2 + $0x50] sm:$0xf]  ;;  %v4652_v6 = vld [vmem:[%s5483_s3 + $0x1e0] sm:$0xff]  }
 0x155   : > { %4202 = vmatprep.mubr.bf16.mxu0 %v5039_v32  ;;  %v1221_v32 = vrot.slane %v1219_v55, 5  ;;  %v4651_v55 = vld [vmem:[%s5483_s3 + $0x1d8] sm:$0xff]   ;;  %v2411_v11 = vshll.u32 %v2318_v61, 16  ;;  %4407 = vmatpush3.bf16.msra.mxu0 %v4664_v38 }
 0x156   : > { %4295 = vmatmul.mubr.bf16.vlgmr.msra.gmra.mrb[0].mxu1 %v2054_v3  ;;  %v2106_v3 = vrot.slane %v2104_v12, 5  ;;  %v1241_v25 = vsel %vm1161_vm2, %v5060_v39, %v1240_v18 }
 0x157   : > { %4311 = vmatpush3.bf16.msra.mxu1 %v4640_v30  ;;  %4298 = vmatprep.mubr.bf16.mxu1 %v2063_v10  ;;  %v1222_v46 = vor.u32 %v1221_v32, %v1218_v13  ;;  %v2350_v30 = vrot.slane %v2348_v17, 4 }
 0x158   : > { %4312 = vmatprep.subr.bf16.mxu1 %v4641_v58 }
 0x159   : > { %v5240_v59 = vsel %vm1161_vm2, %v2071_v48, %v1222_v46  ;;  %v1223_v43 = vsel %vm1161_vm2, %v5045_v31, %v1222_v46  ;;  %v1232_v14 = vsel %vm1161_vm2, %v1222_v46, %v5060_v39  ;;  %v5254_v47 = vsel %vm1161_vm2, %v1222_v46, %v2089_v0 }
 0x15a   : > { %v5259_v31 = vsel %vm1161_vm2, %v2089_v0, %v5150_v57  ;;  %v2351_v13 = vor.u32 %v2350_v30, %v2347_v44  ;;  %v2356_v46 = vrot.slane %v1198_v2, 3  ;;  %v2413_v30 = vrot.slane %v2411_v11, 4 }
 0x15b   : > { %4313 = vmatpush3.bf16.msra.mxu1 %v4641_v58  ;;  %v2103_v58 = vrot.slane %v2101_v45, 4  ;;  %v2401_v45 = vrot.slane %v2399_v29, 3 }
 0x15c   : > { %4203 = vmatmul.mubr.bf16.gmra.mrb[20].mxu0 %v2063_v10  ;;  %4314 = vmatprep.subr.bf16.mxu1 %v4642_v42  ;;  %v2342_v10 = vrot.slane %v2340_v22, 4 }
 0x15d   : > { %4206 = vmatprep.mubr.bf16.mxu0 %v1214_v36  ;;  %v2107_v32 = vor.u32 %v2106_v3, %v2103_v58  ;;  %v2359_v36 = vrot.slane %v1201_v4, 4  ;;  %v4649_v4 = vld [vmem:[%s5483_s3 + $0x1c8] sm:$0xff]   ;;  %v2617_v58 = vld [vmem:[#allocation2 + $0x10] sm:$0xf0]  ;;  %v2653_v3 = vrot.slane %v5097_v5, 4  ;;  %v2655_v5 = vrot.slane %v5082_v56, 4 }
 0x15e   : > { %4299 = vmatmul.mubr.bf16.gmra.mrb[4].mxu1 %v5232_v51  ;;  %v2343_v17 = vor.u32 %v2342_v10, %v2339_v41  ;;  %v4655_v41 = vld [vmem:[%s5483_s3 + $0x1f8] sm:$0xff]   ;;  %v4658_v56 = vld [vmem:[%s5483_s3 + $0x210] sm:$0xff]  }
 0x15f   : > { %4315 = vmatpush3.bf16.msra.mxu1 %v4642_v42  ;;  %4302 = vmatprep.mubr.bf16.mxu1 %v5240_v59  ;;  %v4647_v42 = vld [vmem:[%s5483_s3 + $0x1b8] sm:$0xff]   ;;  %v2108_v48 = vsel %vm1161_vm2, %v5150_v57, %v2107_v32  ;;  %v4648_v57 = vld [vmem:[%s5483_s3 + $0x1c0] sm:$0xff]   ;;  %v2360_v2 = vor.u32 %v2359_v36, %v2356_v46  ;;  %v2657_v32 = vrot.slane %v5187_v34, 4  ;;  %v2659_v34 = vrot.slane %v5189_v27, 4 }
 0x160   : > { %4316 = vmatprep.subr.bf16.mxu1 %v4643_v40  ;;  %v2352_v39 = vsel %vm632_vm1, %v2343_v17, %v2351_v13  ;;  %v4657_v17 = vld [vmem:[%s5483_s3 + $0x208] sm:$0xff]   ;;  %v2661_v46 = vrot.slane %v5217_v24, 4  ;;  %v4659_v36 = vld [vmem:[%s5483_s3 + $0x218] sm:$0xff]   ;;  %v4660_v27 = vld [vmem:[%s5483_s3 + $0x220] sm:$0xff]   ;;  %v2663_v24 = vrot.slane %v5088_v62, 4 }
 0x161   : > { %v4662_v62 = vld [vmem:[%s5483_s3 + $0x230] sm:$0xff]  }
 0x163   : > { %4317 = vmatpush3.bf16.msra.mxu1 %v4643_v40  ;;  %v2365_v40 = vrot.slane %v2065_v37, 3  ;;  %v2361_v37 = vsel %vm632_vm1, %v2351_v13, %v2360_v2 }
 0x164   : > { %4207 = vmatmul.mubr.bf16.gmra.mrb[24].mxu0 %v1223_v43  ;;  %4318 = vmatprep.subr.bf16.mxu1 %v4644_v50 }
 0x165   : > { %4210 = vmatprep.mubr.bf16.mxu0 %v1232_v14  ;;  %v2369_v52 = vor.u32 %v2368_v23, %v2365_v40  ;;  %v2408_v14 = vshrl.u32 %v2318_v61, 16  ;;  %v2662_v40 = vsel %vm573_vm0, %v2659_v34, %v2661_v46  ;;  %v2665_v23 = vrot.slane %v5106_v33, 4  ;;  %v4663_v33 = vld [vmem:[%s5483_s3 + $0x238] sm:$0xff]  }
 0x166   : > { %4303 = vmatmul.mubr.bf16.gmra.mrb[8].mxu1 %v5254_v47 }
 0x167   : > { %4319 = vmatpush3.bf16.msra.mxu1 %v4644_v50  ;;  %4306 = vmatprep.mubr.bf16.mxu1 %v5259_v31  ;;  %v2370_v53 = vsel %vm632_vm1, %v2360_v2, %v2369_v52  ;;  %v2386_v50 = vrot.slane %v2086_v26, 4  ;;  %v2379_v49 = vsel %vm632_vm1, %v2369_v52, %v2378_v28  ;;  %v2392_v26 = vrot.slane %v2092_v9, 3 }
 0x168   : > { %4320 = vmatprep.subr.bf16.mxu1 %v4645_v15  ;;  %v2404_v9 = vrot.slane %v2402_v21, 4  ;;  %v2410_v44 = vrot.slane %v2408_v14, 3  ;;  %v4654_v21 = vld [vmem:[%s5483_s3 + $0x1f0] sm:$0xff]   ;;  %v2664_v2 = vsel %vm573_vm0, %v2661_v46, %v2663_v24  ;;  %v2666_v52 = vsel %vm573_vm0, %v2663_v24, %v2665_v23  ;;  %v5412_v14 = vld [vmem:[%s5484_s4] ss:$0 sm:$0xff] }
 0x169   : > { %v2387_v0 = vor.u32 %v2386_v50, %v2383_v60  ;;  %v2396_v12 = vor.u32 %v2395_v1, %v2392_v26 }
 0x16a   : > { %v2414_v18 = vor.u32 %v2413_v30, %v2410_v44 }
 0x16b   : > { %4321 = vmatpush3.bf16.msra.mxu1 %v4645_v15  ;;  %v2388_v43 = vsel %vm632_vm1, %v2378_v28, %v2387_v0  ;;  %v2405_v15 = vor.u32 %v2404_v9, %v2401_v45  ;;  %v2397_v22 = vsel %vm632_vm1, %v2387_v0, %v2396_v12 }
 0x16c   : > { %4211 = vmatmul.mubr.bf16.gmra.mrb[28].mxu0 %v1241_v25  ;;  %4322 = vmatprep.subr.bf16.mxu1 %v4646_v35  ;;  %v4656_v25 = vld [vmem:[%s5483_s3 + $0x200] sm:$0xff]  }
 0x16d   : > { %v2406_v29 = vsel %vm632_vm1, %v2396_v12, %v2405_v15  ;;  %v2415_v10 = vsel %vm632_vm1, %v2405_v15, %v2414_v18 }
 0x16e   : > { %4307 = vmatmul.mubr.bf16.gmra.mrb[12].mxu1 %v2108_v48  ;;  %v2658_v48 = vsel %vm573_vm0, %v2655_v5, %v2657_v32 }
 0x16f   : > { %4323 = vmatpush3.bf16.msra.mxu1 %v4646_v35  ;;  %4326 = vmatprep.mubr.bf16.mxu1 %v2352_v39  ;;  %v2652_v35 = vrot.slane %v2617_v58, 4  ;;  %v2660_v39 = vsel %vm573_vm0, %v2657_v32, %v2659_v34 }
 0x170   : > { %4324 = vmatprep.subr.bf16.mxu1 %v4647_v42 }
 0x171   : > { %v2654_v13 = vsel %vm573_vm0, %v2652_v35, %v2653_v3 }
 0x173   : > { %4325 = vmatpush3.bf16.msra.mxu1 %v4647_v42  ;;  %v2656_v42 = vsel %vm573_vm0, %v2653_v3, %v2655_v5 }
 0x174   : > { %4342 = vmatprep.subr.bf16.mxu1 %v4648_v57 }
 0x176   : > { %4327 = vmatmul.mubr.bf16.vlgmr.msra.gmra.mrb[0].mxu1 %v2361_v37 }
 0x177   : > { %4343 = vmatpush3.bf16.msra.mxu1 %v4648_v57  ;;  %4330 = vmatprep.mubr.bf16.mxu1 %v2370_v53  ;;  %v4661_v57 = vld [vmem:[%s5483_s3 + $0x228] sm:$0xff]  }
 0x178   : > { %4344 = vmatprep.subr.bf16.mxu1 %v4649_v4  ;;  %v4665_v53 = vld [vmem:[%s5485_s5 + $0x8] sm:$0xff]  }
 0x179   : > { %4408 = vmatprep.subr.bf16.mxu0 %v4665_v53 }
 0x17a   : > { %4409 = vmatpush3.bf16.msra.mxu0 %v4665_v53 }
 0x17b   : > { %4345 = vmatpush3.bf16.msra.mxu1 %v4649_v4  ;;  %v2625_v4 = vld [vmem:[#allocation2 + $0x50] sm:$0xf] }
 0x17c   : > { %4346 = vmatprep.subr.bf16.mxu1 %v4650_v63  ;;  %v2667_v37 = vrot.slane %v2625_v4, 4 }
 0x17e   : > { %4331 = vmatmul.mubr.bf16.gmra.mrb[4].mxu1 %v2379_v49  ;;  %v2668_v54 = vsel %vm573_vm0, %v2665_v23, %v2667_v37 }
 0x17f   : > { %4347 = vmatpush3.bf16.msra.mxu1 %v4650_v63  ;;  %4334 = vmatprep.mubr.bf16.mxu1 %v2388_v43 }
 0x180   : > { %4348 = vmatprep.subr.bf16.mxu1 %v4651_v55 }
 0x183   : > { %4349 = vmatpush3.bf16.msra.mxu1 %v4651_v55 }
 0x184   : > { %4350 = vmatprep.subr.bf16.mxu1 %v4652_v6 }
 0x186   : > { %4335 = vmatmul.mubr.bf16.gmra.mrb[8].mxu1 %v2397_v22 }
 0x187   : > { %4351 = vmatpush3.bf16.msra.mxu1 %v4652_v6  ;;  %4338 = vmatprep.mubr.bf16.mxu1 %v2406_v29 }
 0x188   : > { %4352 = vmatprep.subr.bf16.mxu1 %v4653_v20 }
 0x18b   : > { %4353 = vmatpush3.bf16.msra.mxu1 %v4653_v20 }
 0x18c   : > { %4354 = vmatprep.subr.bf16.mxu1 %v4654_v21 }
 0x18e   : > { %4339 = vmatmul.mubr.bf16.gmra.mrb[12].mxu1 %v2415_v10 }
 0x18f   : > { %4355 = vmatpush3.bf16.msra.mxu1 %v4654_v21  ;;  %4358 = vmatprep.mubr.bf16.mxu1 %v2654_v13 }
 0x190   : > { %4356 = vmatprep.subr.bf16.mxu1 %v4655_v41 }
 0x193   : > { %4357 = vmatpush3.bf16.msra.mxu1 %v4655_v41 }
 0x194   : > { %4374 = vmatprep.subr.bf16.mxu1 %v4656_v25 }
 0x196   : > { %4359 = vmatmul.mubr.bf16.vlgmr.msra.gmra.mrb[0].mxu1 %v2656_v42 }
 0x197   : > { %4375 = vmatpush3.bf16.msra.mxu1 %v4656_v25  ;;  %4362 = vmatprep.mubr.bf16.mxu1 %v2658_v48 }
 0x198   : > { %4376 = vmatprep.subr.bf16.mxu1 %v4657_v17 }
 0x19b   : > { %4377 = vmatpush3.bf16.msra.mxu1 %v4657_v17 }
 0x19c   : > { %4378 = vmatprep.subr.bf16.mxu1 %v4658_v56 }
 0x19e   : > { %4363 = vmatmul.mubr.bf16.gmra.mrb[4].mxu1 %v2660_v39 }
 0x19f   : > { %4379 = vmatpush3.bf16.msra.mxu1 %v4658_v56  ;;  %4366 = vmatprep.mubr.bf16.mxu1 %v2662_v40 }
 0x1a0   : > { %4380 = vmatprep.subr.bf16.mxu1 %v4659_v36 }
 0x1a3   : > { %4381 = vmatpush3.bf16.msra.mxu1 %v4659_v36 }
 0x1a4   : > { %4382 = vmatprep.subr.bf16.mxu1 %v4660_v27 }
 0x1a6   : > { %4367 = vmatmul.mubr.bf16.gmra.mrb[8].mxu1 %v2664_v2 }
 0x1a7   : > { %4383 = vmatpush3.bf16.msra.mxu1 %v4660_v27  ;;  %4370 = vmatprep.mubr.bf16.mxu1 %v2666_v52 }
 0x1a8   : > { %4384 = vmatprep.subr.bf16.mxu1 %v4661_v57 }
 0x1ab   : > { %4385 = vmatpush3.bf16.msra.mxu1 %v4661_v57 }
 0x1ac   : > { %4386 = vmatprep.subr.bf16.mxu1 %v4662_v62 }
 0x1ae   : > { %4371 = vmatmul.mubr.bf16.gmra.mrb[12].mxu1 %v2668_v54 }
 0x1af   : > { %4387 = vmatpush3.bf16.msra.mxu1 %v4662_v62  ;;  %4390 = vmatprep.mubr.bf16.mxu1 %v5164_v7  ;;  %v4666_v7 = vld [vmem:[%s5485_s5 + $0x10] sm:$0xff]  }
 0x1b0   : > { %4388 = vmatprep.subr.bf16.mxu1 %v4663_v33  ;;  %4410 = vmatprep.subr.bf16.mxu0 %v4666_v7 }
 0x1b1   : > { %4411 = vmatpush3.bf16.msra.mxu0 %v4666_v7 }
 0x1b3   : > { %4389 = vmatpush3.bf16.msra.mxu1 %v4663_v33 }
 0x1b6   : > { %4391 = vmatmul.mubr.bf16.vlgmr.msra.gmra.mrb[0].mxu1 %v5168_v8  ;;  %v4667_v8 = vld [vmem:[%s5485_s5 + $0x18] sm:$0xff]  }
 0x1b7   : > { %4394 = vmatprep.mubr.bf16.mxu1 %v5232_v51  ;;  %4412 = vmatprep.subr.bf16.mxu0 %v4667_v8  ;;  %v4668_v51 = vld [vmem:[%s5485_s5 + $0x20] sm:$0xff]  }
 0x1b8   : > { %4413 = vmatpush3.bf16.msra.mxu0 %v4667_v8 }
 0x1b9   : > { %4414 = vmatprep.subr.bf16.mxu0 %v4668_v51 }
 0x1bc   : > { %4415 = vmatpush3.bf16.msra.mxu0 %v4668_v51 }
 0x1be   : > { %4395 = vmatmul.mubr.bf16.gmra.mrb[4].mxu1 %v5240_v59  ;;  %v4670_v59 = vld [vmem:[%s5485_s5 + $0x30] sm:$0xff]  }
 0x1bf   : > { %4398 = vmatprep.mubr.bf16.mxu1 %v5254_v47 }
 0x1c6   : > { %4399 = vmatmul.mubr.bf16.gmra.mrb[8].mxu1 %v5259_v31 }
 0x1c7   : > { %4402 = vmatprep.mubr.bf16.mxu1 %v5174_v16  ;;  %v4669_v16 = vld [vmem:[%s5485_s5 + $0x28] sm:$0xff]  }
 0x1c8   : > { %4416 = vmatprep.subr.bf16.mxu0 %v4669_v16 }
 0x1c9   : > { %4417 = vmatpush3.bf16.msra.mxu0 %v4669_v16 }
 0x1ca   : > { %4418 = vmatprep.subr.bf16.mxu0 %v4670_v59 }
 0x1cd   : > { %4419 = vmatpush3.bf16.msra.mxu0 %v4670_v59 }
 0x1ce   : > { %4403 = vmatmul.mubr.bf16.gmra.mrb[12].mxu1 %v5177_v19  ;;  %v4671_v19 = vld [vmem:[%s5485_s5 + $0x38] sm:$0xff]  }
 0x1cf   : > { %4420 = vmatprep.subr.bf16.mxu0 %v4671_v19 }
 0x1d1   : > { %4421 = vmatpush3.bf16.msra.mxu0 %v4671_v19 }
 0x227   : > { %v4200_v47 = vpop.f32.mrb[16].mxu0 }
 0x228   : > { %v1332_v31 = vpop.f32.mrb[17].mxu0 }
 0x229   : > { %v4201_v60 = vpop.f32.mrb[18].mxu0 }
 0x22a   : > { %v1335_v50 = vpop.f32.mrb[19].mxu0 }
 0x22f   : > { %v4204_v63 = vpop.f32.mrb[20].mxu0 }
 0x230   : > { %v1348_v28 = vpop.f32.mrb[21].mxu0 }
 0x231   : > { %v4205_v0 = vpop.f32.mrb[22].mxu0 }
 0x232   : > { %v1351_v55 = vpop.f32.mrb[23].mxu0 }
 0x237   : > { %v4208_v49 = vpop.f32.mrb[24].mxu0 }
 0x238   : > { %v1364_v26 = vpop.f32.mrb[25].mxu0 }
 0x239   : > { %v4209_v1 = vpop.f32.mrb[26].mxu0 }
 0x23a   : > { %v1367_v43 = vpop.f32.mrb[27].mxu0 }
 0x23f   : > { %v4212_v61 = vpop.f32.mrb[28].mxu0 }
 0x240   : > { %v5403_v6 = vpop.f32.mrb[29].mxu0 }
 0x241   : > { %v5405_v45 = vpop.f32.mrb[30].mxu0 }
 0x242   : > { %v5407_v9 = vpop.f32.mrb[31].mxu0 }
 0x289   : > { %v4392_v12 = vpop.f32.mrb[0].mxu1 }
 0x28a   : > { %v4438_v11 = vadd.f32 %v4392_v12, %v4200_v47  ;;  %v3066_v15 = vpop.f32.mrb[1].mxu1 }
 0x28b   : > { %v4439_v20 = vadd.f32 %v3066_v15, %v1332_v31  ;;  %v4393_v22 = vpop.f32.mrb[2].mxu1 }
 0x28c   : > { %v3202_v44 = vadd.f32 %v4438_v11, %v5412_v14  ;;  %v4440_v30 = vadd.f32 %v4393_v22, %v4201_v60  ;;  %v3069_v29 = vpop.f32.mrb[3].mxu1 }
 0x28d   : > { %v3200_v21 = vadd.f32 %v4439_v20, %v5412_v14  ;;  %v4441_v18 = vadd.f32 %v3069_v29, %v1335_v50 }
 0x28e   : > { %v3203_v58 = vadd.f32 %v4440_v30, %v5412_v14  ;;  %v3218_v35 = vmax.f32 %v3202_v44, 0.0 }
 0x28f   : > { %v3201_v3 = vadd.f32 %v4441_v18, %v5412_v14  ;;  %v3216_v10 = vmax.f32 %v3200_v21, 0.0 }
 0x290   : > { %v3219_v41 = vmax.f32 %v3203_v58, 0.0 }
 0x291   : > { %v3217_v13 = vmax.f32 %v3201_v3, 0.0  ;;  %v4396_v25 = vpop.f32.mrb[4].mxu1 }
 0x292   : > { %v3233_v5 = vpack.c.bf16 %v3219_v41, %v3218_v35  ;;  %v4442_v32 = vadd.f32 %v4396_v25, %v4204_v63  ;;  %v3082_v17 = vpop.f32.mrb[5].mxu1  ;;  %v4681_v35 = vld [vmem:[%s4763_s12] sm:$0xff]  }
 0x293   : > { %v4443_v42 = vadd.f32 %v3082_v17, %v1348_v28  ;;  %v4397_v48 = vpop.f32.mrb[6].mxu1  ;;  %v3232_v56 = vpack.c.bf16 %v3217_v13, %v3216_v10  ;;  %v3408_v41 = vunpack.c.l.bf16 %v4681_v35 }
 0x294   : > { %v3206_v34 = vadd.f32 %v4442_v32, %v5412_v14  ;;  %v4444_v46 = vadd.f32 %v4397_v48, %v4205_v0  ;;  %v3085_v36 = vpop.f32.mrb[7].mxu1 }
 0x295   : > { %v3204_v39 = vadd.f32 %v4443_v42, %v5412_v14  ;;  %v4445_v40 = vadd.f32 %v3085_v36, %v1351_v55  ;;  %4422 = vmatprep.mubr.bf16.mxu0 %v3232_v56 }
 0x296   : > { %v3207_v27 = vadd.f32 %v4444_v46, %v5412_v14  ;;  %4423 = vmatmul.mubr.bf16.vlgmr.msra.gmra.mrb[32].mxu0 %v3233_v5  ;;  %v3222_v23 = vmax.f32 %v3206_v34, 0.0  ;;  %v3409_v5 = vunpack.c.h.bf16 %v4681_v35 }
 0x297   : > { %v3205_v24 = vadd.f32 %v4445_v40, %v5412_v14  ;;  %v3220_v2 = vmax.f32 %v3204_v39, 0.0 }
 0x298   : > { %v3223_v57 = vmax.f32 %v3207_v27, 0.0 }
 0x299   : > { %v3221_v52 = vmax.f32 %v3205_v24, 0.0  ;;  %v4400_v4 = vpop.f32.mrb[8].mxu1  ;;  %v4682_v24 = vld [vmem:[%s4763_s12 + $0x18] sm:$0xff]  }
 0x29a   : > { %v4446_v62 = vadd.f32 %v4400_v4, %v4208_v49  ;;  %v3098_v37 = vpop.f32.mrb[9].mxu1  ;;  %v3235_v33 = vpack.c.bf16 %v3223_v57, %v3222_v23  ;;  %v3414_v23 = vunpack.c.l.bf16 %v4682_v24  ;;  %v4683_v4 = vld [vmem:[%s4763_s12 + $0x10] sm:$0xff]  }
 0x29b   : > { %v4447_v54 = vadd.f32 %v3098_v37, %v1364_v26  ;;  %v4401_v38 = vpop.f32.mrb[10].mxu1  ;;  %v3234_v53 = vpack.c.bf16 %v3221_v52, %v3220_v2 }
 0x29c   : > { %v3210_v7 = vadd.f32 %v4446_v62, %v5412_v14  ;;  %v4448_v8 = vadd.f32 %v4401_v38, %v4209_v1  ;;  %v3101_v51 = vpop.f32.mrb[11].mxu1  ;;  %v3412_v62 = vunpack.c.l.bf16 %v4683_v4  ;;  %v3415_v38 = vunpack.c.h.bf16 %v4682_v24 }
 0x29d   : > { %v3208_v16 = vadd.f32 %v4447_v54, %v5412_v14  ;;  %v4449_v59 = vadd.f32 %v3101_v51, %v1367_v43  ;;  %4426 = vmatprep.mubr.bf16.mxu0 %v3234_v53  ;;  %v3413_v51 = vunpack.c.h.bf16 %v4683_v4 }
 0x29e   : > { %v3211_v19 = vadd.f32 %v4448_v8, %v5412_v14  ;;  %4427 = vmatmul.mubr.bf16.gmra.mrb[36].mxu0 %v3235_v33  ;;  %v3226_v31 = vmax.f32 %v3210_v7, 0.0 }
 0x29f   : > { %v3209_v47 = vadd.f32 %v4449_v59, %v5412_v14  ;;  %v3224_v50 = vmax.f32 %v3208_v16, 0.0 }
 0x2a0   : > { %v3227_v60 = vmax.f32 %v3211_v19, 0.0 }
 0x2a1   : > { %v3225_v63 = vmax.f32 %v3209_v47, 0.0  ;;  %v4404_v28 = vpop.f32.mrb[12].mxu1 }
 0x2a2   : > { %v4450_v0 = vadd.f32 %v4404_v28, %v4212_v61  ;;  %v3114_v55 = vpop.f32.mrb[13].mxu1  ;;  %v3237_v49 = vpack.c.bf16 %v3227_v60, %v3226_v31 }
 0x2a3   : > { %v4451_v26 = vadd.f32 %v3114_v55, %v5403_v6  ;;  %v4405_v1 = vpop.f32.mrb[14].mxu1  ;;  %v3236_v12 = vpack.c.bf16 %v3225_v63, %v3224_v50 }
 0x2a4   : > { %v3214_v43 = vadd.f32 %v4450_v0, %v5412_v14  ;;  %v4452_v11 = vadd.f32 %v4405_v1, %v5405_v45  ;;  %v3117_v15 = vpop.f32.mrb[15].mxu1  ;;  %v5436_v45 = vld [vmem:[%s5486_s6] ss:$0 sm:$0xff]  ;;  %v4684_v0 = vld [vmem:[%s4763_s12 + $0x28] sm:$0xff]  }
 0x2a5   : > { %v3212_v20 = vadd.f32 %v4451_v26, %v5412_v14  ;;  %v4453_v22 = vadd.f32 %v3117_v15, %v5407_v9  ;;  %4430 = vmatprep.mubr.bf16.mxu0 %v3236_v12  ;;  %v4680_v9 = vld [vmem:[%s4763_s12 + $0x8] sm:$0xff]   ;;  %v3418_v55 = vunpack.c.l.bf16 %v4684_v0  ;;  %v4685_v12 = vld [vmem:[%s4763_s12 + $0x20] sm:$0xff]  }
 0x2a6   : > { %v3215_v61 = vadd.f32 %v4452_v11, %v5412_v14  ;;  %4431 = vmatmul.mubr.bf16.gmra.mrb[40].mxu0 %v3237_v49  ;;  %v3230_v6 = vmax.f32 %v3214_v43, 0.0  ;;  %v3410_v3 = vunpack.c.l.bf16 %v4680_v9  ;;  %v3411_v25 = vunpack.c.h.bf16 %v4680_v9 }
 0x2a7   : > { %v3213_v44 = vadd.f32 %v4453_v22, %v5412_v14  ;;  %v3228_v29 = vmax.f32 %v3212_v20, 0.0  ;;  %v3416_v43 = vunpack.c.l.bf16 %v4685_v12  ;;  %v3419_v22 = vunpack.c.h.bf16 %v4684_v0 }
 0x2a8   : > { %v3231_v30 = vmax.f32 %v3215_v61, 0.0 }
 0x2a9   : > { %v3229_v21 = vmax.f32 %v3213_v44, 0.0 }
 0x2aa   : > { %v3239_v18 = vpack.c.bf16 %v3231_v30, %v3230_v6  ;;  %v3417_v30 = vunpack.c.h.bf16 %v4685_v12 }
 0x2ab   : > { %v3238_v58 = vpack.c.bf16 %v3229_v21, %v3228_v29 }
 0x2ad   : > { %4434 = vmatprep.mubr.bf16.mxu0 %v3238_v58 }
 0x2ae   : > { %4435 = vmatmul.mubr.bf16.gmra.mrb[44].mxu0 %v3239_v18 }
 0x369   : > { %v4424_v10 = vpop.f32.mrb[32].mxu0 }
 0x36a   : > { %v3354_v14 = vadd.f32 %v4424_v10, %v5436_v45  ;;  %v3345_v13 = vpop.f32.mrb[33].mxu0 }
 0x36b   : > { %v3346_v32 = vadd.f32 %v5436_v45, %v3345_v13  ;;  %v4425_v17 = vpop.f32.mrb[34].mxu0 }
 0x36c   : > { %v3426_v42 = vadd.f32 %v3410_v3, %v3354_v14  ;;  %v3357_v48 = vadd.f32 %v4425_v17, %v5436_v45  ;;  %v3348_v56 = vpop.f32.mrb[35].mxu0  ;;  %v4686_v14 = vld [vmem:[%s4763_s12 + $0x38] sm:$0xff]   ;;  %v4687_v17 = vld [vmem:[%s4763_s12 + $0x30] sm:$0xff]  }
 0x36d   : > { %v3424_v34 = vadd.f32 %v3408_v41, %v3346_v32  ;;  %v3349_v46 = vadd.f32 %v5436_v45, %v3348_v56  ;;  %v3422_v13 = vunpack.c.l.bf16 %v4686_v14 }
 0x36e   : > { %v3427_v36 = vadd.f32 %v3411_v25, %v3357_v48  ;;  %v3442_v40 = vmax.f32 %v3426_v42, 0.0  ;;  %v3420_v42 = vunpack.c.l.bf16 %v4687_v17 }
 0x36f   : > { %v3425_v39 = vadd.f32 %v3409_v5, %v3349_v46  ;;  %v3440_v57 = vmax.f32 %v3424_v34, 0.0  ;;  %v3423_v46 = vunpack.c.h.bf16 %v4686_v14 }
 0x370   : > { %v3443_v27 = vmax.f32 %v3427_v36, 0.0 }
 0x371   : > { %v3441_v2 = vmax.f32 %v3425_v39, 0.0  ;;  %v4428_v52 = vpop.f32.mrb[36].mxu0 }
 0x372   : > { %v3871_v37 = vpack.c.bf16 %v3443_v27, %v3442_v40  ;;  %v3370_v33 = vadd.f32 %v4428_v52, %v5436_v45  ;;  %v3361_v54 = vpop.f32.mrb[37].mxu0  ;;  %v3421_v27 = vunpack.c.h.bf16 %v4687_v17 }
 0x373   : > { %v3866_v53 = vpack.c.bf16 %v3441_v2, %v3440_v57  ;;  %v3362_v7 = vadd.f32 %v5436_v45, %v3361_v54  ;;  %v4429_v8 = vpop.f32.mrb[38].mxu0 }
 0x374   : > { %3903 = vst [vmem:[%s5450_s20 + $0x8] sm:$0xff] %v3871_v37   ;;  %v3430_v16 = vadd.f32 %v3414_v23, %v3370_v33  ;;  %v3373_v59 = vadd.f32 %v4429_v8, %v5436_v45  ;;  %v3364_v19 = vpop.f32.mrb[39].mxu0 }
 0x375   : > { %3867 = vst [vmem:[%s5450_s20] sm:$0xff] %v3866_v53   ;;  %v3428_v47 = vadd.f32 %v3412_v62, %v3362_v7  ;;  %v3365_v31 = vadd.f32 %v5436_v45, %v3364_v19 }
 0x376   : > { %v3431_v60 = vadd.f32 %v3415_v38, %v3373_v59  ;;  %v3446_v63 = vmax.f32 %v3430_v16, 0.0 }
 0x377   : > { %v3429_v50 = vadd.f32 %v3413_v51, %v3365_v31  ;;  %v3444_v49 = vmax.f32 %v3428_v47, 0.0 }
 0x378   : > { %v3447_v28 = vmax.f32 %v3431_v60, 0.0 }
 0x379   : > { %v3445_v26 = vmax.f32 %v3429_v50, 0.0  ;;  %v4432_v1 = vpop.f32.mrb[40].mxu0 }
 0x37a   : > { %v3881_v11 = vpack.c.bf16 %v3447_v28, %v3446_v63  ;;  %v3386_v15 = vadd.f32 %v4432_v1, %v5436_v45  ;;  %v3377_v20 = vpop.f32.mrb[41].mxu0 }
 0x37b   : > { %v3876_v61 = vpack.c.bf16 %v3445_v26, %v3444_v49  ;;  %v3378_v44 = vadd.f32 %v5436_v45, %v3377_v20  ;;  %v4433_v6 = vpop.f32.mrb[42].mxu0 }
 0x37c   : > { %3905 = vst [vmem:[%s5450_s20 + $0x18] sm:$0xff] %v3881_v11   ;;  %v3434_v29 = vadd.f32 %v3418_v55, %v3386_v15  ;;  %v3389_v21 = vadd.f32 %v4433_v6, %v5436_v45  ;;  %v3380_v18 = vpop.f32.mrb[43].mxu0 }
 0x37d   : > { %3904 = vst [vmem:[%s5450_s20 + $0x10] sm:$0xff] %v3876_v61   ;;  %v3432_v58 = vadd.f32 %v3416_v43, %v3378_v44  ;;  %v3381_v9 = vadd.f32 %v5436_v45, %v3380_v18 }
 0x37e   : > { %v3435_v3 = vadd.f32 %v3419_v22, %v3389_v21  ;;  %v3450_v41 = vmax.f32 %v3434_v29, 0.0 }
 0x37f   : > { %v3433_v35 = vadd.f32 %v3417_v30, %v3381_v9  ;;  %v3448_v25 = vmax.f32 %v3432_v58, 0.0 }
 0x380   : > { %v3451_v10 = vmax.f32 %v3435_v3, 0.0 }
 0x381   : > { %v3449_v5 = vmax.f32 %v3433_v35, 0.0  ;;  %v4436_v32 = vpop.f32.mrb[44].mxu0 }
 0x382   : > { %v3891_v48 = vpack.c.bf16 %v3451_v10, %v3450_v41  ;;  %v3402_v56 = vadd.f32 %v4436_v32, %v5436_v45  ;;  %v3393_v34 = vpop.f32.mrb[45].mxu0 }
 0x383   : > { %v3886_v36 = vpack.c.bf16 %v3449_v5, %v3448_v25  ;;  %v3394_v39 = vadd.f32 %v5436_v45, %v3393_v34  ;;  %v4437_v40 = vpop.f32.mrb[46].mxu0 }
 0x384   : > { %3907 = vst [vmem:[%s5450_s20 + $0x28] sm:$0xff] %v3891_v48   ;;  %v3438_v24 = vadd.f32 %v3422_v13, %v3402_v56  ;;  %v3405_v23 = vadd.f32 %v4437_v40, %v5436_v45  ;;  %v3396_v57 = vpop.f32.mrb[47].mxu0 }
 0x385   : > { %3906 = vst [vmem:[%s5450_s20 + $0x20] sm:$0xff] %v3886_v36   ;;  %v3436_v2 = vadd.f32 %v3420_v42, %v3394_v39  ;;  %v3397_v52 = vadd.f32 %v5436_v45, %v3396_v57 }
 0x386   : > { %v3439_v4 = vadd.f32 %v3423_v46, %v3405_v23  ;;  %v3454_v37 = vmax.f32 %v3438_v24, 0.0 }
 0x387   : > { %v3437_v62 = vadd.f32 %v3421_v27, %v3397_v52  ;;  %v3452_v54 = vmax.f32 %v3436_v2, 0.0 }
 0x388   : > { %v3455_v33 = vmax.f32 %v3439_v4, 0.0 }
 0x389   : > { %v3453_v38 = vmax.f32 %v3437_v62, 0.0 }
 0x38a   : > { %v3901_v53 = vpack.c.bf16 %v3455_v33, %v3454_v37 }
 0x38b   : > { %v3896_v7 = vpack.c.bf16 %v3453_v38, %v3452_v54 }
 0x38c   : > { %3909 = vst [vmem:[%s5450_s20 + $0x38] sm:$0xff] %v3901_v53  }
 0x38d   : > { %3908 = vst [vmem:[%s5450_s20 + $0x30] sm:$0xff] %v3896_v7  }
 0x38e PF: > { %s17_s24 = sadd.s32 1, %s4694_s24  }
 0x38f   : > { %p14_p4 = scmp.ge.s32.totalorder %s17_s24, 4  }
 0x391   :  { %16 = sbr.rel (!%p14_p4) target bundleno = 1 (0x1), region = 86 }

// kernel: res_mask_head_forward.4
= control target key start
LH: loop header
LB: loop body
LE: loop exit
PB: predicated region body
PF: predicated region fallthrough
CT: control target
= control target key end

     0   :  { %14 = vsyncpa [#allocation5], 0  ;;  %s5008_s30 = smov 0   ;;  %s5621_s0 = inlined_call_operand.vmem [shape: bf16[2,8,16,128], index: 0, kind: input, shape index: {}]   ;;  %s5622_s1 = inlined_call_operand.vmem [shape: bf16[128,128], index: 1, kind: input, shape index: {}]   ;;  %s5623_s2 = inlined_call_operand.vmem [shape: f32[1,128], index: 2, kind: input, shape index: {}]   ;;  %s5624_s3 = inlined_call_operand.hbm [shape: bf16[9,128,128], index: 3, kind: input, shape index: {}]   ;;  %s5625_s4 = inlined_call_operand.vmem [shape: f32[1,128], index: 4, kind: input, shape index: {}]   ;;  %s5626_s5 = inlined_call_operand.vmem [shape: bf16[128,128], index: 5, kind: input, shape index: {}]   ;;  %s5627_s6 = inlined_call_operand.vmem [shape: f32[1,128], index: 6, kind: input, shape index: {}]   ;;  %s5628_s7 = inlined_call_operand.vmem [shape: bf16[128,128], index: 7, kind: input, shape index: {}]   ;;  %s5629_s8 = inlined_call_operand.vmem [shape: f32[1,128], index: 8, kind: input, shape index: {}]   ;;  %s5630_s9 = inlined_call_operand.vmem [shape: bf16[2,8,16,128], index: 9, kind: output, shape index: {}]  }
   0x1 LB: > { %s5014_s10 = sadd.s32 4294967295, %s4951_s30   ;;  %p3842_p0 = scmp.ge.s32.totalorder %s4951_s30, 1  ;;  %s4951_s30 = sphi %s5008_s30, %s20_s30  }
   0x2   : > { %p245_p1 = scmp.lt.s32.totalorder %s4951_s30, 3  ;;  %s4953_s11 = smov [#allocation4]  }
   0x3   : > { %s263_s12 = sshll.u32 %s4953_s11, 4  ;;  %p5631_p3 = scmp.eq.s32.totalorder %s5014_s10, 0  ;;  %s264_s12 = int_to_ptr.vmem [resolvable:$true] %s263_s12 }
   0x4   : > { %p5018_p2 = pnand %p3842_p0, %p245_p1  ;;  %s4913_s17 = scalar_lea.hbm %s5624_s3, 9216 }
   0x5   : > { %p4914_p6 = scmp.ne.s32.totalorder %s5624_s3, %s4913_s17  ;;  %p4920_p10 = scmp.lt.u32.totalorder %s4913_s17, %s5624_s3 }
   0x6   : > { %s5633_s13 = scalar_select %p5018_p2, 1, 0 }
   0x7   : > { %p4782_p4 = pneg %p5018_p2 }
   0x9   : > { %p5027_p5 = pnand %p5631_p3, %p4782_p4 }
   0xb   : > { %p4915_p7 = pneg %p5027_p5 }
   0xd   : > { %p4916_p8 = pnand %p4915_p7, %p4914_p6 }
   0xf   : > { %p4917_p9 = pneg %p4916_p8 }
  0x11   : > { %p4922_p11 = pnand %p4920_p10, %p4917_p9 }
  0x13   : > { %4925 = shalt.err (!%p4922_p11)
}
  0x14   : > { %s4926_s22 = scalar_lea.vmem %s264_s12, 9216  ;;  %p4934_p1 = scmp.lt.s32.totalorder %s264_s12, %s264_s12 }
  0x15   : > { %p4927_p12 = scmp.ne.s32.totalorder %s264_s12, %s4926_s22  ;;  %p4935_p4 = scmp.lt.s32.totalorder %s4926_s22, %s4926_s22 }
  0x17   : > { %p4929_p13 = pnand %p4927_p12, %p4915_p7  ;;  %p4936_p3 = por %p4935_p4, %p4934_p1 }
  0x19   : > { %p4930_p0 = pneg %p4929_p13 }
  0x1b   : > { %p4937_p2 = pnand %p4936_p3, %p4930_p0 }
  0x1d   : > { %4940 = shalt.err (!%p4937_p2)
}
  0x1e   : > { %s4954_s23 = smov 64   ;;  %s4955_s24 = smov 4  }
  0x1f   : > { %4785 = dma.hbm_to_vmem [thread:$0]  (!%p5027_p5), %s5624_s3, 9216, %s264_s12, [#allocation5], %s4954_s23, %s4954_s23, %s4955_s24  }
  0x20   : > { %p5635_p6 = scmp.ne.s32.totalorder %s5633_s13, 0 }
  0x21   : > { %p5636_p8 = scmp.eq.s32.totalorder (!%p5635_p6), %s5014_s10, 0 }
  0x22   : > { %302 = sbr.rel (%p5635_p6) target bundleno = 979 (0x3d3), region = 56 }
  0x29   : > { %4946 = dma.done.wait (%p5636_p8), [#allocation5], 9216   ;;  %p5637_p7 = pmov %p5636_p8 }
  0x2a   : > { %p338_p2 = scmp.lt.s32.totalorder %s5014_s10, 1  ;;  %v4801_v0 = vld [vmem:[%s5622_s1] sm:$0xff]   ;;  %v4802_v1 = vld [vmem:[%s5622_s1 + $0x8] sm:$0xff]   ;;  %v4803_v2 = vld [vmem:[%s5622_s1 + $0x10] sm:$0xff]   ;;  %v4956_v26 = vmov 0   ;;  %v4957_v44 = vmov 0.0  }
  0x2b   : > { %4948 = vsyncadd (%p5637_p7), [#allocation5], 4294958080  ;;  %4234 = vmatprep.subr.bf16.mxu0 %v4801_v0  ;;  %v4804_v3 = vld [vmem:[%s5622_s1 + $0x18] sm:$0xff]   ;;  %v4805_v5 = vld [vmem:[%s5622_s1 + $0x20] sm:$0xff]   ;;  %630 = vst [vmem:[#allocation2] sm:$0xff] %v4956_v26  ;;  %vm642_vm0 = vcmask 1043456  }
  0x2c   : > { %s5639_s10 = smov (!%p338_p2, %s5014_s10), 1  ;;  %4235 = vmatpush3.bf16.msra.mxu0 %v4801_v0  ;;  %v4806_v6 = vld [vmem:[%s5622_s1 + $0x28] sm:$0xff]   ;;  %v4807_v7 = vld [vmem:[%s5622_s1 + $0x30] sm:$0xff]   ;;  %v4808_v8 = vld [vmem:[%s5622_s1 + $0x38] sm:$0xff]   ;;  %631 = vst [vmem:[#allocation2 + $0x8] sm:$0xf] %v4956_v26 }
  0x2d   : > { %s3977_s12 = sshll.u32 %s5639_s10, 6  ;;  %4236 = vmatprep.subr.bf16.mxu0 %v4802_v1  ;;  %v4817_v9 = vld [vmem:[#allocation4] sm:$0xff]   ;;  %v4818_v12 = vld [vmem:[#allocation4 + $0x8] sm:$0xff]   ;;  %v4820_v20 = vld [vmem:[#allocation4 + $0x10] sm:$0xff]   ;;  %632 = vst [vmem:[#allocation2 + $0x48] sm:$0xf0] %v4956_v26 }
  0x2e   : > { %s5072_s17 = scalar_lea.vmem %s5621_s0, %s3977_s12  ;;  %v4819_v18 = vld [vmem:[#allocation4 + $0xc0] sm:$0xff]   ;;  %v4821_v19 = vld [vmem:[#allocation4 + $0xc8] sm:$0xff]   ;;  %v4823_v21 = vld [vmem:[#allocation4 + $0xd0] sm:$0xff]   ;;  %633 = vst [vmem:[#allocation2 + $0x50] sm:$0xff] %v4956_v26  ;;  %vm701_vm1 = vsmask.f32 4352  ;;  %s5584_s18 = scalar_lea.vmem %s5630_s9, %s3977_s12 }
  0x2f   : > { %v4809_v4 = vld [vmem:[%s5072_s17] sm:$0xff]   ;;  %v4810_v10 = vld [vmem:[%s5072_s17 + $0x8] sm:$0xff]   ;;  %v4811_v11 = vld [vmem:[%s5072_s17 + $0x10] sm:$0xff]   ;;  %4362 = vmatprep.subr.bf16.mxu1 %v4819_v18  ;;  %vm1230_vm2 = vsmask.f32 3328 }
  0x30   : > { %4237 = vmatpush3.bf16.msra.mxu0 %v4802_v1  ;;  %4250 = vmatprep.mubr.bf16.mxu0 %v4809_v4  ;;  %v4812_v13 = vld [vmem:[%s5072_s17 + $0x18] sm:$0xff]   ;;  %v4813_v14 = vld [vmem:[%s5072_s17 + $0x20] sm:$0xff]   ;;  %v4814_v15 = vld [vmem:[%s5072_s17 + $0x28] sm:$0xff]  }
  0x31   : > { %4238 = vmatprep.subr.bf16.mxu0 %v4803_v2  ;;  %v4815_v16 = vld [vmem:[%s5072_s17 + $0x30] sm:$0xff]   ;;  %v4816_v17 = vld [vmem:[%s5072_s17 + $0x38] sm:$0xff]   ;;  %4363 = vmatpush3.bf16.msra.mxu1 %v4819_v18  ;;  %v4826_v27 = vld [vmem:[#allocation4 + $0x28] sm:$0xff]  }
  0x32   : > { %4364 = vmatprep.subr.bf16.mxu1 %v4821_v19  ;;  %v4822_v22 = vld [vmem:[#allocation4 + $0x18] sm:$0xff]   ;;  %v4824_v24 = vld [vmem:[#allocation4 + $0x20] sm:$0xff]   ;;  %v4829_v28 = vld [vmem:[#allocation4 + $0xe8] sm:$0xff]  }
  0x33   : > { %v4825_v23 = vld [vmem:[#allocation4 + $0xd8] sm:$0xff]   ;;  %v4827_v25 = vld [vmem:[#allocation4 + $0xe0] sm:$0xff]   ;;  %v4828_v29 = vld [vmem:[#allocation4 + $0x30] sm:$0xff]  }
  0x34   : > { %4239 = vmatpush3.bf16.msra.mxu0 %v4803_v2  ;;  %v4831_v30 = vld [vmem:[#allocation4 + $0xf0] sm:$0xff]   ;;  %v4830_v31 = vld [vmem:[#allocation4 + $0x38] sm:$0xff]   ;;  %v5097_v33 = vld [vmem:[#allocation4 + $0x40] sm:$0xff]  }
  0x35   : > { %4240 = vmatprep.subr.bf16.mxu0 %v4804_v3  ;;  %4365 = vmatpush3.bf16.msra.mxu1 %v4821_v19  ;;  %v4833_v32 = vld [vmem:[#allocation4 + $0xf8] sm:$0xff]   ;;  %v5099_v34 = vld [vmem:[#allocation4 + $0x100] sm:$0xff]   ;;  %v5106_v35 = vld [vmem:[%s5623_s2] ss:$0 sm:$0xff] }
  0x36   : > { %4366 = vmatprep.subr.bf16.mxu1 %v4823_v21  ;;  %v676_v46 = vld [vmem:[#allocation2] sm:$0xf8] }
  0x37   : > { %v703_v51 = vshrl.u32 %v676_v46, 16  ;;  %v706_v52 = vshll.u32 %v676_v46, 16 }
  0x38   : > { %4241 = vmatpush3.bf16.msra.mxu0 %v4804_v3 }
  0x39   : > { %4242 = vmatprep.subr.bf16.mxu0 %v4805_v5  ;;  %4367 = vmatpush3.bf16.msra.mxu1 %v4823_v21  ;;  %v705_v63 = vrot.slane %v703_v51, 3  ;;  %v708_v0 = vrot.slane %v706_v52, 4 }
  0x3a   : > { %4368 = vmatprep.subr.bf16.mxu1 %v4825_v23 }
  0x3c   : > { %4243 = vmatpush3.bf16.msra.mxu0 %v4805_v5 }
  0x3d   : > { %4244 = vmatprep.subr.bf16.mxu0 %v4806_v6  ;;  %4369 = vmatpush3.bf16.msra.mxu1 %v4825_v23 }
  0x3e   : > { %4370 = vmatprep.subr.bf16.mxu1 %v4827_v25 }
  0x40   : > { %4245 = vmatpush3.bf16.msra.mxu0 %v4806_v6 }
  0x41   : > { %4246 = vmatprep.subr.bf16.mxu0 %v4807_v7  ;;  %4371 = vmatpush3.bf16.msra.mxu1 %v4827_v25 }
  0x42   : > { %4372 = vmatprep.subr.bf16.mxu1 %v4829_v28 }
  0x44   : > { %4247 = vmatpush3.bf16.msra.mxu0 %v4807_v7 }
  0x45   : > { %4248 = vmatprep.subr.bf16.mxu0 %v4808_v8  ;;  %4373 = vmatpush3.bf16.msra.mxu1 %v4829_v28 }
  0x46   : > { %4374 = vmatprep.subr.bf16.mxu1 %v4831_v30 }
  0x48   : > { %4249 = vmatpush3.bf16.msra.mxu0 %v4808_v8 }
  0x49   : > { %4266 = vmatprep.subr.bf16.mxu0 %v4817_v9  ;;  %4375 = vmatpush3.bf16.msra.mxu1 %v4831_v30 }
  0x4a   : > { %4376 = vmatprep.subr.bf16.mxu1 %v4833_v32 }
  0x4b   : > { %4251 = vmatmul.mubr.bf16.vlgmr.msra.gmra.mrb[0].mxu0 %v4810_v10 }
  0x4c   : > { %4254 = vmatprep.mubr.bf16.mxu0 %v4811_v11  ;;  %4267 = vmatpush3.bf16.msra.mxu0 %v4817_v9 }
  0x4d   : > { %4268 = vmatprep.subr.bf16.mxu0 %v4818_v12  ;;  %4377 = vmatpush3.bf16.msra.mxu1 %v4833_v32 }
  0x4e   : > { %4394 = vmatprep.subr.bf16.mxu1 %v5099_v34 }
  0x50   : > { %4269 = vmatpush3.bf16.msra.mxu0 %v4818_v12 }
  0x51   : > { %4270 = vmatprep.subr.bf16.mxu0 %v4820_v20 }
  0x53   : > { %4255 = vmatmul.mubr.bf16.gmra.mrb[4].mxu0 %v4812_v13 }
  0x54   : > { %4258 = vmatprep.mubr.bf16.mxu0 %v4813_v14  ;;  %4271 = vmatpush3.bf16.msra.mxu0 %v4820_v20  ;;  %v709_v14 = vor.u32 %v708_v0, %v705_v63 }
  0x55   : > { %4272 = vmatprep.subr.bf16.mxu0 %v4822_v22 }
  0x58   : > { %4273 = vmatpush3.bf16.msra.mxu0 %v4822_v22 }
  0x59   : > { %4274 = vmatprep.subr.bf16.mxu0 %v4824_v24 }
  0x5b   : > { %4259 = vmatmul.mubr.bf16.gmra.mrb[8].mxu0 %v4814_v15 }
  0x5c   : > { %4262 = vmatprep.mubr.bf16.mxu0 %v4815_v16  ;;  %4275 = vmatpush3.bf16.msra.mxu0 %v4824_v24 }
  0x5d   : > { %4276 = vmatprep.subr.bf16.mxu0 %v4826_v27 }
  0x60   : > { %4277 = vmatpush3.bf16.msra.mxu0 %v4826_v27 }
  0x61   : > { %4278 = vmatprep.subr.bf16.mxu0 %v4828_v29 }
  0x63   : > { %4263 = vmatmul.mubr.bf16.gmra.mrb[12].mxu0 %v4816_v17 }
  0x64   : > { %4279 = vmatpush3.bf16.msra.mxu0 %v4828_v29 }
  0x65   : > { %4280 = vmatprep.subr.bf16.mxu0 %v4830_v31 }
  0x68   : > { %4281 = vmatpush3.bf16.msra.mxu0 %v4830_v31 }
  0x69   : > { %4298 = vmatprep.subr.bf16.mxu0 %v5097_v33 }
 0x11e   : > { %v4252_v36 = vpop.f32.mrb[0].mxu0 }
 0x11f   : > { %v527_v37 = vadd.f32 %v4252_v36, %v5106_v35  ;;  %v518_v38 = vpop.f32.mrb[1].mxu0 }
 0x120   : > { %v519_v39 = vadd.f32 %v5106_v35, %v518_v38  ;;  %v4253_v40 = vpop.f32.mrb[2].mxu0 }
 0x121   : > { %v583_v41 = vmax.f32 %v527_v37, 0.0  ;;  %v521_v42 = vpop.f32.mrb[3].mxu0 }
 0x122   : > { %v581_v43 = vmax.f32 %v519_v39, 0.0 }
 0x123   : > { %v623_v45 = vpack.c.bf16 %v4957_v44, %v583_v41 }
 0x124   : > { %v622_v47 = vpack.c.bf16 %v4957_v44, %v581_v43 }
 0x125   : > { %v644_v48 = vrot.slane %v623_v45, 4 }
 0x126   : > { %v643_v49 = vrot.slane %v622_v47, 4  ;;  %v4256_v50 = vpop.f32.mrb[4].mxu0 }
 0x127   : > { %v543_v53 = vadd.f32 %v4256_v50, %v5106_v35  ;;  %v534_v54 = vpop.f32.mrb[5].mxu0 }
 0x128   : > { %v5114_v55 = vsel %vm642_vm0, %v643_v49, %v644_v48  ;;  %667 = vst [vmem:[#allocation2 + $0x8] sm:$0xf0] %v643_v49  ;;  %v535_v56 = vadd.f32 %v5106_v35, %v534_v54  ;;  %v4257_v57 = vpop.f32.mrb[6].mxu0 }
 0x129   : > { %668 = vst [vmem:[#allocation2 + $0x10] sm:$0xff] %v5114_v55  ;;  %v587_v58 = vmax.f32 %v543_v53, 0.0  ;;  %v537_v59 = vpop.f32.mrb[7].mxu0  ;;  %v720_v60 = vshrl.u32 %v5114_v55, 16  ;;  %v723_v61 = vshll.u32 %v5114_v55, 16  ;;  %v4834_v57 = vld [vmem:[#allocation4 + $0x48] sm:$0xff]  }
 0x12a   : > { %v585_v62 = vmax.f32 %v535_v56, 0.0 }
 0x12b   : > { %v625_v1 = vpack.c.bf16 %v4957_v44, %v587_v58  ;;  %v722_v2 = vrot.slane %v720_v60, 3  ;;  %v725_v3 = vrot.slane %v723_v61, 4  ;;  %v1251_v4 = vrot.slane %v720_v60, 4 }
 0x12c   : > { %v624_v5 = vpack.c.bf16 %v4957_v44, %v585_v62  ;;  %v1254_v6 = vrot.slane %v723_v61, 5 }
 0x12d   : > { %v648_v7 = vrot.slane %v625_v1, 4  ;;  %v726_v15 = vor.u32 %v725_v3, %v722_v2  ;;  %v4837_v2 = vld [vmem:[#allocation4 + $0x108] sm:$0xff]  }
 0x12e   : > { %v646_v8 = vrot.slane %v624_v5, 4  ;;  %v4260_v9 = vpop.f32.mrb[8].mxu0  ;;  %v5122_v10 = vor.u32 %v1254_v6, %v1251_v4 }
 0x12f   : > { %v559_v11 = vadd.f32 %v4260_v9, %v5106_v35  ;;  %v550_v12 = vpop.f32.mrb[9].mxu0  ;;  %v5125_v13 = vld [vmem:[#allocation2 + $0x8] sm:$0xff] }
 0x130   : > { %v1512_v16 = vld [vmem:[#allocation2 + $0x8] sm:$0xf8]  ;;  %v5128_v17 = vsel %vm642_vm0, %v644_v48, %v646_v8  ;;  %v5131_v18 = vsel %vm642_vm0, %v646_v8, %v648_v7  ;;  %v551_v19 = vadd.f32 %v5106_v35, %v550_v12  ;;  %v4261_v20 = vpop.f32.mrb[10].mxu0  ;;  %v711_v21 = vshrl.u32 %v5125_v13, 16 }
 0x131   : > { %669 = vst [vmem:[#allocation2 + $0x18] sm:$0xff] %v5128_v17  ;;  %670 = vst [vmem:[#allocation2 + $0x20] sm:$0xff] %v5131_v18  ;;  %v591_v22 = vmax.f32 %v559_v11, 0.0  ;;  %v553_v23 = vpop.f32.mrb[11].mxu0  ;;  %v714_v24 = vshll.u32 %v5125_v13, 16  ;;  %v1539_v25 = vshrl.u32 %v1512_v16, 16 }
 0x132   : > { %v1542_v26 = vshll.u32 %v1512_v16, 16  ;;  %v589_v27 = vmax.f32 %v551_v19, 0.0  ;;  %v713_v28 = vrot.slane %v711_v21, 3  ;;  %v729_v29 = vshrl.u32 %v5128_v17, 16  ;;  %v4836_v9 = vld [vmem:[#allocation4 + $0x50] sm:$0xff]  }
 0x133   : > { %v732_v30 = vshll.u32 %v5128_v17, 16  ;;  %v5143_v31 = vpack.c.bf16 %v4957_v44, %v591_v22  ;;  %v716_v32 = vrot.slane %v714_v24, 4  ;;  %v1541_v36 = vrot.slane %v1539_v25, 3  ;;  %v4839_v20 = vld [vmem:[#allocation4 + $0x110] sm:$0xff]  }
 0x134   : > { %v1544_v37 = vrot.slane %v1542_v26, 4  ;;  %v626_v38 = vpack.c.bf16 %v4957_v44, %v589_v27  ;;  %v731_v39 = vrot.slane %v729_v29, 3  ;;  %v738_v41 = vshrl.u32 %v5131_v18, 16 }
 0x135   : > { %v734_v40 = vrot.slane %v732_v30, 4  ;;  %v652_v42 = vrot.slane %v5143_v31, 4  ;;  %v717_v43 = vor.u32 %v716_v32, %v713_v28  ;;  %v741_v46 = vshll.u32 %v5131_v18, 16  ;;  %v4841_v31 = vld [vmem:[#allocation4 + $0x118] sm:$0xff]  }
 0x136   : > { %v1545_v45 = vor.u32 %v1544_v37, %v1541_v36  ;;  %v650_v47 = vrot.slane %v626_v38, 4  ;;  %v4264_v48 = vpop.f32.mrb[12].mxu0  ;;  %v740_v50 = vrot.slane %v738_v41, 3  ;;  %v5185_v23 = vrot.slane %v5114_v55, 4 }
 0x137   : > { %v735_v49 = vor.u32 %v734_v40, %v731_v39  ;;  %v575_v51 = vadd.f32 %v4264_v48, %v5106_v35  ;;  %v566_v52 = vpop.f32.mrb[13].mxu0  ;;  %v718_v53 = vsel %vm701_vm1, %v709_v14, %v717_v43  ;;  %v727_v54 = vsel %vm701_vm1, %v717_v43, %v726_v15  ;;  %v4840_v48 = vld [vmem:[#allocation4 + $0x60] sm:$0xff]  }
 0x138   : > { %v1554_v56 = vsel %vm701_vm1, %v1545_v45, %v726_v15  ;;  %v5160_v58 = vsel %vm642_vm0, %v648_v7, %v650_v47  ;;  %v5165_v59 = vsel %vm642_vm0, %v650_v47, %v652_v42  ;;  %v567_v60 = vadd.f32 %v5106_v35, %v566_v52  ;;  %4282 = vmatprep.mubr.bf16.mxu0 %v718_v53  ;;  %v4265_v61 = vpop.f32.mrb[14].mxu0 }
 0x139   : > { %4378 = vmatprep.mubr.bf16.mxu1 %v1554_v56  ;;  %v743_v62 = vrot.slane %v741_v46, 4  ;;  %671 = vst [vmem:[#allocation2 + $0x28] sm:$0xff] %v5160_v58  ;;  %672 = vst [vmem:[#allocation2 + $0x30] sm:$0xff] %v5165_v59  ;;  %v595_v63 = vmax.f32 %v575_v51, 0.0  ;;  %4283 = vmatmul.mubr.bf16.vlgmr.msra.gmra.mrb[16].mxu0 %v727_v54  ;;  %v569_v0 = vpop.f32.mrb[15].mxu0  ;;  %v736_v1 = vsel %vm701_vm1, %v726_v15, %v735_v49  ;;  %v747_v3 = vshrl.u32 %v5160_v58, 16 }
 0x13a   : > { %v750_v4 = vshll.u32 %v5160_v58, 16  ;;  %v593_v5 = vmax.f32 %v567_v60, 0.0  ;;  %4299 = vmatpush3.bf16.msra.mxu0 %v5097_v33  ;;  %4286 = vmatprep.mubr.bf16.mxu0 %v736_v1  ;;  %v756_v6 = vshrl.u32 %v5165_v59, 16  ;;  %v759_v7 = vshll.u32 %v5165_v59, 16  ;;  %v4843_v56 = vld [vmem:[#allocation4 + $0x120] sm:$0xff]  }
 0x13b   : > { %v744_v35 = vor.u32 %v743_v62, %v740_v50  ;;  %v629_v8 = vpack.c.bf16 %v4957_v44, %v595_v63  ;;  %4300 = vmatprep.subr.bf16.mxu0 %v4834_v57  ;;  %4379 = vmatmul.mubr.bf16.vlgmr.msra.gmra.mrb[0].mxu1 %v736_v1  ;;  %v749_v11 = vrot.slane %v747_v3, 3  ;;  %v991_v27 = vrot.slane %v5128_v17, 4  ;;  %v4842_v62 = vld [vmem:[#allocation4 + $0x68] sm:$0xff]  }
 0x13c   : > { %v752_v12 = vrot.slane %v750_v4, 4  ;;  %v628_v14 = vpack.c.bf16 %v4957_v44, %v593_v5  ;;  %4395 = vmatpush3.bf16.msra.mxu1 %v5099_v34  ;;  %v758_v15 = vrot.slane %v756_v6, 3  ;;  %v761_v16 = vrot.slane %v759_v7, 4  ;;  %v4838_v34 = vld [vmem:[#allocation4 + $0x58] sm:$0xff]   ;;  %v951_v7 = vld [vmem:[#allocation2] sm:$0xf0] }
 0x13d   : > { %v745_v33 = vsel %vm701_vm1, %v735_v49, %v744_v35  ;;  %v656_v19 = vrot.slane %v629_v8, 4  ;;  %4396 = vmatprep.subr.bf16.mxu1 %v4837_v2  ;;  %v993_v44 = vrot.slane %v5131_v18, 4  ;;  %v995_v32 = vrot.slane %v5160_v58, 4  ;;  %v4845_v8 = vld [vmem:[#allocation4 + $0x128] sm:$0xff]  }
 0x13e   : > { %4382 = vmatprep.mubr.bf16.mxu1 %v745_v33  ;;  %v753_v22 = vor.u32 %v752_v12, %v749_v11  ;;  %v654_v25 = vrot.slane %v628_v14, 4  ;;  %4301 = vmatpush3.bf16.msra.mxu0 %v4834_v57  ;;  %v762_v26 = vor.u32 %v761_v16, %v758_v15  ;;  %v997_v36 = vrot.slane %v5165_v59, 4  ;;  %v1819_v16 = vld [vmem:[#allocation2 + $0x8] sm:$0xf0] }
 0x13f   : > { %675 = vst [vmem:[#allocation2 + $0x48] sm:$0xf] %v656_v19  ;;  %4302 = vmatprep.subr.bf16.mxu0 %v4836_v9  ;;  %v5203_v38 = vsel %vm642_vm0, %v5185_v23, %v991_v27  ;;  %v5212_v43 = vsel %vm642_vm0, %v991_v27, %v993_v44  ;;  %v5215_v45 = vsel %vm642_vm0, %v993_v44, %v995_v32  ;;  %v986_v15 = vrot.slane %v951_v7, 4 }
 0x140   : > { %v754_v28 = vsel %vm701_vm1, %v744_v35, %v753_v22  ;;  %v5195_v55 = vsel %vm642_vm0, %v652_v42, %v654_v25  ;;  %v5198_v37 = vsel %vm642_vm0, %v654_v25, %v656_v19  ;;  %4397 = vmatpush3.bf16.msra.mxu1 %v4837_v2  ;;  %v763_v18 = vsel %vm701_vm1, %v753_v22, %v762_v26 }
 0x141   : > { %673 = vst [vmem:[#allocation2 + $0x38] sm:$0xff] %v5195_v55  ;;  %674 = vst [vmem:[#allocation2 + $0x40] sm:$0xff] %v5198_v37  ;;  %4287 = vmatmul.mubr.bf16.gmra.mrb[20].mxu0 %v745_v33  ;;  %4398 = vmatprep.subr.bf16.mxu1 %v4839_v20  ;;  %v765_v39 = vshrl.u32 %v5195_v55, 16  ;;  %v768_v40 = vshll.u32 %v5195_v55, 16  ;;  %v1601_v41 = vshrl.u32 %v5198_v37, 16  ;;  %v1604_v42 = vshll.u32 %v5198_v37, 16 }
 0x142   : > { %4303 = vmatpush3.bf16.msra.mxu0 %v4836_v9  ;;  %4290 = vmatprep.mubr.bf16.mxu0 %v754_v28  ;;  %v5218_v46 = vsel %vm642_vm0, %v995_v32, %v997_v36  ;;  %v5221_v47 = vrot.slane %v5195_v55, 4  ;;  %v1867_v54 = vrot.slane %v5198_v37, 4  ;;  %v4844_v33 = vld [vmem:[#allocation4 + $0x70] sm:$0xff]   ;;  %v1260_v19 = vrot.slane %v729_v29, 4 }
 0x143   : > { %4304 = vmatprep.subr.bf16.mxu0 %v4838_v34  ;;  %4383 = vmatmul.mubr.bf16.gmra.mrb[4].mxu1 %v754_v28  ;;  %v767_v49 = vrot.slane %v765_v39, 3  ;;  %v770_v50 = vrot.slane %v768_v40, 4  ;;  %v1603_v51 = vrot.slane %v1601_v41, 3  ;;  %v1606_v52 = vrot.slane %v1604_v42, 4  ;;  %v4846_v28 = vld [vmem:[#allocation4 + $0x78] sm:$0xff]   ;;  %v4852_v55 = vld [vmem:[#allocation4 + $0x90] sm:$0xff]  }
 0x144   : > { %4399 = vmatpush3.bf16.msra.mxu1 %v4839_v20  ;;  %4386 = vmatprep.mubr.bf16.mxu1 %v763_v18  ;;  %v5229_v53 = vsel %vm642_vm0, %v997_v36, %v5221_v47  ;;  %v5236_v61 = vsel %vm642_vm0, %v5221_v47, %v1867_v54  ;;  %v1263_v20 = vrot.slane %v732_v30, 5  ;;  %v987_v25 = vrot.slane %v5125_v13, 4  ;;  %v4860_v13 = vld [vmem:[#allocation4 + $0xb0] sm:$0xff]  }
 0x145   : > { %4400 = vmatprep.subr.bf16.mxu1 %v4841_v31  ;;  %v771_v57 = vor.u32 %v770_v50, %v767_v49  ;;  %v1607_v59 = vor.u32 %v1606_v52, %v1603_v51  ;;  %v1854_v32 = vrot.slane %v1819_v16, 4  ;;  %v1278_v29 = vrot.slane %v747_v3, 4  ;;  %v4850_v50 = vld [vmem:[#allocation4 + $0x88] sm:$0xff]  }
 0x146   : > { %4305 = vmatpush3.bf16.msra.mxu0 %v4838_v34  ;;  %v1520_v60 = vld [vmem:[#allocation2 + $0x48] sm:$0xf]  ;;  %v5245_v44 = vor.u32 %v1263_v20, %v1260_v19  ;;  %v1281_v17 = vrot.slane %v750_v4, 5  ;;  %v988_v36 = vsel %vm642_vm0, %v986_v15, %v987_v25  ;;  %v1296_v58 = vrot.slane %v765_v39, 4  ;;  %v4848_v4 = vld [vmem:[#allocation4 + $0x80] sm:$0xff]   ;;  %v4853_v51 = vld [vmem:[#allocation4 + $0x148] sm:$0xff]  }
 0x147   : > { %4306 = vmatprep.subr.bf16.mxu0 %v4840_v48  ;;  %v772_v63 = vsel %vm701_vm1, %v762_v26, %v771_v57  ;;  %v1608_v0 = vsel %vm701_vm1, %v771_v57, %v1607_v59  ;;  %v1610_v1 = vshrl.u32 %v1520_v60, 16  ;;  %v1613_v2 = vshll.u32 %v1520_v60, 16  ;;  %v4847_v26 = vld [vmem:[#allocation4 + $0x130] sm:$0xff]   ;;  %v1204_v52 = vld [vmem:[#allocation2] sm:$0xf0] }
 0x148   : > { %4401 = vmatpush3.bf16.msra.mxu1 %v4841_v31  ;;  %v684_v5 = vld [vmem:[#allocation2 + $0x40] sm:$0xf]  ;;  %v5255_v30 = vsel %vm1230_vm2, %v5122_v10, %v5245_v44  ;;  %v5258_v31 = vor.u32 %v1281_v17, %v1278_v29  ;;  %v1856_v41 = vsel %vm642_vm0, %v1854_v32, %v5185_v23  ;;  %v1299_v42 = vrot.slane %v768_v40, 5  ;;  %v4855_v40 = vld [vmem:[#allocation4 + $0x150] sm:$0xff]  }
 0x149   : > { %4291 = vmatmul.mubr.bf16.gmra.mrb[24].mxu0 %v763_v18  ;;  %4402 = vmatprep.subr.bf16.mxu1 %v4843_v56  ;;  %v774_v35 = vshrl.u32 %v684_v5, 16  ;;  %v777_v6 = vshll.u32 %v684_v5, 16  ;;  %v1612_v9 = vrot.slane %v1610_v1, 3  ;;  %v1615_v11 = vrot.slane %v1613_v2, 4  ;;  %v4849_v18 = vld [vmem:[#allocation4 + $0x138] sm:$0xff]  }
 0x14a   : > { %4307 = vmatpush3.bf16.msra.mxu0 %v4840_v48  ;;  %4294 = vmatprep.mubr.bf16.mxu0 %v772_v63  ;;  %v4851_v48 = vld [vmem:[#allocation4 + $0x140] sm:$0xff]   ;;  %v5267_v49 = vor.u32 %v1299_v42, %v1296_v58  ;;  %v990_v39 = vsel %vm642_vm0, %v987_v25, %v5185_v23  ;;  %v4854_v23 = vld [vmem:[#allocation4 + $0x98] sm:$0xff]   ;;  %v1235_v60 = vshll.u32 %v1204_v52, 16  ;;  %v1245_v17 = vrot.slane %v714_v24, 5 }
 0x14b   : > { %4308 = vmatprep.subr.bf16.mxu0 %v4842_v62  ;;  %4387 = vmatmul.mubr.bf16.gmra.mrb[8].mxu1 %v772_v63  ;;  %v776_v12 = vrot.slane %v774_v35, 3  ;;  %v779_v14 = vrot.slane %v777_v6, 4  ;;  %v1616_v27 = vor.u32 %v1615_v11, %v1612_v9  ;;  %v2073_v1 = vld [vmem:[#allocation2 + $0x10] sm:$0xff]  ;;  %v4856_v35 = vld [vmem:[#allocation4 + $0xa0] sm:$0xff]  }
 0x14c   : > { %4403 = vmatpush3.bf16.msra.mxu1 %v4843_v56  ;;  %4390 = vmatprep.mubr.bf16.mxu1 %v1608_v0  ;;  %v2947_v56 = vld [vmem:[#allocation2 + $0x50] sm:$0x1f]  ;;  %v2072_v0 = vld [vmem:[#allocation2 + $0x8] sm:$0xf0]  ;;  %v5283_v6 = vld [vmem:[#allocation2 + $0x18] sm:$0xff]  ;;  %v2107_v15 = vshrl.u32 %v2073_v1, 16 }
 0x14d   : > { %v780_v22 = vor.u32 %v779_v14, %v776_v12  ;;  %4404 = vmatprep.subr.bf16.mxu1 %v4845_v8  ;;  %v1617_v3 = vsel %vm701_vm1, %v1607_v59, %v1616_v27  ;;  %v1232_v59 = vshrl.u32 %v1204_v52, 16  ;;  %v3037_v63 = vshrl.u32 %v2947_v56, 16  ;;  %v5292_v12 = vld [vmem:[#allocation2 + $0x48] sm:$0xff]  ;;  %v4859_v14 = vld [vmem:[#allocation4 + $0x160] sm:$0xff]   ;;  %v4858_v27 = vld [vmem:[#allocation4 + $0xa8] sm:$0xff]  }
 0x14e   : > { %4309 = vmatpush3.bf16.msra.mxu0 %v4842_v62  ;;  %v5277_v62 = vld [vmem:[#allocation2 + $0x40] sm:$0xff]  ;;  %v2110_v19 = vshll.u32 %v2073_v1, 16  ;;  %v2414_v25 = vshrl.u32 %v5283_v6, 16  ;;  %v2468_v32 = vshrl.u32 %v5292_v12, 16  ;;  %v2471_v58 = vshll.u32 %v5292_v12, 16 }
 0x14f   : > { %v781_v34 = vsel %vm701_vm1, %v771_v57, %v780_v22  ;;  %4310 = vmatprep.subr.bf16.mxu0 %v4844_v33  ;;  %v5274_v57 = vld [vmem:[#allocation2 + $0x20] sm:$0xff]  ;;  %v5286_v7 = vrot.slane %v1232_v59, 4  ;;  %v2161_v9 = vshrl.u32 %v5277_v62, 16  ;;  %v2164_v11 = vshll.u32 %v5277_v62, 16 }
 0x150   : > { %4405 = vmatpush3.bf16.msra.mxu1 %v4845_v8  ;;  %v1267_v2 = vshrl.u32 %v5274_v57, 16  ;;  %v1270_v5 = vshll.u32 %v5274_v57, 16  ;;  %v5288_v8 = vrot.slane %v1235_v60, 5  ;;  %v5294_v16 = vrot.slane %v3037_v63, 4 }
 0x151   : > { %4295 = vmatmul.mubr.bf16.gmra.mrb[28].mxu0 %v781_v34  ;;  %4406 = vmatprep.subr.bf16.mxu1 %v4847_v26  ;;  %v1242_v34 = vrot.slane %v711_v21, 4  ;;  %v959_v21 = vld [vmem:[#allocation2 + $0x40] sm:$0xf]  ;;  %v2109_v24 = vrot.slane %v2107_v15, 4  ;;  %v3033_v60 = vrot.slane %v2471_v58, 5 }
 0x152   : > { %4311 = vmatpush3.bf16.msra.mxu0 %v4844_v33  ;;  %4314 = vmatprep.mubr.bf16.mxu0 %v988_v36  ;;  %v2102_v33 = vshll.u32 %v2072_v0, 16  ;;  %v1269_v20 = vrot.slane %v1267_v2, 4  ;;  %v1272_v22 = vrot.slane %v1270_v5, 5  ;;  %v4861_v36 = vld [vmem:[#allocation4 + $0x168] sm:$0xff]  }
 0x153   : > { %4312 = vmatprep.subr.bf16.mxu0 %v4846_v28  ;;  %4391 = vmatmul.mubr.bf16.gmra.mrb[12].mxu1 %v1617_v3  ;;  %v2166_v3 = vrot.slane %v2164_v11, 5  ;;  %v1246_v63 = vor.u32 %v1245_v17, %v1242_v34  ;;  %v5354_v34 = vld [vmem:[#allocation2 + $0x30] sm:$0xff] }
 0x154   : > { %4407 = vmatpush3.bf16.msra.mxu1 %v4847_v26  ;;  %4410 = vmatprep.mubr.bf16.mxu1 %v1856_v41  ;;  %v2939_v26 = vld [vmem:[#allocation2 + $0x10] sm:$0xf0]  ;;  %v2104_v41 = vrot.slane %v2102_v33, 5  ;;  %v1285_v37 = vshrl.u32 %v5354_v34, 16 }
 0x155   : > { %4408 = vmatprep.subr.bf16.mxu1 %v4849_v18  ;;  %v2966_v42 = vshrl.u32 %v2939_v26, 16 }
 0x156   : > { %4313 = vmatpush3.bf16.msra.mxu0 %v4846_v28  ;;  %v2417_v28 = vshll.u32 %v5283_v6, 16 }
 0x157   : > { %4330 = vmatprep.subr.bf16.mxu0 %v4848_v4 }
 0x158   : > { %4409 = vmatpush3.bf16.msra.mxu1 %v4849_v18  ;;  %v2163_v18 = vrot.slane %v2161_v9, 4  ;;  %v2979_v52 = vrot.slane %v2417_v28, 5 }
 0x159   : > { %4315 = vmatmul.mubr.bf16.vlgmr.msra.gmra.mrb[16].mxu0 %v990_v39  ;;  %4426 = vmatprep.subr.bf16.mxu1 %v4851_v48  ;;  %v5314_v39 = vor.u32 %v1272_v22, %v1269_v20  ;;  %v4864_v22 = vld [vmem:[#allocation4 + $0x178] sm:$0xff]  }
 0x15a   : > { %4318 = vmatprep.mubr.bf16.mxu0 %v5203_v38  ;;  %4331 = vmatpush3.bf16.msra.mxu0 %v4848_v4  ;;  %v5324_v59 = vor.u32 %v2166_v3, %v2163_v18  ;;  %v1256_v18 = vsel %vm1230_vm2, %v1246_v63, %v5122_v10  ;;  %v4866_v3 = vld [vmem:[#allocation4 + $0x188] sm:$0xff]  }
 0x15b   : > { %4332 = vmatprep.subr.bf16.mxu0 %v4850_v50  ;;  %4411 = vmatmul.mubr.bf16.vlgmr.msra.gmra.mrb[0].mxu1 %v5203_v38  ;;  %v4857_v38 = vld [vmem:[#allocation4 + $0x158] sm:$0xff]   ;;  %v2132_v10 = vsel %vm1230_vm2, %v5245_v44, %v5314_v39 }
 0x15c   : > { %4427 = vmatpush3.bf16.msra.mxu1 %v4851_v48  ;;  %4414 = vmatprep.mubr.bf16.mxu1 %v5212_v43  ;;  %v2969_v48 = vshll.u32 %v2939_v26, 16 }
 0x15d   : > { %4428 = vmatprep.subr.bf16.mxu1 %v4853_v51 }
 0x15e   : > { %4333 = vmatpush3.bf16.msra.mxu0 %v4850_v50  ;;  %v2112_v50 = vrot.slane %v2110_v19, 5 }
 0x15f   : > { %4334 = vmatprep.subr.bf16.mxu0 %v4852_v55 }
 0x160   : > { %4429 = vmatpush3.bf16.msra.mxu1 %v4853_v51  ;;  %v2976_v51 = vrot.slane %v2414_v25, 4  ;;  %v2113_v33 = vor.u32 %v2112_v50, %v2109_v24 }
 0x161   : > { %4319 = vmatmul.mubr.bf16.gmra.mrb[20].mxu0 %v5212_v43  ;;  %4430 = vmatprep.subr.bf16.mxu1 %v4855_v40  ;;  %v3040_v43 = vshll.u32 %v2947_v56, 16  ;;  %v3030_v56 = vrot.slane %v2468_v32, 4 }
 0x162   : > { %4322 = vmatprep.mubr.bf16.mxu0 %v5215_v45  ;;  %4335 = vmatpush3.bf16.msra.mxu0 %v4852_v55  ;;  %v2968_v55 = vrot.slane %v2966_v42, 4  ;;  %v1287_v42 = vrot.slane %v1285_v37, 4 }
 0x163   : > { %4336 = vmatprep.subr.bf16.mxu0 %v4854_v23  ;;  %4415 = vmatmul.mubr.bf16.gmra.mrb[4].mxu1 %v5215_v45  ;;  %v2099_v45 = vshrl.u32 %v2072_v0, 16  ;;  %v3042_v29 = vrot.slane %v3040_v43, 5  ;;  %v4863_v0 = vld [vmem:[#allocation4 + $0x170] sm:$0xff]  }
 0x164   : > { %4431 = vmatpush3.bf16.msra.mxu1 %v4855_v40  ;;  %4418 = vmatprep.mubr.bf16.mxu1 %v5218_v46  ;;  %v2971_v40 = vrot.slane %v2969_v48, 5  ;;  %v5376_v48 = vld [vmem:[#allocation2 + $0x38] sm:$0xff] }
 0x165   : > { %4432 = vmatprep.subr.bf16.mxu1 %v4857_v38  ;;  %v2101_v4 = vrot.slane %v2099_v45, 4  ;;  %v2152_v50 = vshrl.u32 %v5376_v48, 16 }
 0x166   : > { %4337 = vmatpush3.bf16.msra.mxu0 %v4854_v23  ;;  %v1001_v23 = vrot.slane %v959_v21, 4  ;;  %v2972_v1 = vor.u32 %v2971_v40, %v2968_v55  ;;  %v2123_v21 = vsel %vm1230_vm2, %v2113_v33, %v5245_v44  ;;  %v1283_v44 = vsel %vm1230_vm2, %v5314_v39, %v5258_v31  ;;  %v4868_v55 = vld [vmem:[#allocation4 + $0x198] sm:$0xff]   ;;  %v1212_v40 = vld [vmem:[#allocation2 + $0x40] sm:$0x1f] }
 0x167   : > { %4338 = vmatprep.subr.bf16.mxu0 %v4856_v35  ;;  %v2105_v45 = vor.u32 %v2104_v41, %v2101_v4 }
 0x168   : > { %4433 = vmatpush3.bf16.msra.mxu1 %v4857_v38  ;;  %v1238_v38 = vor.u32 %v5288_v8, %v5286_v7  ;;  %v1002_v7 = vsel %vm642_vm0, %v5221_v47, %v1001_v23 }
 0x169   : > { %4323 = vmatmul.mubr.bf16.gmra.mrb[24].mxu0 %v5218_v46  ;;  %4434 = vmatprep.subr.bf16.mxu1 %v4859_v14  ;;  %v1827_v46 = vld [vmem:[#allocation2 + $0x48] sm:$0xf]  ;;  %v2114_v47 = vsel %vm1230_vm2, %v2105_v45, %v2113_v33 }
 0x16a   : > { %4326 = vmatprep.mubr.bf16.mxu0 %v5229_v53  ;;  %4339 = vmatpush3.bf16.msra.mxu0 %v4856_v35  ;;  %v2980_v35 = vor.u32 %v2979_v52, %v2976_v51  ;;  %v1869_v43 = vrot.slane %v1827_v46, 4  ;;  %v1247_v20 = vsel %vm1230_vm2, %v1238_v38, %v1246_v63  ;;  %v2155_v51 = vshll.u32 %v5376_v48, 16  ;;  %v4869_v63 = vld [vmem:[#allocation4 + $0x1a0] sm:$0xff]  }
 0x16b   : > { %4340 = vmatprep.subr.bf16.mxu0 %v4858_v27  ;;  %4419 = vmatmul.mubr.bf16.gmra.mrb[8].mxu1 %v5229_v53  ;;  %v3043_v53 = vor.u32 %v3042_v29, %v5294_v16  ;;  %v4865_v29 = vld [vmem:[#allocation4 + $0x180] sm:$0xff]   ;;  %v1306_v38 = vshll.u32 %v1212_v40, 16 }
 0x16c   : > { %4435 = vmatpush3.bf16.msra.mxu1 %v4859_v14  ;;  %4422 = vmatprep.mubr.bf16.mxu1 %v5236_v61  ;;  %v3034_v14 = vor.u32 %v3033_v60, %v3030_v56  ;;  %v4862_v61 = vld [vmem:[#allocation4 + $0xb8] sm:$0xff]   ;;  %v5332_v15 = vsel %vm1230_vm2, %v2972_v1, %v2980_v35  ;;  %v5336_v16 = vsel %vm1230_vm2, %v2980_v35, %v5314_v39  ;;  %v2154_v56 = vrot.slane %v2152_v50, 4 }
 0x16d   : > { %4436 = vmatprep.subr.bf16.mxu1 %v4861_v36  ;;  %v1870_v26 = vsel %vm642_vm0, %v1867_v54, %v1869_v43  ;;  %v1288_v54 = vshll.u32 %v5354_v34, 16  ;;  %v2157_v23 = vrot.slane %v2155_v51, 5  ;;  %v2379_v1 = vld [vmem:[#allocation2 + $0x10] sm:$0xf8] }
 0x16e   : > { %4341 = vmatpush3.bf16.msra.mxu0 %v4858_v27  ;;  %v5342_v8 = vsel %vm1230_vm2, %v5324_v59, %v3034_v14  ;;  %v5345_v19 = vsel %vm1230_vm2, %v3034_v14, %v3043_v53  ;;  %v5352_v27 = vld [vmem:[#allocation2 + $0x28] sm:$0xff]  ;;  %v1303_v53 = vshrl.u32 %v1212_v40, 16  ;;  %v1308_v14 = vrot.slane %v1306_v38, 5 }
 0x16f   : > { %4342 = vmatprep.subr.bf16.mxu0 %v4860_v13  ;;  %v2134_v17 = vshrl.u32 %v5352_v27, 16  ;;  %v2452_v38 = vrot.slane %v2152_v50, 3  ;;  %v2464_v50 = vrot.slane %v2164_v11, 4 }
 0x170   : > { %4437 = vmatpush3.bf16.msra.mxu1 %v4861_v36  ;;  %v2137_v36 = vshll.u32 %v5352_v27, 16  ;;  %v1305_v43 = vrot.slane %v1303_v53, 4  ;;  %v2443_v53 = vrot.slane %v1285_v37, 3  ;;  %v4876_v37 = vld [vmem:[#allocation4 + $0x1d8] sm:$0xff]  }
 0x171   : > { %4327 = vmatmul.mubr.bf16.gmra.mrb[28].mxu0 %v1002_v7  ;;  %4438 = vmatprep.subr.bf16.mxu1 %v4863_v0  ;;  %v2136_v4 = vrot.slane %v2134_v17, 4  ;;  %v4870_v7 = vld [vmem:[#allocation4 + $0x1a8] sm:$0xff]  }
 0x172   : > { %4343 = vmatpush3.bf16.msra.mxu0 %v4860_v13  ;;  %4346 = vmatprep.mubr.bf16.mxu0 %v1247_v20  ;;  %v2139_v41 = vrot.slane %v2137_v36, 5  ;;  %v4867_v13 = vld [vmem:[#allocation4 + $0x190] sm:$0xff]   ;;  %v2406_v20 = vshrl.u32 %v2379_v1, 16  ;;  %v2437_v40 = vrot.slane %v2137_v36, 4 }
 0x173   : > { %4344 = vmatprep.subr.bf16.mxu0 %v4862_v61  ;;  %4423 = vmatmul.mubr.bf16.gmra.mrb[12].mxu1 %v1870_v26 }
 0x174   : > { %4439 = vmatpush3.bf16.msra.mxu1 %v4863_v0  ;;  %4442 = vmatprep.mubr.bf16.mxu1 %v2114_v47  ;;  %v2140_v24 = vor.u32 %v2139_v41, %v2136_v4  ;;  %v2158_v0 = vor.u32 %v2157_v23, %v2154_v56  ;;  %v2416_v47 = vrot.slane %v2414_v25, 3  ;;  %v4871_v4 = vld [vmem:[#allocation4 + $0x1b0] sm:$0xff]   ;;  %v2408_v41 = vrot.slane %v2406_v20, 3  ;;  %v4873_v56 = vld [vmem:[#allocation4 + $0x1c0] sm:$0xff]   ;;  %v4878_v20 = vld [vmem:[#allocation4 + $0x1e8] sm:$0xff]  }
 0x175   : > { %4440 = vmatprep.subr.bf16.mxu1 %v4864_v22 }
 0x176   : > { %4345 = vmatpush3.bf16.msra.mxu0 %v4862_v61  ;;  %v5385_v52 = vsel %vm1230_vm2, %v5314_v39, %v2140_v24  ;;  %v2080_v39 = vld [vmem:[#allocation2 + $0x48] sm:$0x1f] }
 0x177   : > { %v2170_v61 = vshrl.u32 %v2080_v39, 16  ;;  %v2173_v45 = vshll.u32 %v2080_v39, 16  ;;  %v4875_v39 = vld [vmem:[#allocation4 + $0x1d0] sm:$0xff]  }
 0x178   : > { %4441 = vmatpush3.bf16.msra.mxu1 %v4864_v22  ;;  %v2409_v22 = vshll.u32 %v2379_v1, 16 }
 0x179   : > { %4347 = vmatmul.mubr.bf16.vlgmr.msra.gmra.mrb[16].mxu0 %v1256_v18  ;;  %4458 = vmatprep.subr.bf16.mxu1 %v4865_v29  ;;  %v1309_v18 = vor.u32 %v1308_v14, %v1305_v43  ;;  %v2387_v43 = vld [vmem:[#allocation2 + $0x50] sm:$0xf]  ;;  %v4877_v14 = vld [vmem:[#allocation4 + $0x1e0] sm:$0xff]  }
 0x17a   : > { %4350 = vmatprep.mubr.bf16.mxu0 %v5255_v30  ;;  %v1290_v30 = vrot.slane %v1288_v54, 5 }
 0x17b   : > { %4443 = vmatmul.mubr.bf16.vlgmr.msra.gmra.mrb[0].mxu1 %v2123_v21  ;;  %v2175_v21 = vrot.slane %v2173_v45, 5  ;;  %v2473_v45 = vrot.slane %v2471_v58, 4  ;;  %v2686_v58 = vld [vmem:[#allocation2 + $0x10] sm:$0xf0] }
 0x17c   : > { %4459 = vmatpush3.bf16.msra.mxu1 %v4865_v29  ;;  %4446 = vmatprep.mubr.bf16.mxu1 %v2132_v10  ;;  %v1291_v46 = vor.u32 %v1290_v30, %v1287_v42  ;;  %v2419_v29 = vrot.slane %v2417_v28, 4  ;;  %v1310_v30 = vsel %vm1230_vm2, %v5267_v49, %v1309_v18  ;;  %v4872_v28 = vld [vmem:[#allocation4 + $0x1b8] sm:$0xff]  }
 0x17d   : > { %4460 = vmatprep.subr.bf16.mxu1 %v4866_v3 }
 0x17e   : > { %v5393_v60 = vsel %vm1230_vm2, %v2140_v24, %v1291_v46  ;;  %v1292_v35 = vsel %vm1230_vm2, %v5258_v31, %v1291_v46  ;;  %v1301_v33 = vsel %vm1230_vm2, %v1291_v46, %v5267_v49  ;;  %v5401_v26 = vsel %vm1230_vm2, %v1291_v46, %v2158_v0 }
 0x17f   : > { %v5406_v31 = vsel %vm1230_vm2, %v2158_v0, %v5324_v59  ;;  %v2420_v42 = vor.u32 %v2419_v29, %v2416_v47  ;;  %v2425_v46 = vrot.slane %v1267_v2, 3  ;;  %v2434_v49 = vrot.slane %v2134_v17, 3  ;;  %v4874_v2 = vld [vmem:[#allocation4 + $0x1c8] sm:$0xff]  }
 0x180   : > { %4461 = vmatpush3.bf16.msra.mxu1 %v4866_v3  ;;  %v2172_v3 = vrot.slane %v2170_v61, 4  ;;  %v2446_v17 = vrot.slane %v1288_v54, 4  ;;  %v2470_v61 = vrot.slane %v2468_v32, 3  ;;  %v4879_v32 = vld [vmem:[#allocation4 + $0x1f0] sm:$0xff]  }
 0x181   : > { %4351 = vmatmul.mubr.bf16.gmra.mrb[20].mxu0 %v2132_v10  ;;  %4462 = vmatprep.subr.bf16.mxu1 %v4867_v13  ;;  %v2411_v10 = vrot.slane %v2409_v22, 4  ;;  %v2438_v23 = vor.u32 %v2437_v40, %v2434_v49  ;;  %v4885_v40 = vld [vmem:[#allocation4 + $0x220] sm:$0xff]  }
 0x182   : > { %4354 = vmatprep.mubr.bf16.mxu0 %v1283_v44  ;;  %v2428_v44 = vrot.slane %v1270_v5, 4  ;;  %v2447_v0 = vor.u32 %v2446_v17, %v2443_v53  ;;  %v2474_v11 = vor.u32 %v2473_v45, %v2470_v61  ;;  %v4888_v17 = vld [vmem:[#allocation4 + $0x238] sm:$0xff]  }
 0x183   : > { %4447 = vmatmul.mubr.bf16.gmra.mrb[4].mxu1 %v5385_v52  ;;  %v2412_v25 = vor.u32 %v2411_v10, %v2408_v41  ;;  %v4880_v41 = vld [vmem:[#allocation4 + $0x1f8] sm:$0xff]  }
 0x184   : > { %4463 = vmatpush3.bf16.msra.mxu1 %v4867_v13  ;;  %4450 = vmatprep.mubr.bf16.mxu1 %v5393_v60  ;;  %v2176_v13 = vor.u32 %v2175_v21, %v2172_v3  ;;  %v2448_v54 = vsel %vm701_vm1, %v2438_v23, %v2447_v0  ;;  %v2722_v21 = vrot.slane %v5283_v6, 4  ;;  %v4882_v6 = vld [vmem:[#allocation4 + $0x208] sm:$0xff]  }
 0x185   : > { %4464 = vmatprep.subr.bf16.mxu1 %v4868_v55 }
 0x186   : > { %v2177_v24 = vsel %vm1230_vm2, %v5324_v59, %v2176_v13  ;;  %v2429_v59 = vor.u32 %v2428_v44, %v2425_v46  ;;  %v2724_v13 = vrot.slane %v5274_v57, 4  ;;  %v4883_v46 = vld [vmem:[#allocation4 + $0x210] sm:$0xff]   ;;  %v2728_v44 = vrot.slane %v5354_v34, 4  ;;  %v4884_v57 = vld [vmem:[#allocation4 + $0x218] sm:$0xff]  }
 0x187   : > { %v2734_v34 = vrot.slane %v5292_v12, 4  ;;  %v4889_v12 = vld [vmem:[%s5626_s5] sm:$0xff]  }
 0x188   : > { %4465 = vmatpush3.bf16.msra.mxu1 %v4868_v55  ;;  %v2421_v55 = vsel %vm701_vm1, %v2412_v25, %v2420_v42  ;;  %v2430_v5 = vsel %vm701_vm1, %v2420_v42, %v2429_v59  ;;  %v2439_v36 = vsel %vm701_vm1, %v2429_v59, %v2438_v23  ;;  %v2726_v25 = vrot.slane %v5352_v27, 4  ;;  %v4886_v59 = vld [vmem:[#allocation4 + $0x228] sm:$0xff]   ;;  %4554 = vmatprep.subr.bf16.mxu0 %v4889_v12 }
 0x189   : > { %4355 = vmatmul.mubr.bf16.gmra.mrb[24].mxu0 %v1292_v35  ;;  %4466 = vmatprep.subr.bf16.mxu1 %v4869_v63  ;;  %v2461_v35 = vrot.slane %v2161_v9, 3  ;;  %v2480_v9 = vshll.u32 %v2387_v43, 16 }
 0x18a   : > { %4358 = vmatprep.mubr.bf16.mxu0 %v1301_v33  ;;  %v2729_v27 = vsel %vm642_vm0, %v2726_v25, %v2728_v44  ;;  %4555 = vmatpush3.bf16.msra.mxu0 %v4889_v12 }
 0x18b   : > { %4451 = vmatmul.mubr.bf16.gmra.mrb[8].mxu1 %v5401_v26  ;;  %v2465_v33 = vor.u32 %v2464_v50, %v2461_v35  ;;  %v2482_v29 = vrot.slane %v2480_v9, 4  ;;  %v5510_v9 = vld [vmem:[%s5625_s4] ss:$0 sm:$0xff] }
 0x18c   : > { %4467 = vmatpush3.bf16.msra.mxu1 %v4869_v63  ;;  %4454 = vmatprep.mubr.bf16.mxu1 %v5406_v31  ;;  %v2455_v63 = vrot.slane %v2155_v51, 4 }
 0x18d   : > { %4468 = vmatprep.subr.bf16.mxu1 %v4870_v7  ;;  %v2475_v18 = vsel %vm701_vm1, %v2465_v33, %v2474_v11 }
 0x18e   : > { %v2456_v1 = vor.u32 %v2455_v63, %v2452_v38 }
 0x190   : > { %4469 = vmatpush3.bf16.msra.mxu1 %v4870_v7  ;;  %v2457_v51 = vsel %vm701_vm1, %v2447_v0, %v2456_v1  ;;  %v2477_v7 = vshrl.u32 %v2387_v43, 16  ;;  %v2466_v22 = vsel %vm701_vm1, %v2456_v1, %v2465_v33 }
 0x191   : > { %4359 = vmatmul.mubr.bf16.gmra.mrb[28].mxu0 %v1310_v30  ;;  %4470 = vmatprep.subr.bf16.mxu1 %v4871_v4  ;;  %v4881_v30 = vld [vmem:[#allocation4 + $0x200] sm:$0xff]  }
 0x192   : > { %v2479_v47 = vrot.slane %v2477_v7, 3 }
 0x193   : > { %4455 = vmatmul.mubr.bf16.gmra.mrb[12].mxu1 %v2177_v24  ;;  %v2727_v24 = vsel %vm642_vm0, %v2724_v13, %v2726_v25 }
 0x194   : > { %4471 = vmatpush3.bf16.msra.mxu1 %v4871_v4  ;;  %4474 = vmatprep.mubr.bf16.mxu1 %v2421_v55  ;;  %v2483_v3 = vor.u32 %v2482_v29, %v2479_v47  ;;  %v2721_v4 = vrot.slane %v2686_v58, 4  ;;  %v2730_v55 = vrot.slane %v5376_v48, 4 }
 0x195   : > { %4472 = vmatprep.subr.bf16.mxu1 %v4872_v28 }
 0x196   : > { %v2484_v10 = vsel %vm701_vm1, %v2474_v11, %v2483_v3  ;;  %v2723_v42 = vsel %vm642_vm0, %v2721_v4, %v2722_v21  ;;  %v2731_v49 = vsel %vm642_vm0, %v2728_v44, %v2730_v55 }
 0x198   : > { %4473 = vmatpush3.bf16.msra.mxu1 %v4872_v28  ;;  %v2725_v28 = vsel %vm642_vm0, %v2722_v21, %v2724_v13 }
 0x199   : > { %4490 = vmatprep.subr.bf16.mxu1 %v4873_v56 }
 0x19b   : > { %4475 = vmatmul.mubr.bf16.vlgmr.msra.gmra.mrb[0].mxu1 %v2430_v5  ;;  %v4887_v5 = vld [vmem:[#allocation4 + $0x230] sm:$0xff]  }
 0x19c   : > { %4491 = vmatpush3.bf16.msra.mxu1 %v4873_v56  ;;  %4478 = vmatprep.mubr.bf16.mxu1 %v2439_v36  ;;  %v2732_v56 = vrot.slane %v5277_v62, 4  ;;  %v4890_v36 = vld [vmem:[%s5626_s5 + $0x8] sm:$0xff]  }
 0x19d   : > { %4492 = vmatprep.subr.bf16.mxu1 %v4874_v2  ;;  %4556 = vmatprep.subr.bf16.mxu0 %v4890_v36 }
 0x19e   : > { %v2733_v48 = vsel %vm642_vm0, %v2730_v55, %v2732_v56  ;;  %v2735_v23 = vsel %vm642_vm0, %v2732_v56, %v2734_v34  ;;  %4557 = vmatpush3.bf16.msra.mxu0 %v4890_v36 }
 0x1a0   : > { %4493 = vmatpush3.bf16.msra.mxu1 %v4874_v2  ;;  %v2694_v2 = vld [vmem:[#allocation2 + $0x50] sm:$0xf] }
 0x1a1   : > { %4494 = vmatprep.subr.bf16.mxu1 %v4875_v39  ;;  %v2736_v53 = vrot.slane %v2694_v2, 4  ;;  %v4899_v2 = vld [vmem:[%s5628_s7 + $0x10] sm:$0xff]  }
 0x1a3   : > { %4479 = vmatmul.mubr.bf16.gmra.mrb[4].mxu1 %v2448_v54  ;;  %v2737_v62 = vsel %vm642_vm0, %v2734_v34, %v2736_v53 }
 0x1a4   : > { %4495 = vmatpush3.bf16.msra.mxu1 %v4875_v39  ;;  %4482 = vmatprep.mubr.bf16.mxu1 %v2457_v51 }
 0x1a5   : > { %4496 = vmatprep.subr.bf16.mxu1 %v4876_v37 }
 0x1a8   : > { %4497 = vmatpush3.bf16.msra.mxu1 %v4876_v37 }
 0x1a9   : > { %4498 = vmatprep.subr.bf16.mxu1 %v4877_v14 }
 0x1ab   : > { %4483 = vmatmul.mubr.bf16.gmra.mrb[8].mxu1 %v2466_v22 }
 0x1ac   : > { %4499 = vmatpush3.bf16.msra.mxu1 %v4877_v14  ;;  %4486 = vmatprep.mubr.bf16.mxu1 %v2475_v18 }
 0x1ad   : > { %4500 = vmatprep.subr.bf16.mxu1 %v4878_v20 }
 0x1b0   : > { %4501 = vmatpush3.bf16.msra.mxu1 %v4878_v20 }
 0x1b1   : > { %4502 = vmatprep.subr.bf16.mxu1 %v4879_v32 }
 0x1b3   : > { %4487 = vmatmul.mubr.bf16.gmra.mrb[12].mxu1 %v2484_v10 }
 0x1b4   : > { %4503 = vmatpush3.bf16.msra.mxu1 %v4879_v32  ;;  %4506 = vmatprep.mubr.bf16.mxu1 %v2723_v42 }
 0x1b5   : > { %4504 = vmatprep.subr.bf16.mxu1 %v4880_v41 }
 0x1b8   : > { %4505 = vmatpush3.bf16.msra.mxu1 %v4880_v41 }
 0x1b9   : > { %4522 = vmatprep.subr.bf16.mxu1 %v4881_v30 }
 0x1bb   : > { %4507 = vmatmul.mubr.bf16.vlgmr.msra.gmra.mrb[0].mxu1 %v2725_v28 }
 0x1bc   : > { %4523 = vmatpush3.bf16.msra.mxu1 %v4881_v30  ;;  %4510 = vmatprep.mubr.bf16.mxu1 %v2727_v24 }
 0x1bd   : > { %4524 = vmatprep.subr.bf16.mxu1 %v4882_v6 }
 0x1c0   : > { %4525 = vmatpush3.bf16.msra.mxu1 %v4882_v6 }
 0x1c1   : > { %4526 = vmatprep.subr.bf16.mxu1 %v4883_v46 }
 0x1c3   : > { %4511 = vmatmul.mubr.bf16.gmra.mrb[4].mxu1 %v2729_v27 }
 0x1c4   : > { %4527 = vmatpush3.bf16.msra.mxu1 %v4883_v46  ;;  %4514 = vmatprep.mubr.bf16.mxu1 %v2731_v49  ;;  %v4898_v49 = vld [vmem:[%s5628_s7 + $0x8] sm:$0xff]  }
 0x1c5   : > { %4528 = vmatprep.subr.bf16.mxu1 %v4884_v57 }
 0x1c8   : > { %4529 = vmatpush3.bf16.msra.mxu1 %v4884_v57 }
 0x1c9   : > { %4530 = vmatprep.subr.bf16.mxu1 %v4885_v40 }
 0x1cb   : > { %4515 = vmatmul.mubr.bf16.gmra.mrb[8].mxu1 %v2733_v48 }
 0x1cc   : > { %4531 = vmatpush3.bf16.msra.mxu1 %v4885_v40  ;;  %4518 = vmatprep.mubr.bf16.mxu1 %v2735_v23 }
 0x1cd   : > { %4532 = vmatprep.subr.bf16.mxu1 %v4886_v59 }
 0x1d0   : > { %4533 = vmatpush3.bf16.msra.mxu1 %v4886_v59 }
 0x1d1   : > { %4534 = vmatprep.subr.bf16.mxu1 %v4887_v5 }
 0x1d3   : > { %4519 = vmatmul.mubr.bf16.gmra.mrb[12].mxu1 %v2737_v62 }
 0x1d4   : > { %4535 = vmatpush3.bf16.msra.mxu1 %v4887_v5  ;;  %4538 = vmatprep.mubr.bf16.mxu1 %v5332_v15  ;;  %v4891_v15 = vld [vmem:[%s5626_s5 + $0x10] sm:$0xff]  }
 0x1d5   : > { %4536 = vmatprep.subr.bf16.mxu1 %v4888_v17  ;;  %4558 = vmatprep.subr.bf16.mxu0 %v4891_v15 }
 0x1d6   : > { %4559 = vmatpush3.bf16.msra.mxu0 %v4891_v15 }
 0x1d8   : > { %4537 = vmatpush3.bf16.msra.mxu1 %v4888_v17 }
 0x1db   : > { %4539 = vmatmul.mubr.bf16.vlgmr.msra.gmra.mrb[0].mxu1 %v5336_v16  ;;  %v4892_v16 = vld [vmem:[%s5626_s5 + $0x18] sm:$0xff]  }
 0x1dc   : > { %4542 = vmatprep.mubr.bf16.mxu1 %v5385_v52  ;;  %4560 = vmatprep.subr.bf16.mxu0 %v4892_v16  ;;  %v4893_v52 = vld [vmem:[%s5626_s5 + $0x20] sm:$0xff]  }
 0x1dd   : > { %4561 = vmatpush3.bf16.msra.mxu0 %v4892_v16 }
 0x1de   : > { %4562 = vmatprep.subr.bf16.mxu0 %v4893_v52 }
 0x1e1   : > { %4563 = vmatpush3.bf16.msra.mxu0 %v4893_v52 }
 0x1e3   : > { %4543 = vmatmul.mubr.bf16.gmra.mrb[4].mxu1 %v5393_v60  ;;  %v4895_v60 = vld [vmem:[%s5626_s5 + $0x30] sm:$0xff]  }
 0x1e4   : > { %4546 = vmatprep.mubr.bf16.mxu1 %v5401_v26  ;;  %v4897_v26 = vld [vmem:[%s5628_s7] sm:$0xff]  }
 0x1eb   : > { %4547 = vmatmul.mubr.bf16.gmra.mrb[8].mxu1 %v5406_v31 }
 0x1ec   : > { %4550 = vmatprep.mubr.bf16.mxu1 %v5342_v8  ;;  %v4894_v8 = vld [vmem:[%s5626_s5 + $0x28] sm:$0xff]  }
 0x1ed   : > { %4564 = vmatprep.subr.bf16.mxu0 %v4894_v8 }
 0x1ee   : > { %4565 = vmatpush3.bf16.msra.mxu0 %v4894_v8 }
 0x1ef   : > { %4566 = vmatprep.subr.bf16.mxu0 %v4895_v60 }
 0x1f2   : > { %4567 = vmatpush3.bf16.msra.mxu0 %v4895_v60 }
 0x1f3   : > { %4551 = vmatmul.mubr.bf16.gmra.mrb[12].mxu1 %v5345_v19  ;;  %v4896_v19 = vld [vmem:[%s5626_s5 + $0x38] sm:$0xff]  }
 0x1f4   : > { %4568 = vmatprep.subr.bf16.mxu0 %v4896_v19 }
 0x1f6   : > { %4569 = vmatpush3.bf16.msra.mxu0 %v4896_v19 }
 0x1f7   : > { %4586 = vmatprep.subr.bf16.mxu0 %v4897_v26 }
 0x24c   : > { %v4348_v31 = vpop.f32.mrb[16].mxu0 }
 0x24d   : > { %v1401_v38 = vpop.f32.mrb[17].mxu0 }
 0x24e   : > { %v4349_v63 = vpop.f32.mrb[18].mxu0 }
 0x24f   : > { %v1404_v39 = vpop.f32.mrb[19].mxu0 }
 0x254   : > { %v4352_v0 = vpop.f32.mrb[20].mxu0 }
 0x255   : > { %v1417_v1 = vpop.f32.mrb[21].mxu0 }
 0x256   : > { %v4353_v37 = vpop.f32.mrb[22].mxu0 }
 0x257   : > { %v1420_v54 = vpop.f32.mrb[23].mxu0 }
 0x25c   : > { %v4356_v35 = vpop.f32.mrb[24].mxu0 }
 0x25d   : > { %v1433_v50 = vpop.f32.mrb[25].mxu0 }
 0x25e   : > { %v4357_v51 = vpop.f32.mrb[26].mxu0 }
 0x25f   : > { %v1436_v43 = vpop.f32.mrb[27].mxu0 }
 0x264   : > { %v5499_v14 = vpop.f32.mrb[28].mxu0 }
 0x265   : > { %v5501_v61 = vpop.f32.mrb[29].mxu0 }
 0x266   : > { %v5503_v45 = vpop.f32.mrb[30].mxu0 }
 0x267   : > { %v5505_v33 = vpop.f32.mrb[31].mxu0 }
 0x2ae   : > { %v4540_v7 = vpop.f32.mrb[0].mxu1 }
 0x2af   : > { %v4618_v11 = vadd.f32 %v4540_v7, %v4348_v31  ;;  %v3135_v20 = vpop.f32.mrb[1].mxu1 }
 0x2b0   : > { %v4619_v22 = vadd.f32 %v3135_v20, %v1401_v38  ;;  %v4541_v47 = vpop.f32.mrb[2].mxu1 }
 0x2b1   : > { %v3271_v29 = vadd.f32 %v4618_v11, %v5510_v9  ;;  %v4620_v18 = vadd.f32 %v4541_v47, %v4349_v63  ;;  %v3138_v32 = vpop.f32.mrb[3].mxu1 }
 0x2b2   : > { %v3269_v3 = vadd.f32 %v4619_v22, %v5510_v9  ;;  %v4621_v58 = vadd.f32 %v3138_v32, %v1404_v39  ;;  %v4902_v32 = vld [vmem:[%s5628_s7 + $0x28] sm:$0xff]  }
 0x2b3   : > { %v3272_v21 = vadd.f32 %v4620_v18, %v5510_v9  ;;  %v3287_v41 = vmax.f32 %v3271_v29, 0.0 }
 0x2b4   : > { %v3270_v4 = vadd.f32 %v4621_v58, %v5510_v9  ;;  %v3285_v42 = vmax.f32 %v3269_v3, 0.0 }
 0x2b5   : > { %v3288_v10 = vmax.f32 %v3272_v21, 0.0 }
 0x2b6   : > { %v3286_v30 = vmax.f32 %v3270_v4, 0.0  ;;  %v4544_v13 = vpop.f32.mrb[4].mxu1  ;;  %v4903_v4 = vld [vmem:[%s5628_s7 + $0x30] sm:$0xff]  }
 0x2b7   : > { %v3302_v25 = vpack.c.bf16 %v3288_v10, %v3287_v41  ;;  %v4622_v6 = vadd.f32 %v4544_v13, %v4352_v0  ;;  %v3151_v28 = vpop.f32.mrb[5].mxu1  ;;  %v4906_v13 = vld [vmem:[%s5072_s17 + $0x8] sm:$0xff]  }
 0x2b8   : > { %v4623_v24 = vadd.f32 %v3151_v28, %v1417_v1  ;;  %v4545_v46 = vpop.f32.mrb[6].mxu1  ;;  %v3301_v44 = vpack.c.bf16 %v3286_v30, %v3285_v42  ;;  %v4905_v30 = vld [vmem:[%s5072_s17] sm:$0xff]  }
 0x2b9   : > { %v3275_v55 = vadd.f32 %v4622_v6, %v5510_v9  ;;  %v4624_v57 = vadd.f32 %v4545_v46, %v4353_v37  ;;  %v3154_v27 = vpop.f32.mrb[7].mxu1  ;;  %v4901_v37 = vld [vmem:[%s5628_s7 + $0x20] sm:$0xff]   ;;  %v4908_v6 = vld [vmem:[%s5072_s17 + $0x18] sm:$0xff]   ;;  %v4911_v46 = vld [vmem:[%s5072_s17 + $0x30] sm:$0xff]  }
 0x2ba   : > { %v3273_v40 = vadd.f32 %v4623_v24, %v5510_v9  ;;  %v4625_v56 = vadd.f32 %v3154_v27, %v1420_v54  ;;  %4570 = vmatprep.mubr.bf16.mxu0 %v3301_v44  ;;  %v4909_v28 = vld [vmem:[%s5072_s17 + $0x20] sm:$0xff]   ;;  %v4910_v24 = vld [vmem:[%s5072_s17 + $0x28] sm:$0xff]   ;;  %v4912_v44 = vld [vmem:[%s5072_s17 + $0x38] sm:$0xff]  }
 0x2bb   : > { %v3276_v34 = vadd.f32 %v4624_v57, %v5510_v9  ;;  %4571 = vmatmul.mubr.bf16.vlgmr.msra.gmra.mrb[32].mxu0 %v3302_v25  ;;  %v3291_v48 = vmax.f32 %v3275_v55, 0.0  ;;  %v4907_v25 = vld [vmem:[%s5072_s17 + $0x10] sm:$0xff]   ;;  %v5564_v55 = vld [vmem:[%s5627_s6] ss:$0 sm:$0xff] }
 0x2bc   : > { %v3274_v59 = vadd.f32 %v4625_v56, %v5510_v9  ;;  %4587 = vmatpush3.bf16.msra.mxu0 %v4897_v26  ;;  %v3289_v5 = vmax.f32 %v3273_v40, 0.0  ;;  %v4900_v26 = vld [vmem:[%s5628_s7 + $0x18] sm:$0xff]   ;;  %v5569_v27 = vld [vmem:[%s5629_s8] ss:$0 sm:$0xff] }
 0x2bd   : > { %v3292_v23 = vmax.f32 %v3276_v34, 0.0  ;;  %4588 = vmatprep.subr.bf16.mxu0 %v4898_v49 }
 0x2be   : > { %v3290_v53 = vmax.f32 %v3274_v59, 0.0  ;;  %v4548_v17 = vpop.f32.mrb[8].mxu1 }
 0x2bf   : > { %v4626_v62 = vadd.f32 %v4548_v17, %v4356_v35  ;;  %v3167_v12 = vpop.f32.mrb[9].mxu1  ;;  %v3304_v36 = vpack.c.bf16 %v3292_v23, %v3291_v48 }
 0x2c0   : > { %v4627_v15 = vadd.f32 %v3167_v12, %v1433_v50  ;;  %4589 = vmatpush3.bf16.msra.mxu0 %v4898_v49  ;;  %v4549_v16 = vpop.f32.mrb[10].mxu1  ;;  %v3303_v52 = vpack.c.bf16 %v3290_v53, %v3289_v5 }
 0x2c1   : > { %v3279_v8 = vadd.f32 %v4626_v62, %v5510_v9  ;;  %v4628_v60 = vadd.f32 %v4549_v16, %v4357_v51  ;;  %v3170_v19 = vpop.f32.mrb[11].mxu1  ;;  %4590 = vmatprep.subr.bf16.mxu0 %v4899_v2 }
 0x2c2   : > { %v3277_v31 = vadd.f32 %v4627_v15, %v5510_v9  ;;  %v4629_v38 = vadd.f32 %v3170_v19, %v1436_v43  ;;  %4574 = vmatprep.mubr.bf16.mxu0 %v3303_v52 }
 0x2c3   : > { %v3280_v63 = vadd.f32 %v4628_v60, %v5510_v9  ;;  %4575 = vmatmul.mubr.bf16.gmra.mrb[36].mxu0 %v3304_v36  ;;  %v3295_v0 = vmax.f32 %v3279_v8, 0.0 }
 0x2c4   : > { %v3278_v39 = vadd.f32 %v4629_v38, %v5510_v9  ;;  %4591 = vmatpush3.bf16.msra.mxu0 %v4899_v2  ;;  %v3293_v54 = vmax.f32 %v3277_v31, 0.0 }
 0x2c5   : > { %v3296_v1 = vmax.f32 %v3280_v63, 0.0  ;;  %4592 = vmatprep.subr.bf16.mxu0 %v4900_v26 }
 0x2c6   : > { %v3294_v35 = vmax.f32 %v3278_v39, 0.0  ;;  %v4552_v50 = vpop.f32.mrb[12].mxu1 }
 0x2c7   : > { %v4630_v51 = vadd.f32 %v4552_v50, %v5499_v14  ;;  %v3183_v43 = vpop.f32.mrb[13].mxu1  ;;  %v3306_v7 = vpack.c.bf16 %v3296_v1, %v3295_v0 }
 0x2c8   : > { %v4631_v11 = vadd.f32 %v3183_v43, %v5501_v61  ;;  %4593 = vmatpush3.bf16.msra.mxu0 %v4900_v26  ;;  %v4553_v20 = vpop.f32.mrb[14].mxu1  ;;  %v3305_v22 = vpack.c.bf16 %v3294_v35, %v3293_v54 }
 0x2c9   : > { %v3283_v47 = vadd.f32 %v4630_v51, %v5510_v9  ;;  %v4632_v29 = vadd.f32 %v4553_v20, %v5503_v45  ;;  %v3186_v18 = vpop.f32.mrb[15].mxu1  ;;  %4594 = vmatprep.subr.bf16.mxu0 %v4901_v37 }
 0x2ca   : > { %v3281_v3 = vadd.f32 %v4631_v11, %v5510_v9  ;;  %v4633_v14 = vadd.f32 %v3186_v18, %v5505_v33  ;;  %4578 = vmatprep.mubr.bf16.mxu0 %v3305_v22 }
 0x2cb   : > { %v3284_v61 = vadd.f32 %v4632_v29, %v5510_v9  ;;  %4579 = vmatmul.mubr.bf16.gmra.mrb[40].mxu0 %v3306_v7  ;;  %v3299_v21 = vmax.f32 %v3283_v47, 0.0 }
 0x2cc   : > { %v3282_v58 = vadd.f32 %v4633_v14, %v5510_v9  ;;  %4595 = vmatpush3.bf16.msra.mxu0 %v4901_v37  ;;  %v3297_v41 = vmax.f32 %v3281_v3, 0.0  ;;  %v4904_v9 = vld [vmem:[%s5628_s7 + $0x38] sm:$0xff]  }
 0x2cd   : > { %v3300_v45 = vmax.f32 %v3284_v61, 0.0  ;;  %4596 = vmatprep.subr.bf16.mxu0 %v4902_v32 }
 0x2ce   : > { %v3298_v10 = vmax.f32 %v3282_v58, 0.0 }
 0x2cf   : > { %v3308_v33 = vpack.c.bf16 %v3300_v45, %v3299_v21 }
 0x2d0   : > { %4597 = vmatpush3.bf16.msra.mxu0 %v4902_v32  ;;  %v3307_v42 = vpack.c.bf16 %v3298_v10, %v3297_v41 }
 0x2d1   : > { %4598 = vmatprep.subr.bf16.mxu0 %v4903_v4 }
 0x2d2   : > { %4582 = vmatprep.mubr.bf16.mxu0 %v3307_v42 }
 0x2d3   : > { %4583 = vmatmul.mubr.bf16.gmra.mrb[44].mxu0 %v3308_v33 }
 0x2d4   : > { %4599 = vmatpush3.bf16.msra.mxu0 %v4903_v4  ;;  %4602 = vmatprep.mubr.bf16.mxu0 %v4905_v30 }
 0x2d5   : > { %4600 = vmatprep.subr.bf16.mxu0 %v4904_v9 }
 0x2d8   : > { %4601 = vmatpush3.bf16.msra.mxu0 %v4904_v9 }
 0x2db   : > { %4603 = vmatmul.mubr.bf16.vlgmr.msra.gmra.mrb[32].mxu0 %v4906_v13 }
 0x2dc   : > { %4606 = vmatprep.mubr.bf16.mxu0 %v4907_v25 }
 0x2e3   : > { %4607 = vmatmul.mubr.bf16.gmra.mrb[36].mxu0 %v4908_v6 }
 0x2e4   : > { %4610 = vmatprep.mubr.bf16.mxu0 %v4909_v28 }
 0x2eb   : > { %4611 = vmatmul.mubr.bf16.gmra.mrb[40].mxu0 %v4910_v24 }
 0x2ec   : > { %4614 = vmatprep.mubr.bf16.mxu0 %v4911_v46 }
 0x2f3   : > { %4615 = vmatmul.mubr.bf16.gmra.mrb[44].mxu0 %v4912_v44 }
 0x3ae   : > { %v4604_v57 = vpop.f32.mrb[32].mxu0 }
 0x3af   : > { %v4634_v49 = vadd.f32 %v4604_v57, %v5564_v55  ;;  %v3575_v40 = vpop.f32.mrb[33].mxu0 }
 0x3b0   : > { %v4635_v56 = vadd.f32 %v5564_v55, %v3575_v40  ;;  %v4605_v34 = vpop.f32.mrb[34].mxu0 }
 0x3b1   : > { %v3663_v59 = vadd.f32 %v4634_v49, %v5569_v27  ;;  %v4636_v48 = vadd.f32 %v4605_v34, %v5564_v55  ;;  %v3578_v23 = vpop.f32.mrb[35].mxu0 }
 0x3b2   : > { %v3661_v2 = vadd.f32 %v4635_v56, %v5569_v27  ;;  %v4637_v5 = vadd.f32 %v5564_v55, %v3578_v23 }
 0x3b3   : > { %v3664_v53 = vadd.f32 %v4636_v48, %v5569_v27  ;;  %v3679_v62 = vmax.f32 %v3663_v59, 0.0 }
 0x3b4   : > { %v3662_v17 = vadd.f32 %v4637_v5, %v5569_v27  ;;  %v3677_v36 = vmax.f32 %v3661_v2, 0.0 }
 0x3b5   : > { %v3680_v12 = vmax.f32 %v3664_v53, 0.0 }
 0x3b6   : > { %v3678_v15 = vmax.f32 %v3662_v17, 0.0  ;;  %v4608_v16 = vpop.f32.mrb[36].mxu0 }
 0x3b7   : > { %v4003_v52 = vpack.c.bf16 %v3680_v12, %v3679_v62  ;;  %v4638_v8 = vadd.f32 %v4608_v16, %v5564_v55  ;;  %v3591_v60 = vpop.f32.mrb[37].mxu0 }
 0x3b8   : > { %v3998_v19 = vpack.c.bf16 %v3678_v15, %v3677_v36  ;;  %v4639_v26 = vadd.f32 %v5564_v55, %v3591_v60  ;;  %v4609_v31 = vpop.f32.mrb[38].mxu0 }
 0x3b9   : > { %4035 = vst [vmem:[%s5584_s18 + $0x8] sm:$0xff] %v4003_v52   ;;  %v3667_v38 = vadd.f32 %v4638_v8, %v5569_v27  ;;  %v4640_v63 = vadd.f32 %v4609_v31, %v5564_v55  ;;  %v3594_v39 = vpop.f32.mrb[39].mxu0 }
 0x3ba   : > { %3999 = vst [vmem:[%s5584_s18] sm:$0xff] %v3998_v19   ;;  %v3665_v0 = vadd.f32 %v4639_v26, %v5569_v27  ;;  %v4641_v1 = vadd.f32 %v5564_v55, %v3594_v39 }
 0x3bb   : > { %v3668_v37 = vadd.f32 %v4640_v63, %v5569_v27  ;;  %v3683_v35 = vmax.f32 %v3667_v38, 0.0 }
 0x3bc   : > { %v3666_v54 = vadd.f32 %v4641_v1, %v5569_v27  ;;  %v3681_v51 = vmax.f32 %v3665_v0, 0.0 }
 0x3bd   : > { %v3684_v50 = vmax.f32 %v3668_v37, 0.0 }
 0x3be   : > { %v3682_v43 = vmax.f32 %v3666_v54, 0.0  ;;  %v4612_v7 = vpop.f32.mrb[40].mxu0 }
 0x3bf   : > { %v4013_v11 = vpack.c.bf16 %v3684_v50, %v3683_v35  ;;  %v4642_v20 = vadd.f32 %v4612_v7, %v5564_v55  ;;  %v3607_v22 = vpop.f32.mrb[41].mxu0 }
 0x3c0   : > { %v4008_v47 = vpack.c.bf16 %v3682_v43, %v3681_v51  ;;  %v4643_v29 = vadd.f32 %v5564_v55, %v3607_v22  ;;  %v4613_v18 = vpop.f32.mrb[42].mxu0 }
 0x3c1   : > { %4037 = vst [vmem:[%s5584_s18 + $0x18] sm:$0xff] %v4013_v11   ;;  %v3671_v32 = vadd.f32 %v4642_v20, %v5569_v27  ;;  %v4644_v3 = vadd.f32 %v4613_v18, %v5564_v55  ;;  %v3610_v14 = vpop.f32.mrb[43].mxu0 }
 0x3c2   : > { %4036 = vst [vmem:[%s5584_s18 + $0x10] sm:$0xff] %v4008_v47   ;;  %v3669_v61 = vadd.f32 %v4643_v29, %v5569_v27  ;;  %v4645_v58 = vadd.f32 %v5564_v55, %v3610_v14 }
 0x3c3   : > { %v3672_v21 = vadd.f32 %v4644_v3, %v5569_v27  ;;  %v3687_v4 = vmax.f32 %v3671_v32, 0.0 }
 0x3c4   : > { %v3670_v45 = vadd.f32 %v4645_v58, %v5569_v27  ;;  %v3685_v10 = vmax.f32 %v3669_v61, 0.0 }
 0x3c5   : > { %v3688_v41 = vmax.f32 %v3672_v21, 0.0 }
 0x3c6   : > { %v3686_v33 = vmax.f32 %v3670_v45, 0.0  ;;  %v4616_v42 = vpop.f32.mrb[44].mxu0 }
 0x3c7   : > { %v4023_v9 = vpack.c.bf16 %v3688_v41, %v3687_v4  ;;  %v4646_v30 = vadd.f32 %v4616_v42, %v5564_v55  ;;  %v3623_v13 = vpop.f32.mrb[45].mxu0 }
 0x3c8   : > { %v4018_v25 = vpack.c.bf16 %v3686_v33, %v3685_v10  ;;  %v4647_v6 = vadd.f32 %v5564_v55, %v3623_v13  ;;  %v4617_v28 = vpop.f32.mrb[46].mxu0 }
 0x3c9   : > { %4039 = vst [vmem:[%s5584_s18 + $0x28] sm:$0xff] %v4023_v9   ;;  %v3675_v24 = vadd.f32 %v4646_v30, %v5569_v27  ;;  %v4648_v46 = vadd.f32 %v4617_v28, %v5564_v55  ;;  %v3626_v44 = vpop.f32.mrb[47].mxu0 }
 0x3ca   : > { %4038 = vst [vmem:[%s5584_s18 + $0x20] sm:$0xff] %v4018_v25   ;;  %v3673_v57 = vadd.f32 %v4647_v6, %v5569_v27  ;;  %v4649_v49 = vadd.f32 %v5564_v55, %v3626_v44 }
 0x3cb   : > { %v3676_v40 = vadd.f32 %v4648_v46, %v5569_v27  ;;  %v3691_v34 = vmax.f32 %v3675_v24, 0.0 }
 0x3cc   : > { %v3674_v56 = vadd.f32 %v4649_v49, %v5569_v27  ;;  %v3689_v48 = vmax.f32 %v3673_v57, 0.0 }
 0x3cd   : > { %v3692_v59 = vmax.f32 %v3676_v40, 0.0 }
 0x3ce   : > { %v3690_v23 = vmax.f32 %v3674_v56, 0.0 }
 0x3cf   : > { %v4033_v2 = vpack.c.bf16 %v3692_v59, %v3691_v34 }
 0x3d0   : > { %v4028_v5 = vpack.c.bf16 %v3690_v23, %v3689_v48 }
 0x3d1   : > { %4041 = vst [vmem:[%s5584_s18 + $0x38] sm:$0xff] %v4033_v2  }
 0x3d2   : > { %4040 = vst [vmem:[%s5584_s18 + $0x30] sm:$0xff] %v4028_v5  }
 0x3d3 PF: > { %s20_s30 = sadd.s32 1, %s4951_s30  }
 0x3d4   : > { %p17_p3 = scmp.ge.s32.totalorder %s20_s30, 4  }
 0x3d6   :  { %19 = sbr.rel (!%p17_p3) target bundleno = 1 (0x1), region = 99 }
 0x3dd   :  { %3794 = vsyncpa [#allocation5], 1 }
 0x3de   :  { %3796 = vsyncpa [#allocation5 + $0x1], 1 }

</bundles_post_ra>
